<compile_context>
chip_gen: v5e
topology: v5e:2x2
jax: 0.10.0
libtpu: 0.0.40
codegen_flags: <defaults>
</compile_context>

<pallas_src>
import functools

import numpy as np
import jax
import jax.numpy as jnp
from jax.experimental import pallas as pl
from jax.experimental.pallas import tpu as pltpu


# ----------------------------- small helpers --------------------------------

def _round_up(v, m):
    return ((v + m - 1) // m) * m


def _pick_tile_h(H, W, c2in_p, budget_bytes=2 << 20):
    """Largest row-tile height (divisor of H) whose bf16 input window fits budget."""
    cands = [t for t in (256, 128, 64, 32, 16, 8, 4, 2, 1) if t <= H and H % t == 0]
    for t in cands:
        if (t + 4) * (W + 4) * c2in_p * 2 <= budget_bytes:
            return t
    return cands[-1]


# ----------------------------- Pallas kernel ---------------------------------

def _double_conv_kernel(x_ref, w1_ref, w2_ref, ws_ref, o_ref, h_ref, *, wp, m1, m2):
    """Fused DoubleConv on one (batch, row-tile) window.

    x_ref : (Mxt, C2in_p)  bf16 -- circularly padded window, rows flattened as
                                   (padded_row * wp + padded_col); trailing rows zero.
    w1_ref: (9, C2in_p, C2mid_p) bf16 -- per-tap complex block weights of conv1.
    w2_ref: (9, C2mid_p, C2out_p) bf16 -- per-tap complex block weights of conv2.
    ws_ref: (C2in_p, C2out_p) bf16 -- 1x1 shortcut complex block weights.
    o_ref : (M2, C2out_p) f32 -- output rows (junk in cols >= W of each row block,
                                 sliced away by the host wrapper).
    h_ref : (M1, C2mid_p) bf16 VMEM scratch -- CReLU(conv1) kept on-chip.

    A 3x3 tap (dy, dx) on the flattened layout is just a row offset dy*wp + dx,
    so each tap is one contiguous-slab load + one MXU matmul (no reshapes).
    """
    # ---- conv1 (3x3 circular) + CReLU -> h (stays in VMEM) ----
    acc = jnp.dot(x_ref[pl.ds(0, m1), :], w1_ref[0],
                  preferred_element_type=jnp.float32)
    for t in range(1, 9):
        dy, dx = divmod(t, 3)
        s = dy * wp + dx
        acc = acc + jnp.dot(x_ref[pl.ds(s, m1), :], w1_ref[t],
                            preferred_element_type=jnp.float32)
    h_ref[...] = jnp.maximum(acc, 0.0).astype(h_ref.dtype)

    # ---- conv2 (3x3 circular) + fused 1x1 shortcut + CReLU ----
    c = 2 * wp + 2  # centre of the window = original pixel positions
    acc2 = jnp.dot(x_ref[pl.ds(c, m2), :], ws_ref[...],
                   preferred_element_type=jnp.float32)
    for t in range(9):
        dy, dx = divmod(t, 3)
        s = dy * wp + dx
        acc2 = acc2 + jnp.dot(h_ref[pl.ds(s, m2), :], w2_ref[t],
                              preferred_element_type=jnp.float32)
    o_ref[...] = jnp.maximum(acc2, 0.0).astype(o_ref.dtype)


# ------------------------------- JAX glue ------------------------------------

def _complex_block(w):
    """complex (K, N) -> real block (2K, 2N): [[Wr, Wi], [-Wi, Wr]]."""
    wr = jnp.real(w).astype(jnp.float32)
    wi = jnp.imag(w).astype(jnp.float32)
    top = jnp.concatenate([wr, wi], axis=1)
    bot = jnp.concatenate([-wi, wr], axis=1)
    return jnp.concatenate([top, bot], axis=0)


def _pack_tap_weights(w, k_pad, n_pad):
    """complex (3,3,K,N) HWIO -> (9, k_pad, n_pad) bf16 per-tap real blocks."""
    K, Ncol = w.shape[2], w.shape[3]
    blocks = []
    for dy in range(3):
        for dx in range(3):
            b = _complex_block(w[dy, dx])
            b = jnp.pad(b, ((0, k_pad - 2 * K), (0, n_pad - 2 * Ncol)))
            blocks.append(b)
    return jnp.stack(blocks, axis=0).astype(jnp.bfloat16)


def _up2_axis(x, axis):
    """Bilinear x2 upsample along `axis` (PyTorch align_corners=False semantics)."""
    x = jnp.moveaxis(x, axis, 0)
    xl = jnp.concatenate([x[:1], x[:-1]], axis=0)
    xr = jnp.concatenate([x[1:], x[-1:]], axis=0)
    even = 0.25 * xl + 0.75 * x
    odd = 0.75 * x + 0.25 * xr
    y = jnp.stack([even, odd], axis=1).reshape((2 * x.shape[0],) + x.shape[1:])
    return jnp.moveaxis(y, 0, axis)


def bilinear_upsample2(x_nchw):
    return _up2_axis(_up2_axis(x_nchw, 2), 3)


def concat_skip(x1, x2):
    """torch.cat([x2, F.pad(x1, diff)], dim=1)"""
    if x2 is None:
        return x1
    dY = x2.shape[2] - x1.shape[2]
    dX = x2.shape[3] - x1.shape[3]
    if dY or dX:
        x1 = jnp.pad(x1, ((0, 0), (0, 0),
                          (dY // 2, dY - dY // 2),
                          (dX // 2, dX - dX // 2)))
    return jnp.concatenate([x2, x1], axis=1)


def double_conv(x, w1, w2, ws, tile_h=None):
    """x: (N, C, H, W) complex64; w1: (3,3,C,Cmid), w2: (3,3,Cmid,Cout), ws: (C,Cout)
    complex HWIO. Returns (N, Cout, H, W) complex64."""
    N, C, H, W = x.shape
    Cmid, Cout = w1.shape[-1], w2.shape[-1]
    c2in, c2mid, c2out = 2 * C, 2 * Cmid, 2 * Cout
    # pad channel dims to a multiple of 128 -> lane-dense loads/stores, full MXU lanes
    c2in_p = _round_up(c2in, 128)
    c2mid_p = _round_up(c2mid, 128)
    c2out_p = _round_up(c2out, 128)

    if tile_h is None:
        tile_h = _pick_tile_h(H, W, c2in_p)
    assert H % tile_h == 0, "tile_h must divide H"
    HT = H // tile_h
    Wp = W + 4
    M2 = tile_h * Wp                                 # output rows per tile
    M1 = _round_up((tile_h + 2) * Wp + 2, 8)         # h rows (covers conv2 over-read)
    Mxt = _round_up(max(2 * Wp + 2 + M1, (tile_h + 4) * Wp), 8)  # input rows per tile

    # complex NCHW -> packed [real|imag] NHWC, circular pad by 2, channel pad, bf16
    xr = jnp.real(x).astype(jnp.float32)
    xi = jnp.imag(x).astype(jnp.float32)
    xp = jnp.concatenate([xr, xi], axis=1)                       # (N, 2C, H, W)
    xp = jnp.transpose(xp, (0, 2, 3, 1))                         # (N, H, W, 2C)
    xp = jnp.pad(xp, ((0, 0), (2, 2), (2, 2), (0, 0)), mode='wrap')
    xp = jnp.pad(xp, ((0, 0), (0, 0), (0, 0), (0, c2in_p - c2in)))
    xp = xp.astype(jnp.bfloat16)                                 # (N, H+4, W+4, c2in_p)

    # overlapping row windows (halo = 4 rows), rows flattened; zero-pad trailing rows
    wins = jnp.stack([xp[:, t * tile_h: t * tile_h + tile_h + 4] for t in range(HT)],
                     axis=1)                                     # (N, HT, tile_h+4, Wp, c2in_p)
    wins = wins.reshape(N, HT, (tile_h + 4) * Wp, c2in_p)
    wins = jnp.pad(wins, ((0, 0), (0, 0), (0, Mxt - (tile_h + 4) * Wp), (0, 0)))

    w1p = _pack_tap_weights(w1, c2in_p, c2mid_p)                 # (9, c2in_p, c2mid_p)
    w2p = _pack_tap_weights(w2, c2mid_p, c2out_p)                # (9, c2mid_p, c2out_p)
    wsp = jnp.pad(_complex_block(ws),
                  ((0, c2in_p - c2in), (0, c2out_p - c2out))).astype(jnp.bfloat16)

    kernel = functools.partial(_double_conv_kernel, wp=Wp, m1=M1, m2=M2)

    flops = 2 * N * HT * (9 * M1 * c2in_p * c2mid_p
                          + 9 * M2 * c2mid_p * c2out_p
                          + M2 * c2in_p * c2out_p)
    bytes_accessed = (wins.size * 2 + w1p.size * 2 + w2p.size * 2 + wsp.size * 2
                      + N * HT * M2 * c2out_p * 4)

    out = pl.pallas_call(
        kernel,
        out_shape=jax.ShapeDtypeStruct((N, HT, M2, c2out_p), jnp.float32),
        grid=(N, HT),
        in_specs=[
            pl.BlockSpec((None, None, Mxt, c2in_p), lambda n, t: (n, t, 0, 0)),
            pl.BlockSpec((9, c2in_p, c2mid_p), lambda n, t: (0, 0, 0)),
            pl.BlockSpec((9, c2mid_p, c2out_p), lambda n, t: (0, 0, 0)),
            pl.BlockSpec((c2in_p, c2out_p), lambda n, t: (0, 0)),
        ],
        out_specs=pl.BlockSpec((None, None, M2, c2out_p), lambda n, t: (n, t, 0, 0)),
        scratch_shapes=[pltpu.VMEM((M1, c2mid_p), jnp.bfloat16)],
        compiler_params=pltpu.CompilerParams(
            dimension_semantics=("parallel", "parallel"),
            vmem_limit_bytes=48 * 1024 * 1024),
        cost_estimate=pl.CostEstimate(flops=flops, transcendentals=0,
                                      bytes_accessed=bytes_accessed),
    )(wins, w1p, w2p, wsp)

    # unpack: drop junk columns & channel padding, rebuild complex NCHW
    out = out.reshape(N, HT, tile_h, Wp, c2out_p)[:, :, :, :W, :c2out]
    out = out.reshape(N, H, W, c2out)
    y = (out[..., :Cout] + 1j * out[..., Cout:]).astype(jnp.complex64)
    return jnp.transpose(y, (0, 3, 1, 2))


def up_forward(x1, x2, w1, w2, ws, tile_h=None):
    """Up.forward: bilinear x2 upsample of x1, concat with skip x2, DoubleConv."""
    x1u = bilinear_upsample2(x1)
    x = concat_skip(x1u, x2)
    return double_conv(x, w1, w2, ws, tile_h=tile_h)
    # TODO(synk): c_nn BatchNorm/LayerNorm branches, Dropout2d(p>0) and the
    # ConvTranspose upsampling branch are not instantiated in this configuration.


# ------------------------------ NumPy reference ------------------------------

def _np_up2_axis(x, axis):
    x = np.moveaxis(x, axis, 0)
    xl = np.concatenate([x[:1], x[:-1]], axis=0)
    xr = np.concatenate([x[1:], x[-1:]], axis=0)
    even = 0.25 * xl + 0.75 * x
    odd = 0.75 * x + 0.25 * xr
    y = np.stack([even, odd], axis=1).reshape((2 * x.shape[0],) + x.shape[1:])
    return np.moveaxis(y, 0, axis)


def _np_conv3x3_circular(x, w):
    out = np.zeros(x.shape[:3] + (w.shape[-1],), dtype=np.complex64)
    for dy in range(3):
        for dx in range(3):
            shifted = np.roll(x, shift=(1 - dy, 1 - dx), axis=(1, 2))
            out += np.einsum('nhwc,co->nhwo', shifted, w[dy, dx])
    return out


def _np_crelu(z):
    return np.maximum(z.real, 0.0) + 1j * np.maximum(z.imag, 0.0)


def reference_up(x1, x2, w1, w2, ws):
    x1 = np.asarray(x1)
    x2 = np.asarray(x2)
    x1u = _np_up2_axis(_np_up2_axis(x1, 2), 3)
    x = np.concatenate([x2, x1u], axis=1)
    xh = np.transpose(x, (0, 2, 3, 1))
    h = _np_crelu(_np_conv3x3_circular(xh, np.asarray(w1)))
    y = _np_conv3x3_circular(h, np.asarray(w2)) \
        + np.einsum('nhwc,co->nhwo', xh, np.asarray(ws))
    y = _np_crelu(y)
    return np.transpose(y, (0, 3, 1, 2))


# --------------------------------- main ---------------------------------------

if __name__ == "__main__":
    key = jax.random.PRNGKey(0)
    ks = jax.random.split(key, 10)

    # Up(in_channels=4, out_channels=8, upsampling_factor=2, Upsample/bilinear)
    N, Cin1, Cskip, Cout = 2, 4, 8, 8        # x1 channels, skip channels (=Cout), out
    h_in, w_in, factor = 8, 8, 2
    Ccat = Cskip + Cin1                      # DoubleConv in_channels

    def crand(kr, ki, shape, scale=1.0):
        return (scale * jax.random.normal(kr, shape, jnp.float32)
                + 1j * scale * jax.random.normal(ki, shape, jnp.float32)
                ).astype(jnp.complex64)

    x1 = crand(ks[0], ks[1], (N, Cin1, h_in, w_in))                       # decoder input
    x2 = crand(ks[2], ks[3], (N, Cskip, h_in * factor, w_in * factor))    # skip tensor
    w1 = crand(ks[4], ks[5], (3, 3, Ccat, Cout), 1.0 / np.sqrt(2 * 9 * Ccat))
    w2 = crand(ks[6], ks[7], (3, 3, Cout, Cout), 1.0 / np.sqrt(2 * 9 * Cout))
    ws = crand(ks[8], ks[9], (Ccat, Cout), 1.0 / np.sqrt(2 * Ccat))

    # tile_h=8 -> 2 row tiles per image: exercises the (batch, row-tile) grid.
    fwd = jax.jit(functools.partial(up_forward, tile_h=8))
    out = jax.block_until_ready(fwd(x1, x2, w1, w2, ws))

    ref = reference_up(x1, x2, w1, w2, ws)
    # bf16 matmul inputs -> ~1% relative error budget
    np.testing.assert_allclose(np.asarray(out), ref, rtol=3e-2, atol=3e-2)

    assert out.shape == (N, Cout, h_in * factor, w_in * factor)
    assert out.dtype == jnp.complex64
    print("KERNEL_OK")
</pallas_src>

<mosaic_0001>
module attributes {stable_mosaic.version = 11 : i64} {
  func.func @_double_conv_kernel(%arg0: i32, %arg1: i32, %arg2: memref<1x1x256x128xbf16, #tpu.memory_space<vmem>>, %arg3: memref<9x128x128xbf16, #tpu.memory_space<vmem>>, %arg4: memref<9x128x128xbf16, #tpu.memory_space<vmem>>, %arg5: memref<128x128xbf16, #tpu.memory_space<vmem>>, %arg6: memref<1x1x160x128xf32, #tpu.memory_space<vmem>>, %arg7: memref<208x128xbf16, #tpu.memory_space<vmem>>) attributes {dimension_semantics = [#tpu.dimension_semantics<parallel>, #tpu.dimension_semantics<parallel>], iteration_bounds = array<i64: 2, 2>, scalar_prefetch = 0 : i64, scratch_operands = 1 : i64, tpu.core_type = #tpu.core_type<tc>, window_params = [{transform_indices = @transform_0, window_bounds = array<i64: 1, 1, 256, 128>}, {pipeline_mode = #tpu.pipeline_mode<synchronous>, transform_indices = @transform_1, window_bounds = array<i64: 9, 128, 128>}, {pipeline_mode = #tpu.pipeline_mode<synchronous>, transform_indices = @transform_2, window_bounds = array<i64: 9, 128, 128>}, {pipeline_mode = #tpu.pipeline_mode<synchronous>, transform_indices = @transform_3, window_bounds = array<i64: 128, 128>}, {transform_indices = @transform_4, window_bounds = array<i64: 1, 1, 160, 128>}]} {
    %c0 = arith.constant 0 : index
    %c0_0 = arith.constant 0 : index
    %c0_1 = arith.constant 0 : index
    %c0_2 = arith.constant 0 : index
    %0 = vector.load %arg2[%c0, %c0_0, %c0_1, %c0_2] : memref<1x1x256x128xbf16, #tpu.memory_space<vmem>>, vector<1x1x208x128xbf16>
    %1 = vector.shape_cast %0 : vector<1x1x208x128xbf16> to vector<208x128xbf16>
    %c0_3 = arith.constant 0 : index
    %c0_4 = arith.constant 0 : index
    %c0_5 = arith.constant 0 : index
    %2 = vector.load %arg3[%c0_3, %c0_4, %c0_5] : memref<9x128x128xbf16, #tpu.memory_space<vmem>>, vector<1x128x128xbf16>
    %3 = vector.shape_cast %2 : vector<1x128x128xbf16> to vector<128x128xbf16>
    %cst = arith.constant dense<0.000000e+00> : vector<208x128xf32>
    %4 = tpu.matmul %1, %3, %cst {dimension_numbers = #tpu.dot_dimension_numbers<[1], [0], [0], [1], [0, 0, 1, 1], [], []>} : vector<208x128xbf16>, vector<128x128xbf16>, vector<208x128xf32> -> vector<208x128xf32>
    %c0_6 = arith.constant 0 : index
    %c0_7 = arith.constant 0 : index
    %c1 = arith.constant 1 : index
    %c0_8 = arith.constant 0 : index
    %5 = vector.load %arg2[%c0_6, %c0_7, %c1, %c0_8] : memref<1x1x256x128xbf16, #tpu.memory_space<vmem>>, vector<1x1x208x128xbf16>
    %6 = vector.shape_cast %5 : vector<1x1x208x128xbf16> to vector<208x128xbf16>
    %c1_9 = arith.constant 1 : index
    %c0_10 = arith.constant 0 : index
    %c0_11 = arith.constant 0 : index
    %7 = vector.load %arg3[%c1_9, %c0_10, %c0_11] : memref<9x128x128xbf16, #tpu.memory_space<vmem>>, vector<1x128x128xbf16>
    %8 = vector.shape_cast %7 : vector<1x128x128xbf16> to vector<128x128xbf16>
    %cst_12 = arith.constant dense<0.000000e+00> : vector<208x128xf32>
    %9 = tpu.matmul %6, %8, %cst_12 {dimension_numbers = #tpu.dot_dimension_numbers<[1], [0], [0], [1], [0, 0, 1, 1], [], []>} : vector<208x128xbf16>, vector<128x128xbf16>, vector<208x128xf32> -> vector<208x128xf32>
    %10 = arith.addf %4, %9 : vector<208x128xf32>
    %c0_13 = arith.constant 0 : index
    %c0_14 = arith.constant 0 : index
    %c2 = arith.constant 2 : index
    %c0_15 = arith.constant 0 : index
    %11 = vector.load %arg2[%c0_13, %c0_14, %c2, %c0_15] : memref<1x1x256x128xbf16, #tpu.memory_space<vmem>>, vector<1x1x208x128xbf16>
    %12 = vector.shape_cast %11 : vector<1x1x208x128xbf16> to vector<208x128xbf16>
    %c2_16 = arith.constant 2 : index
    %c0_17 = arith.constant 0 : index
    %c0_18 = arith.constant 0 : index
    %13 = vector.load %arg3[%c2_16, %c0_17, %c0_18] : memref<9x128x128xbf16, #tpu.memory_space<vmem>>, vector<1x128x128xbf16>
    %14 = vector.shape_cast %13 : vector<1x128x128xbf16> to vector<128x128xbf16>
    %cst_19 = arith.constant dense<0.000000e+00> : vector<208x128xf32>
    %15 = tpu.matmul %12, %14, %cst_19 {dimension_numbers = #tpu.dot_dimension_numbers<[1], [0], [0], [1], [0, 0, 1, 1], [], []>} : vector<208x128xbf16>, vector<128x128xbf16>, vector<208x128xf32> -> vector<208x128xf32>
    %16 = arith.addf %10, %15 : vector<208x128xf32>
    %c0_20 = arith.constant 0 : index
    %c0_21 = arith.constant 0 : index
    %c20 = arith.constant 20 : index
    %c0_22 = arith.constant 0 : index
    %17 = vector.load %arg2[%c0_20, %c0_21, %c20, %c0_22] : memref<1x1x256x128xbf16, #tpu.memory_space<vmem>>, vector<1x1x208x128xbf16>
    %18 = vector.shape_cast %17 : vector<1x1x208x128xbf16> to vector<208x128xbf16>
    %c3 = arith.constant 3 : index
    %c0_23 = arith.constant 0 : index
    %c0_24 = arith.constant 0 : index
    %19 = vector.load %arg3[%c3, %c0_23, %c0_24] : memref<9x128x128xbf16, #tpu.memory_space<vmem>>, vector<1x128x128xbf16>
    %20 = vector.shape_cast %19 : vector<1x128x128xbf16> to vector<128x128xbf16>
    %cst_25 = arith.constant dense<0.000000e+00> : vector<208x128xf32>
    %21 = tpu.matmul %18, %20, %cst_25 {dimension_numbers = #tpu.dot_dimension_numbers<[1], [0], [0], [1], [0, 0, 1, 1], [], []>} : vector<208x128xbf16>, vector<128x128xbf16>, vector<208x128xf32> -> vector<208x128xf32>
    %22 = arith.addf %16, %21 : vector<208x128xf32>
    %c0_26 = arith.constant 0 : index
    %c0_27 = arith.constant 0 : index
    %c21 = arith.constant 21 : index
    %c0_28 = arith.constant 0 : index
    %23 = vector.load %arg2[%c0_26, %c0_27, %c21, %c0_28] : memref<1x1x256x128xbf16, #tpu.memory_space<vmem>>, vector<1x1x208x128xbf16>
    %24 = vector.shape_cast %23 : vector<1x1x208x128xbf16> to vector<208x128xbf16>
    %c4 = arith.constant 4 : index
    %c0_29 = arith.constant 0 : index
    %c0_30 = arith.constant 0 : index
    %25 = vector.load %arg3[%c4, %c0_29, %c0_30] : memref<9x128x128xbf16, #tpu.memory_space<vmem>>, vector<1x128x128xbf16>
    %26 = vector.shape_cast %25 : vector<1x128x128xbf16> to vector<128x128xbf16>
    %cst_31 = arith.constant dense<0.000000e+00> : vector<208x128xf32>
    %27 = tpu.matmul %24, %26, %cst_31 {dimension_numbers = #tpu.dot_dimension_numbers<[1], [0], [0], [1], [0, 0, 1, 1], [], []>} : vector<208x128xbf16>, vector<128x128xbf16>, vector<208x128xf32> -> vector<208x128xf32>
    %28 = arith.addf %22, %27 : vector<208x128xf32>
    %c0_32 = arith.constant 0 : index
    %c0_33 = arith.constant 0 : index
    %c22 = arith.constant 22 : index
    %c0_34 = arith.constant 0 : index
    %29 = vector.load %arg2[%c0_32, %c0_33, %c22, %c0_34] : memref<1x1x256x128xbf16, #tpu.memory_space<vmem>>, vector<1x1x208x128xbf16>
    %30 = vector.shape_cast %29 : vector<1x1x208x128xbf16> to vector<208x128xbf16>
    %c5 = arith.constant 5 : index
    %c0_35 = arith.constant 0 : index
    %c0_36 = arith.constant 0 : index
    %31 = vector.load %arg3[%c5, %c0_35, %c0_36] : memref<9x128x128xbf16, #tpu.memory_space<vmem>>, vector<1x128x128xbf16>
    %32 = vector.shape_cast %31 : vector<1x128x128xbf16> to vector<128x128xbf16>
    %cst_37 = arith.constant dense<0.000000e+00> : vector<208x128xf32>
    %33 = tpu.matmul %30, %32, %cst_37 {dimension_numbers = #tpu.dot_dimension_numbers<[1], [0], [0], [1], [0, 0, 1, 1], [], []>} : vector<208x128xbf16>, vector<128x128xbf16>, vector<208x128xf32> -> vector<208x128xf32>
    %34 = arith.addf %28, %33 : vector<208x128xf32>
    %c0_38 = arith.constant 0 : index
    %c0_39 = arith.constant 0 : index
    %c40 = arith.constant 40 : index
    %c0_40 = arith.constant 0 : index
    %35 = vector.load %arg2[%c0_38, %c0_39, %c40, %c0_40] : memref<1x1x256x128xbf16, #tpu.memory_space<vmem>>, vector<1x1x208x128xbf16>
    %36 = vector.shape_cast %35 : vector<1x1x208x128xbf16> to vector<208x128xbf16>
    %c6 = arith.constant 6 : index
    %c0_41 = arith.constant 0 : index
    %c0_42 = arith.constant 0 : index
    %37 = vector.load %arg3[%c6, %c0_41, %c0_42] : memref<9x128x128xbf16, #tpu.memory_space<vmem>>, vector<1x128x128xbf16>
    %38 = vector.shape_cast %37 : vector<1x128x128xbf16> to vector<128x128xbf16>
    %cst_43 = arith.constant dense<0.000000e+00> : vector<208x128xf32>
    %39 = tpu.matmul %36, %38, %cst_43 {dimension_numbers = #tpu.dot_dimension_numbers<[1], [0], [0], [1], [0, 0, 1, 1], [], []>} : vector<208x128xbf16>, vector<128x128xbf16>, vector<208x128xf32> -> vector<208x128xf32>
    %40 = arith.addf %34, %39 : vector<208x128xf32>
    %c0_44 = arith.constant 0 : index
    %c0_45 = arith.constant 0 : index
    %c41 = arith.constant 41 : index
    %c0_46 = arith.constant 0 : index
    %41 = vector.load %arg2[%c0_44, %c0_45, %c41, %c0_46] : memref<1x1x256x128xbf16, #tpu.memory_space<vmem>>, vector<1x1x208x128xbf16>
    %42 = vector.shape_cast %41 : vector<1x1x208x128xbf16> to vector<208x128xbf16>
    %c7 = arith.constant 7 : index
    %c0_47 = arith.constant 0 : index
    %c0_48 = arith.constant 0 : index
    %43 = vector.load %arg3[%c7, %c0_47, %c0_48] : memref<9x128x128xbf16, #tpu.memory_space<vmem>>, vector<1x128x128xbf16>
    %44 = vector.shape_cast %43 : vector<1x128x128xbf16> to vector<128x128xbf16>
    %cst_49 = arith.constant dense<0.000000e+00> : vector<208x128xf32>
    %45 = tpu.matmul %42, %44, %cst_49 {dimension_numbers = #tpu.dot_dimension_numbers<[1], [0], [0], [1], [0, 0, 1, 1], [], []>} : vector<208x128xbf16>, vector<128x128xbf16>, vector<208x128xf32> -> vector<208x128xf32>
    %46 = arith.addf %40, %45 : vector<208x128xf32>
    %c0_50 = arith.constant 0 : index
    %c0_51 = arith.constant 0 : index
    %c42 = arith.constant 42 : index
    %c0_52 = arith.constant 0 : index
    %47 = vector.load %arg2[%c0_50, %c0_51, %c42, %c0_52] : memref<1x1x256x128xbf16, #tpu.memory_space<vmem>>, vector<1x1x208x128xbf16>
    %48 = vector.shape_cast %47 : vector<1x1x208x128xbf16> to vector<208x128xbf16>
    %c8 = arith.constant 8 : index
    %c0_53 = arith.constant 0 : index
    %c0_54 = arith.constant 0 : index
    %49 = vector.load %arg3[%c8, %c0_53, %c0_54] : memref<9x128x128xbf16, #tpu.memory_space<vmem>>, vector<1x128x128xbf16>
    %50 = vector.shape_cast %49 : vector<1x128x128xbf16> to vector<128x128xbf16>
    %cst_55 = arith.constant dense<0.000000e+00> : vector<208x128xf32>
    %51 = tpu.matmul %48, %50, %cst_55 {dimension_numbers = #tpu.dot_dimension_numbers<[1], [0], [0], [1], [0, 0, 1, 1], [], []>} : vector<208x128xbf16>, vector<128x128xbf16>, vector<208x128xf32> -> vector<208x128xf32>
    %52 = arith.addf %46, %51 : vector<208x128xf32>
    %cst_56 = arith.constant 0.000000e+00 : f32
    %53 = vector.broadcast %cst_56 : f32 to vector<208x128xf32>
    %54 = arith.maximumf %52, %53 : vector<208x128xf32>
    %55 = arith.truncf %54 : vector<208x128xf32> to vector<208x128xbf16>
    %c0_57 = arith.constant 0 : index
    %c0_58 = arith.constant 0 : index
    %56 = vector.load %arg7[%c0_57, %c0_58] : memref<208x128xbf16, #tpu.memory_space<vmem>>, vector<208x128xbf16>
    tpu.vector_store %arg7[%c0_57, %c0_58], %55 {strides = array<i32>} : memref<208x128xbf16, #tpu.memory_space<vmem>>, vector<208x128xbf16>,
    %c0_59 = arith.constant 0 : index
    %c0_60 = arith.constant 0 : index
    %c42_61 = arith.constant 42 : index
    %c0_62 = arith.constant 0 : index
    %57 = vector.load %arg2[%c0_59, %c0_60, %c42_61, %c0_62] : memref<1x1x256x128xbf16, #tpu.memory_space<vmem>>, vector<1x1x160x128xbf16>
    %58 = vector.shape_cast %57 : vector<1x1x160x128xbf16> to vector<160x128xbf16>
    %c0_63 = arith.constant 0 : index
    %c0_64 = arith.constant 0 : index
    %59 = vector.load %arg5[%c0_63, %c0_64] : memref<128x128xbf16, #tpu.memory_space<vmem>>, vector<128x128xbf16>
    %cst_65 = arith.constant dense<0.000000e+00> : vector<160x128xf32>
    %60 = tpu.matmul %58, %59, %cst_65 {dimension_numbers = #tpu.dot_dimension_numbers<[1], [0], [0], [1], [0, 0, 1, 1], [], []>} : vector<160x128xbf16>, vector<128x128xbf16>, vector<160x128xf32> -> vector<160x128xf32>
    %c0_66 = arith.constant 0 : index
    %c0_67 = arith.constant 0 : index
    %61 = vector.load %arg7[%c0_66, %c0_67] : memref<208x128xbf16, #tpu.memory_space<vmem>>, vector<160x128xbf16>
    %c0_68 = arith.constant 0 : index
    %c0_69 = arith.constant 0 : index
    %c0_70 = arith.constant 0 : index
    %62 = vector.load %arg4[%c0_68, %c0_69, %c0_70] : memref<9x128x128xbf16, #tpu.memory_space<vmem>>, vector<1x128x128xbf16>
    %63 = vector.shape_cast %62 : vector<1x128x128xbf16> to vector<128x128xbf16>
    %cst_71 = arith.constant dense<0.000000e+00> : vector<160x128xf32>
    %64 = tpu.matmul %61, %63, %cst_71 {dimension_numbers = #tpu.dot_dimension_numbers<[1], [0], [0], [1], [0, 0, 1, 1], [], []>} : vector<160x128xbf16>, vector<128x128xbf16>, vector<160x128xf32> -> vector<160x128xf32>
    %65 = arith.addf %60, %64 : vector<160x128xf32>
    %c1_72 = arith.constant 1 : index
    %c0_73 = arith.constant 0 : index
    %66 = vector.load %arg7[%c1_72, %c0_73] : memref<208x128xbf16, #tpu.memory_space<vmem>>, vector<160x128xbf16>
    %c1_74 = arith.constant 1 : index
    %c0_75 = arith.constant 0 : index
    %c0_76 = arith.constant 0 : index
    %67 = vector.load %arg4[%c1_74, %c0_75, %c0_76] : memref<9x128x128xbf16, #tpu.memory_space<vmem>>, vector<1x128x128xbf16>
    %68 = vector.shape_cast %67 : vector<1x128x128xbf16> to vector<128x128xbf16>
    %cst_77 = arith.constant dense<0.000000e+00> : vector<160x128xf32>
    %69 = tpu.matmul %66, %68, %cst_77 {dimension_numbers = #tpu.dot_dimension_numbers<[1], [0], [0], [1], [0, 0, 1, 1], [], []>} : vector<160x128xbf16>, vector<128x128xbf16>, vector<160x128xf32> -> vector<160x128xf32>
    %70 = arith.addf %65, %69 : vector<160x128xf32>
    %c2_78 = arith.constant 2 : index
    %c0_79 = arith.constant 0 : index
    %71 = vector.load %arg7[%c2_78, %c0_79] : memref<208x128xbf16, #tpu.memory_space<vmem>>, vector<160x128xbf16>
    %c2_80 = arith.constant 2 : index
    %c0_81 = arith.constant 0 : index
    %c0_82 = arith.constant 0 : index
    %72 = vector.load %arg4[%c2_80, %c0_81, %c0_82] : memref<9x128x128xbf16, #tpu.memory_space<vmem>>, vector<1x128x128xbf16>
    %73 = vector.shape_cast %72 : vector<1x128x128xbf16> to vector<128x128xbf16>
    %cst_83 = arith.constant dense<0.000000e+00> : vector<160x128xf32>
    %74 = tpu.matmul %71, %73, %cst_83 {dimension_numbers = #tpu.dot_dimension_numbers<[1], [0], [0], [1], [0, 0, 1, 1], [], []>} : vector<160x128xbf16>, vector<128x128xbf16>, vector<160x128xf32> -> vector<160x128xf32>
    %75 = arith.addf %70, %74 : vector<160x128xf32>
    %c20_84 = arith.constant 20 : index
    %c0_85 = arith.constant 0 : index
    %76 = vector.load %arg7[%c20_84, %c0_85] : memref<208x128xbf16, #tpu.memory_space<vmem>>, vector<160x128xbf16>
    %c3_86 = arith.constant 3 : index
    %c0_87 = arith.constant 0 : index
    %c0_88 = arith.constant 0 : index
    %77 = vector.load %arg4[%c3_86, %c0_87, %c0_88] : memref<9x128x128xbf16, #tpu.memory_space<vmem>>, vector<1x128x128xbf16>
    %78 = vector.shape_cast %77 : vector<1x128x128xbf16> to vector<128x128xbf16>
    %cst_89 = arith.constant dense<0.000000e+00> : vector<160x128xf32>
    %79 = tpu.matmul %76, %78, %cst_89 {dimension_numbers = #tpu.dot_dimension_numbers<[1], [0], [0], [1], [0, 0, 1, 1], [], []>} : vector<160x128xbf16>, vector<128x128xbf16>, vector<160x128xf32> -> vector<160x128xf32>
    %80 = arith.addf %75, %79 : vector<160x128xf32>
    %c21_90 = arith.constant 21 : index
    %c0_91 = arith.constant 0 : index
    %81 = vector.load %arg7[%c21_90, %c0_91] : memref<208x128xbf16, #tpu.memory_space<vmem>>, vector<160x128xbf16>
    %c4_92 = arith.constant 4 : index
    %c0_93 = arith.constant 0 : index
    %c0_94 = arith.constant 0 : index
    %82 = vector.load %arg4[%c4_92, %c0_93, %c0_94] : memref<9x128x128xbf16, #tpu.memory_space<vmem>>, vector<1x128x128xbf16>
    %83 = vector.shape_cast %82 : vector<1x128x128xbf16> to vector<128x128xbf16>
    %cst_95 = arith.constant dense<0.000000e+00> : vector<160x128xf32>
    %84 = tpu.matmul %81, %83, %cst_95 {dimension_numbers = #tpu.dot_dimension_numbers<[1], [0], [0], [1], [0, 0, 1, 1], [], []>} : vector<160x128xbf16>, vector<128x128xbf16>, vector<160x128xf32> -> vector<160x128xf32>
    %85 = arith.addf %80, %84 : vector<160x128xf32>
    %c22_96 = arith.constant 22 : index
    %c0_97 = arith.constant 0 : index
    %86 = vector.load %arg7[%c22_96, %c0_97] : memref<208x128xbf16, #tpu.memory_space<vmem>>, vector<160x128xbf16>
    %c5_98 = arith.constant 5 : index
    %c0_99 = arith.constant 0 : index
    %c0_100 = arith.constant 0 : index
    %87 = vector.load %arg4[%c5_98, %c0_99, %c0_100] : memref<9x128x128xbf16, #tpu.memory_space<vmem>>, vector<1x128x128xbf16>
    %88 = vector.shape_cast %87 : vector<1x128x128xbf16> to vector<128x128xbf16>
    %cst_101 = arith.constant dense<0.000000e+00> : vector<160x128xf32>
    %89 = tpu.matmul %86, %88, %cst_101 {dimension_numbers = #tpu.dot_dimension_numbers<[1], [0], [0], [1], [0, 0, 1, 1], [], []>} : vector<160x128xbf16>, vector<128x128xbf16>, vector<160x128xf32> -> vector<160x128xf32>
    %90 = arith.addf %85, %89 : vector<160x128xf32>
    %c40_102 = arith.constant 40 : index
    %c0_103 = arith.constant 0 : index
    %91 = vector.load %arg7[%c40_102, %c0_103] : memref<208x128xbf16, #tpu.memory_space<vmem>>, vector<160x128xbf16>
    %c6_104 = arith.constant 6 : index
    %c0_105 = arith.constant 0 : index
    %c0_106 = arith.constant 0 : index
    %92 = vector.load %arg4[%c6_104, %c0_105, %c0_106] : memref<9x128x128xbf16, #tpu.memory_space<vmem>>, vector<1x128x128xbf16>
    %93 = vector.shape_cast %92 : vector<1x128x128xbf16> to vector<128x128xbf16>
    %cst_107 = arith.constant dense<0.000000e+00> : vector<160x128xf32>
    %94 = tpu.matmul %91, %93, %cst_107 {dimension_numbers = #tpu.dot_dimension_numbers<[1], [0], [0], [1], [0, 0, 1, 1], [], []>} : vector<160x128xbf16>, vector<128x128xbf16>, vector<160x128xf32> -> vector<160x128xf32>
    %95 = arith.addf %90, %94 : vector<160x128xf32>
    %c41_108 = arith.constant 41 : index
    %c0_109 = arith.constant 0 : index
    %96 = vector.load %arg7[%c41_108, %c0_109] : memref<208x128xbf16, #tpu.memory_space<vmem>>, vector<160x128xbf16>
    %c7_110 = arith.constant 7 : index
    %c0_111 = arith.constant 0 : index
    %c0_112 = arith.constant 0 : index
    %97 = vector.load %arg4[%c7_110, %c0_111, %c0_112] : memref<9x128x128xbf16, #tpu.memory_space<vmem>>, vector<1x128x128xbf16>
    %98 = vector.shape_cast %97 : vector<1x128x128xbf16> to vector<128x128xbf16>
    %cst_113 = arith.constant dense<0.000000e+00> : vector<160x128xf32>
    %99 = tpu.matmul %96, %98, %cst_113 {dimension_numbers = #tpu.dot_dimension_numbers<[1], [0], [0], [1], [0, 0, 1, 1], [], []>} : vector<160x128xbf16>, vector<128x128xbf16>, vector<160x128xf32> -> vector<160x128xf32>
    %100 = arith.addf %95, %99 : vector<160x128xf32>
    %c42_114 = arith.constant 42 : index
    %c0_115 = arith.constant 0 : index
    %101 = vector.load %arg7[%c42_114, %c0_115] : memref<208x128xbf16, #tpu.memory_space<vmem>>, vector<160x128xbf16>
    %c8_116 = arith.constant 8 : index
    %c0_117 = arith.constant 0 : index
    %c0_118 = arith.constant 0 : index
    %102 = vector.load %arg4[%c8_116, %c0_117, %c0_118] : memref<9x128x128xbf16, #tpu.memory_space<vmem>>, vector<1x128x128xbf16>
    %103 = vector.shape_cast %102 : vector<1x128x128xbf16> to vector<128x128xbf16>
    %cst_119 = arith.constant dense<0.000000e+00> : vector<160x128xf32>
    %104 = tpu.matmul %101, %103, %cst_119 {dimension_numbers = #tpu.dot_dimension_numbers<[1], [0], [0], [1], [0, 0, 1, 1], [], []>} : vector<160x128xbf16>, vector<128x128xbf16>, vector<160x128xf32> -> vector<160x128xf32>
    %105 = arith.addf %100, %104 : vector<160x128xf32>
    %cst_120 = arith.constant 0.000000e+00 : f32
    %106 = vector.broadcast %cst_120 : f32 to vector<160x128xf32>
    %107 = arith.maximumf %105, %106 : vector<160x128xf32>
    %c0_121 = arith.constant 0 : index
    %c0_122 = arith.constant 0 : index
    %c0_123 = arith.constant 0 : index
    %c0_124 = arith.constant 0 : index
    %108 = vector.load %arg6[%c0_121, %c0_122, %c0_123, %c0_124] : memref<1x1x160x128xf32, #tpu.memory_space<vmem>>, vector<1x1x160x128xf32>
    %109 = vector.shape_cast %108 : vector<1x1x160x128xf32> to vector<160x128xf32>
    %110 = vector.shape_cast %107 : vector<160x128xf32> to vector<1x1x160x128xf32>
    tpu.vector_store %arg6[%c0_121, %c0_122, %c0_123, %c0_124], %110 {strides = array<i32>} : memref<1x1x160x128xf32, #tpu.memory_space<vmem>>, vector<1x1x160x128xf32>,
    return
  }
  func.func @transform_0(%arg0: i32, %arg1: i32) -> (i32, i32, i32, i32) {
    %c0_i32 = arith.constant 0 : i32
    %c0_i32_0 = arith.constant 0 : i32
    %c0_i32_1 = arith.constant 0 : i32
    return %arg0, %arg1, %c0_i32, %c0_i32_0 : i32, i32, i32, i32
  }
  func.func @transform_1(%arg0: i32, %arg1: i32) -> (i32, i32, i32) {
    %c0_i32 = arith.constant 0 : i32
    %c0_i32_0 = arith.constant 0 : i32
    %c0_i32_1 = arith.constant 0 : i32
    %c0_i32_2 = arith.constant 0 : i32
    return %c0_i32, %c0_i32_0, %c0_i32_1 : i32, i32, i32
  }
  func.func @transform_2(%arg0: i32, %arg1: i32) -> (i32, i32, i32) {
    %c0_i32 = arith.constant 0 : i32
    %c0_i32_0 = arith.constant 0 : i32
    %c0_i32_1 = arith.constant 0 : i32
    %c0_i32_2 = arith.constant 0 : i32
    return %c0_i32, %c0_i32_0, %c0_i32_1 : i32, i32, i32
  }
  func.func @transform_3(%arg0: i32, %arg1: i32) -> (i32, i32) {
    %c0_i32 = arith.constant 0 : i32
    %c0_i32_0 = arith.constant 0 : i32
    %c0_i32_1 = arith.constant 0 : i32
    return %c0_i32, %c0_i32_0 : i32, i32
  }
  func.func @transform_4(%arg0: i32, %arg1: i32) -> (i32, i32, i32, i32) {
    %c0_i32 = arith.constant 0 : i32
    %c0_i32_0 = arith.constant 0 : i32
    %c0_i32_1 = arith.constant 0 : i32
    return %arg0, %arg1, %c0_i32, %c0_i32_0 : i32, i32, i32, i32
  }
}

</mosaic_0001>

<bundles_post_ra>
// kernel: custom-call.3
= control target key start
LH: loop header
LB: loop body
LE: loop exit
PB: predicated region body
PF: predicated region fallthrough
CT: control target
= control target key end

     0   :  { %s56_s0 = inlined_call_operand.hbm [shape: c64[2,4,8,8], index: 0, kind: input, shape index: {}]   ;;  %s57_s1 = inlined_call_operand.vmem [shape: f32[2,4,8,8], index: 1, kind: output, shape index: {}]  }
   0x1   :  { %s2_s8 = scalar_lea.hbm %s56_s0, 64 }
   0x2   :  { %3 = vsyncpa [#allocation0], 0  ;;  %s5_s9 = sshll.u32 %s2_s8, 4  ;;  %s7_s12 = sshll.u32 %s57_s1, 4  ;;  %s6_s9 = int_to_ptr.hbm [resolvable:$true] %s5_s9  ;;  %s8_s12 = int_to_ptr.vmem [resolvable:$true] %s7_s12 }
   0x3   :  { %10 = dma.hbm_to_vmem [thread:$0]  %s6_s9, 1024, %s8_s12, [#allocation0] }
   0x4   :  { %38 = dma.done.wait [#allocation0], 1024  }
   0x5   :  { %39 = vsyncadd [#allocation0], 4294966272 }
   0x6   :  { %13 = vsyncpa [#allocation0], 1 }

// kernel: custom-call.2
= control target key start
LH: loop header
LB: loop body
LE: loop exit
PB: predicated region body
PF: predicated region fallthrough
CT: control target
= control target key end

     0   :  { %2 = vsyncpa [#allocation0], 0  ;;  %s55_s0 = inlined_call_operand.hbm [shape: c64[2,4,8,8], index: 0, kind: input, shape index: {}]   ;;  %s56_s1 = inlined_call_operand.vmem [shape: f32[2,4,8,8], index: 1, kind: output, shape index: {}]  }
   0x1   :  { %s4_s8 = sshll.u32 %s55_s0, 4  ;;  %s6_s11 = sshll.u32 %s56_s1, 4  ;;  %s5_s8 = int_to_ptr.hbm [resolvable:$true] %s4_s8  ;;  %s7_s11 = int_to_ptr.vmem [resolvable:$true] %s6_s11 }
   0x2   :  { %9 = dma.hbm_to_vmem [thread:$0]  %s5_s8, 1024, %s7_s11, [#allocation0] }
   0x3   :  { %37 = dma.done.wait [#allocation0], 1024  }
   0x4   :  { %38 = vsyncadd [#allocation0], 4294966272 }
   0x5   :  { %12 = vsyncpa [#allocation0], 1 }

// kernel: custom-call
= control target key start
LH: loop header
LB: loop body
LE: loop exit
PB: predicated region body
PF: predicated region fallthrough
CT: control target
= control target key end

     0   :  { %2 = vsyncpa [#allocation0], 0  ;;  %s55_s0 = inlined_call_operand.hbm [shape: c64[2,8,16,16], index: 0, kind: input, shape index: {}]   ;;  %s56_s1 = inlined_call_operand.vmem [shape: f32[2,8,16,16], index: 1, kind: output, shape index: {}]  }
   0x1   :  { %s4_s8 = sshll.u32 %s55_s0, 4  ;;  %s6_s11 = sshll.u32 %s56_s1, 4  ;;  %s5_s8 = int_to_ptr.hbm [resolvable:$true] %s4_s8  ;;  %s7_s11 = int_to_ptr.vmem [resolvable:$true] %s6_s11 }
   0x2   :  { %9 = dma.hbm_to_vmem [thread:$0]  %s5_s8, 4096, %s7_s11, [#allocation0] }
   0x3   :  { %37 = dma.done.wait [#allocation0], 4096  }
   0x4   :  { %38 = vsyncadd [#allocation0], 4294963200 }
   0x5   :  { %12 = vsyncpa [#allocation0], 1 }

// kernel: custom-call.1
= control target key start
LH: loop header
LB: loop body
LE: loop exit
PB: predicated region body
PF: predicated region fallthrough
CT: control target
= control target key end

     0   :  { %s56_s0 = inlined_call_operand.hbm [shape: c64[2,8,16,16], index: 0, kind: input, shape index: {}]   ;;  %s57_s1 = inlined_call_operand.vmem [shape: f32[2,8,16,16], index: 1, kind: output, shape index: {}]  }
   0x1   :  { %s2_s8 = scalar_lea.hbm %s56_s0, 256 }
   0x2   :  { %3 = vsyncpa [#allocation0], 0  ;;  %s5_s9 = sshll.u32 %s2_s8, 4  ;;  %s7_s12 = sshll.u32 %s57_s1, 4  ;;  %s6_s9 = int_to_ptr.hbm [resolvable:$true] %s5_s9  ;;  %s8_s12 = int_to_ptr.vmem [resolvable:$true] %s7_s12 }
   0x3   :  { %10 = dma.hbm_to_vmem [thread:$0]  %s6_s9, 4096, %s8_s12, [#allocation0] }
   0x4   :  { %38 = dma.done.wait [#allocation0], 4096  }
   0x5   :  { %39 = vsyncadd [#allocation0], 4294963200 }
   0x6   :  { %13 = vsyncpa [#allocation0], 1 }

// kernel: custom-call.5
= control target key start
LH: loop header
LB: loop body
LE: loop exit
PB: predicated region body
PF: predicated region fallthrough
CT: control target
= control target key end

     0   :  { %s56_s0 = inlined_call_operand.hbm [shape: c64[3,3,12,8], index: 0, kind: input, shape index: {}]   ;;  %s57_s1 = inlined_call_operand.vmem [shape: f32[3,3,12,8], index: 1, kind: output, shape index: {}]  }
   0x1   :  { %s2_s8 = scalar_lea.hbm %s56_s0, 72 }
   0x2   :  { %3 = vsyncpa [#allocation0], 0  ;;  %s5_s9 = sshll.u32 %s2_s8, 4  ;;  %s7_s12 = sshll.u32 %s57_s1, 4  ;;  %s6_s9 = int_to_ptr.hbm [resolvable:$true] %s5_s9  ;;  %s8_s12 = int_to_ptr.vmem [resolvable:$true] %s7_s12 }
   0x3   :  { %10 = dma.hbm_to_vmem [thread:$0]  %s6_s9, 1152, %s8_s12, [#allocation0] }
   0x4   :  { %38 = dma.done.wait [#allocation0], 1152  }
   0x5   :  { %39 = vsyncadd [#allocation0], 4294966144 }
   0x6   :  { %13 = vsyncpa [#allocation0], 1 }

// kernel: custom-call.4
= control target key start
LH: loop header
LB: loop body
LE: loop exit
PB: predicated region body
PF: predicated region fallthrough
CT: control target
= control target key end

     0   :  { %2 = vsyncpa [#allocation0], 0  ;;  %s55_s0 = inlined_call_operand.hbm [shape: c64[3,3,12,8], index: 0, kind: input, shape index: {}]   ;;  %s56_s1 = inlined_call_operand.vmem [shape: f32[3,3,12,8], index: 1, kind: output, shape index: {}]  }
   0x1   :  { %s4_s8 = sshll.u32 %s55_s0, 4  ;;  %s6_s11 = sshll.u32 %s56_s1, 4  ;;  %s5_s8 = int_to_ptr.hbm [resolvable:$true] %s4_s8  ;;  %s7_s11 = int_to_ptr.vmem [resolvable:$true] %s6_s11 }
   0x2   :  { %9 = dma.hbm_to_vmem [thread:$0]  %s5_s8, 1152, %s7_s11, [#allocation0] }
   0x3   :  { %37 = dma.done.wait [#allocation0], 1152  }
   0x4   :  { %38 = vsyncadd [#allocation0], 4294966144 }
   0x5   :  { %12 = vsyncpa [#allocation0], 1 }

// kernel: custom-call.7
= control target key start
LH: loop header
LB: loop body
LE: loop exit
PB: predicated region body
PF: predicated region fallthrough
CT: control target
= control target key end

     0   :  { %s56_s0 = inlined_call_operand.hbm [shape: c64[3,3,8,8], index: 0, kind: input, shape index: {}]   ;;  %s57_s1 = inlined_call_operand.vmem [shape: f32[3,3,8,8], index: 1, kind: output, shape index: {}]  }
   0x1   :  { %s2_s8 = scalar_lea.hbm %s56_s0, 72 }
   0x2   :  { %3 = vsyncpa [#allocation0], 0  ;;  %s5_s9 = sshll.u32 %s2_s8, 4  ;;  %s7_s12 = sshll.u32 %s57_s1, 4  ;;  %s6_s9 = int_to_ptr.hbm [resolvable:$true] %s5_s9  ;;  %s8_s12 = int_to_ptr.vmem [resolvable:$true] %s7_s12 }
   0x3   :  { %10 = dma.hbm_to_vmem [thread:$0]  %s6_s9, 1152, %s8_s12, [#allocation0] }
   0x4   :  { %38 = dma.done.wait [#allocation0], 1152  }
   0x5   :  { %39 = vsyncadd [#allocation0], 4294966144 }
   0x6   :  { %13 = vsyncpa [#allocation0], 1 }

// kernel: custom-call.6
= control target key start
LH: loop header
LB: loop body
LE: loop exit
PB: predicated region body
PF: predicated region fallthrough
CT: control target
= control target key end

     0   :  { %2 = vsyncpa [#allocation0], 0  ;;  %s55_s0 = inlined_call_operand.hbm [shape: c64[3,3,8,8], index: 0, kind: input, shape index: {}]   ;;  %s56_s1 = inlined_call_operand.vmem [shape: f32[3,3,8,8], index: 1, kind: output, shape index: {}]  }
   0x1   :  { %s4_s8 = sshll.u32 %s55_s0, 4  ;;  %s6_s11 = sshll.u32 %s56_s1, 4  ;;  %s5_s8 = int_to_ptr.hbm [resolvable:$true] %s4_s8  ;;  %s7_s11 = int_to_ptr.vmem [resolvable:$true] %s6_s11 }
   0x2   :  { %9 = dma.hbm_to_vmem [thread:$0]  %s5_s8, 1152, %s7_s11, [#allocation0] }
   0x3   :  { %37 = dma.done.wait [#allocation0], 1152  }
   0x4   :  { %38 = vsyncadd [#allocation0], 4294966144 }
   0x5   :  { %12 = vsyncpa [#allocation0], 1 }

// kernel: custom-call.9
= control target key start
LH: loop header
LB: loop body
LE: loop exit
PB: predicated region body
PF: predicated region fallthrough
CT: control target
= control target key end

     0   :  { %s35_s0 = inlined_call_operand.vmem [shape: c64[12,8], index: 0, kind: input, shape index: {}]   ;;  %s36_s1 = inlined_call_operand.vmem [shape: f32[12,8], index: 1, kind: output, shape index: {}]  }
   0x1   :  { %v10_v0 = vld [vmem:[%s35_s0 + $0x10] sm:$0xff]  ;;  %v11_v1 = vld [vmem:[%s35_s0 + $0x18] sm:$0xff] }
   0x2   :  { %4 = vst [vmem:[%s36_s1] sm:$0xff] %v10_v0 }
   0x3   :  { %12 = vst [vmem:[%s36_s1 + $0x8] sm:$0xff] %v11_v1 }

// kernel: custom-call.8
= control target key start
LH: loop header
LB: loop body
LE: loop exit
PB: predicated region body
PF: predicated region fallthrough
CT: control target
= control target key end

     0   :  { %s32_s0 = inlined_call_operand.vmem [shape: c64[12,8], index: 0, kind: input, shape index: {}]   ;;  %s33_s1 = inlined_call_operand.vmem [shape: f32[12,8], index: 1, kind: output, shape index: {}]  }
   0x1   :  { %v2_v0 = vld [vmem:[%s32_s0] sm:$0xff]  ;;  %v8_v1 = vld [vmem:[%s32_s0 + $0x8] sm:$0xff] }
   0x2   :  { %3 = vst [vmem:[%s33_s1] sm:$0xff] %v2_v0 }
   0x3   :  { %9 = vst [vmem:[%s33_s1 + $0x8] sm:$0xff] %v8_v1 }

// kernel: custom-call.10
= control target key start
LH: loop header
LB: loop body
LE: loop exit
PB: predicated region body
PF: predicated region fallthrough
CT: control target
= control target key end

     0   :  { %s1611_s0 = inlined_call_operand.vmem [shape: f32[2,8,16,16], index: 0, kind: input, shape index: {}]   ;;  %s1612_s2 = inlined_call_operand.vmem [shape: c64[2,8,16,16], index: 2, kind: output, shape index: {}]   ;;  %s1613_s1 = inlined_call_operand.vmem [shape: f32[2,8,16,16], index: 1, kind: input, shape index: {}]  }
   0x1   :  { %v4_v0 = vld [vmem:[%s1611_s0] sm:$0xff]  ;;  %v575_v1 = vld [vmem:[%s1611_s0 + $0x8] sm:$0xff]  ;;  %v577_v2 = vld [vmem:[%s1611_s0 + $0x10] sm:$0xff] }
   0x2   :  { %5 = vst [vmem:[%s1612_s2] sm:$0xff] %v4_v0  ;;  %v579_v3 = vld [vmem:[%s1611_s0 + $0x18] sm:$0xff]  ;;  %v581_v4 = vld [vmem:[%s1611_s0 + $0x20] sm:$0xff]  ;;  %v583_v5 = vld [vmem:[%s1611_s0 + $0x28] sm:$0xff] }
   0x3   :  { %576 = vst [vmem:[%s1612_s2 + $0x8] sm:$0xff] %v575_v1  ;;  %v585_v6 = vld [vmem:[%s1611_s0 + $0x30] sm:$0xff]  ;;  %v587_v7 = vld [vmem:[%s1611_s0 + $0x38] sm:$0xff]  ;;  %v589_v8 = vld [vmem:[%s1611_s0 + $0x40] sm:$0xff] }
   0x4   :  { %578 = vst [vmem:[%s1612_s2 + $0x10] sm:$0xff] %v577_v2  ;;  %v591_v9 = vld [vmem:[%s1611_s0 + $0x48] sm:$0xff]  ;;  %v593_v10 = vld [vmem:[%s1611_s0 + $0x50] sm:$0xff]  ;;  %v595_v11 = vld [vmem:[%s1611_s0 + $0x58] sm:$0xff] }
   0x5   :  { %580 = vst [vmem:[%s1612_s2 + $0x18] sm:$0xff] %v579_v3  ;;  %v597_v12 = vld [vmem:[%s1611_s0 + $0x60] sm:$0xff]  ;;  %v599_v13 = vld [vmem:[%s1611_s0 + $0x68] sm:$0xff]  ;;  %v601_v14 = vld [vmem:[%s1611_s0 + $0x70] sm:$0xff] }
   0x6   :  { %582 = vst [vmem:[%s1612_s2 + $0x20] sm:$0xff] %v581_v4  ;;  %v603_v15 = vld [vmem:[%s1611_s0 + $0x78] sm:$0xff]  ;;  %v605_v16 = vld [vmem:[%s1611_s0 + $0x80] sm:$0xff]  ;;  %v607_v17 = vld [vmem:[%s1611_s0 + $0x88] sm:$0xff] }
   0x7   :  { %584 = vst [vmem:[%s1612_s2 + $0x28] sm:$0xff] %v583_v5  ;;  %v609_v18 = vld [vmem:[%s1611_s0 + $0x90] sm:$0xff]  ;;  %v611_v19 = vld [vmem:[%s1611_s0 + $0x98] sm:$0xff]  ;;  %v613_v20 = vld [vmem:[%s1611_s0 + $0xa0] sm:$0xff] }
   0x8   :  { %586 = vst [vmem:[%s1612_s2 + $0x30] sm:$0xff] %v585_v6  ;;  %v615_v21 = vld [vmem:[%s1611_s0 + $0xa8] sm:$0xff]  ;;  %v617_v22 = vld [vmem:[%s1611_s0 + $0xb0] sm:$0xff]  ;;  %v619_v23 = vld [vmem:[%s1611_s0 + $0xb8] sm:$0xff] }
   0x9   :  { %588 = vst [vmem:[%s1612_s2 + $0x38] sm:$0xff] %v587_v7  ;;  %v621_v24 = vld [vmem:[%s1611_s0 + $0xc0] sm:$0xff]  ;;  %v623_v25 = vld [vmem:[%s1611_s0 + $0xc8] sm:$0xff]  ;;  %v625_v26 = vld [vmem:[%s1611_s0 + $0xd0] sm:$0xff] }
   0xa   :  { %590 = vst [vmem:[%s1612_s2 + $0x40] sm:$0xff] %v589_v8  ;;  %v627_v27 = vld [vmem:[%s1611_s0 + $0xd8] sm:$0xff]  ;;  %v629_v28 = vld [vmem:[%s1611_s0 + $0xe0] sm:$0xff]  ;;  %v631_v29 = vld [vmem:[%s1611_s0 + $0xe8] sm:$0xff] }
   0xb   :  { %592 = vst [vmem:[%s1612_s2 + $0x48] sm:$0xff] %v591_v9  ;;  %v633_v30 = vld [vmem:[%s1611_s0 + $0xf0] sm:$0xff]  ;;  %v635_v31 = vld [vmem:[%s1611_s0 + $0xf8] sm:$0xff]  ;;  %v637_v32 = vld [vmem:[%s1611_s0 + $0x100] sm:$0xff] }
   0xc   :  { %594 = vst [vmem:[%s1612_s2 + $0x50] sm:$0xff] %v593_v10  ;;  %v639_v33 = vld [vmem:[%s1611_s0 + $0x108] sm:$0xff]  ;;  %v641_v34 = vld [vmem:[%s1611_s0 + $0x110] sm:$0xff]  ;;  %v643_v35 = vld [vmem:[%s1611_s0 + $0x118] sm:$0xff] }
   0xd   :  { %596 = vst [vmem:[%s1612_s2 + $0x58] sm:$0xff] %v595_v11  ;;  %v645_v36 = vld [vmem:[%s1611_s0 + $0x120] sm:$0xff]  ;;  %v647_v37 = vld [vmem:[%s1611_s0 + $0x128] sm:$0xff]  ;;  %v649_v38 = vld [vmem:[%s1611_s0 + $0x130] sm:$0xff] }
   0xe   :  { %598 = vst [vmem:[%s1612_s2 + $0x60] sm:$0xff] %v597_v12  ;;  %v651_v39 = vld [vmem:[%s1611_s0 + $0x138] sm:$0xff]  ;;  %v653_v40 = vld [vmem:[%s1611_s0 + $0x140] sm:$0xff]  ;;  %v655_v41 = vld [vmem:[%s1611_s0 + $0x148] sm:$0xff] }
   0xf   :  { %600 = vst [vmem:[%s1612_s2 + $0x68] sm:$0xff] %v599_v13  ;;  %v657_v42 = vld [vmem:[%s1611_s0 + $0x150] sm:$0xff]  ;;  %v659_v43 = vld [vmem:[%s1611_s0 + $0x158] sm:$0xff]  ;;  %v661_v44 = vld [vmem:[%s1611_s0 + $0x160] sm:$0xff] }
  0x10   :  { %602 = vst [vmem:[%s1612_s2 + $0x70] sm:$0xff] %v601_v14  ;;  %v663_v45 = vld [vmem:[%s1611_s0 + $0x168] sm:$0xff]  ;;  %v665_v46 = vld [vmem:[%s1611_s0 + $0x170] sm:$0xff]  ;;  %v667_v47 = vld [vmem:[%s1611_s0 + $0x178] sm:$0xff] }
  0x11   :  { %604 = vst [vmem:[%s1612_s2 + $0x78] sm:$0xff] %v603_v15  ;;  %v669_v48 = vld [vmem:[%s1611_s0 + $0x180] sm:$0xff]  ;;  %v671_v49 = vld [vmem:[%s1611_s0 + $0x188] sm:$0xff]  ;;  %v673_v50 = vld [vmem:[%s1611_s0 + $0x190] sm:$0xff] }
  0x12   :  { %606 = vst [vmem:[%s1612_s2 + $0x80] sm:$0xff] %v605_v16  ;;  %v675_v51 = vld [vmem:[%s1611_s0 + $0x198] sm:$0xff]  ;;  %v677_v52 = vld [vmem:[%s1611_s0 + $0x1a0] sm:$0xff]  ;;  %v679_v53 = vld [vmem:[%s1611_s0 + $0x1a8] sm:$0xff] }
  0x13   :  { %608 = vst [vmem:[%s1612_s2 + $0x88] sm:$0xff] %v607_v17  ;;  %v681_v54 = vld [vmem:[%s1611_s0 + $0x1b0] sm:$0xff]  ;;  %v683_v55 = vld [vmem:[%s1611_s0 + $0x1b8] sm:$0xff]  ;;  %v685_v56 = vld [vmem:[%s1611_s0 + $0x1c0] sm:$0xff] }
  0x14   :  { %610 = vst [vmem:[%s1612_s2 + $0x90] sm:$0xff] %v609_v18  ;;  %v687_v57 = vld [vmem:[%s1611_s0 + $0x1c8] sm:$0xff]  ;;  %v689_v58 = vld [vmem:[%s1611_s0 + $0x1d0] sm:$0xff]  ;;  %v691_v59 = vld [vmem:[%s1611_s0 + $0x1d8] sm:$0xff] }
  0x15   :  { %612 = vst [vmem:[%s1612_s2 + $0x98] sm:$0xff] %v611_v19  ;;  %v693_v60 = vld [vmem:[%s1611_s0 + $0x1e0] sm:$0xff]  ;;  %v695_v61 = vld [vmem:[%s1611_s0 + $0x1e8] sm:$0xff]  ;;  %v697_v62 = vld [vmem:[%s1611_s0 + $0x1f0] sm:$0xff] }
  0x16   :  { %614 = vst [vmem:[%s1612_s2 + $0xa0] sm:$0xff] %v613_v20  ;;  %v699_v63 = vld [vmem:[%s1611_s0 + $0x1f8] sm:$0xff]  ;;  %v258_v0 = vld [vmem:[%s1613_s1] sm:$0xff]  ;;  %v702_v1 = vld [vmem:[%s1613_s1 + $0x8] sm:$0xff] }
  0x17   :  { %616 = vst [vmem:[%s1612_s2 + $0xa8] sm:$0xff] %v615_v21  ;;  %v704_v2 = vld [vmem:[%s1613_s1 + $0x10] sm:$0xff]  ;;  %v706_v3 = vld [vmem:[%s1613_s1 + $0x18] sm:$0xff]  ;;  %v708_v4 = vld [vmem:[%s1613_s1 + $0x20] sm:$0xff] }
  0x18   :  { %618 = vst [vmem:[%s1612_s2 + $0xb0] sm:$0xff] %v617_v22  ;;  %v710_v5 = vld [vmem:[%s1613_s1 + $0x28] sm:$0xff]  ;;  %v712_v6 = vld [vmem:[%s1613_s1 + $0x30] sm:$0xff]  ;;  %v714_v7 = vld [vmem:[%s1613_s1 + $0x38] sm:$0xff] }
  0x19   :  { %620 = vst [vmem:[%s1612_s2 + $0xb8] sm:$0xff] %v619_v23  ;;  %v716_v8 = vld [vmem:[%s1613_s1 + $0x40] sm:$0xff]  ;;  %v718_v9 = vld [vmem:[%s1613_s1 + $0x48] sm:$0xff]  ;;  %v720_v10 = vld [vmem:[%s1613_s1 + $0x50] sm:$0xff] }
  0x1a   :  { %622 = vst [vmem:[%s1612_s2 + $0xc0] sm:$0xff] %v621_v24  ;;  %v722_v11 = vld [vmem:[%s1613_s1 + $0x58] sm:$0xff]  ;;  %v724_v12 = vld [vmem:[%s1613_s1 + $0x60] sm:$0xff]  ;;  %v726_v13 = vld [vmem:[%s1613_s1 + $0x68] sm:$0xff] }
  0x1b   :  { %624 = vst [vmem:[%s1612_s2 + $0xc8] sm:$0xff] %v623_v25  ;;  %v728_v14 = vld [vmem:[%s1613_s1 + $0x70] sm:$0xff]  ;;  %v730_v15 = vld [vmem:[%s1613_s1 + $0x78] sm:$0xff]  ;;  %v732_v16 = vld [vmem:[%s1613_s1 + $0x80] sm:$0xff] }
  0x1c   :  { %626 = vst [vmem:[%s1612_s2 + $0xd0] sm:$0xff] %v625_v26  ;;  %v734_v17 = vld [vmem:[%s1613_s1 + $0x88] sm:$0xff]  ;;  %v736_v18 = vld [vmem:[%s1613_s1 + $0x90] sm:$0xff]  ;;  %v738_v19 = vld [vmem:[%s1613_s1 + $0x98] sm:$0xff] }
  0x1d   :  { %628 = vst [vmem:[%s1612_s2 + $0xd8] sm:$0xff] %v627_v27  ;;  %v740_v20 = vld [vmem:[%s1613_s1 + $0xa0] sm:$0xff]  ;;  %v742_v21 = vld [vmem:[%s1613_s1 + $0xa8] sm:$0xff]  ;;  %v744_v22 = vld [vmem:[%s1613_s1 + $0xb0] sm:$0xff] }
  0x1e   :  { %630 = vst [vmem:[%s1612_s2 + $0xe0] sm:$0xff] %v629_v28  ;;  %v746_v23 = vld [vmem:[%s1613_s1 + $0xb8] sm:$0xff]  ;;  %v748_v24 = vld [vmem:[%s1613_s1 + $0xc0] sm:$0xff]  ;;  %v750_v25 = vld [vmem:[%s1613_s1 + $0xc8] sm:$0xff] }
  0x1f   :  { %632 = vst [vmem:[%s1612_s2 + $0xe8] sm:$0xff] %v631_v29  ;;  %v752_v26 = vld [vmem:[%s1613_s1 + $0xd0] sm:$0xff]  ;;  %v754_v27 = vld [vmem:[%s1613_s1 + $0xd8] sm:$0xff]  ;;  %v756_v28 = vld [vmem:[%s1613_s1 + $0xe0] sm:$0xff] }
  0x20   :  { %634 = vst [vmem:[%s1612_s2 + $0xf0] sm:$0xff] %v633_v30  ;;  %v758_v29 = vld [vmem:[%s1613_s1 + $0xe8] sm:$0xff]  ;;  %v760_v30 = vld [vmem:[%s1613_s1 + $0xf0] sm:$0xff] }
  0x21   :  { %636 = vst [vmem:[%s1612_s2 + $0xf8] sm:$0xff] %v635_v31  ;;  %v762_v31 = vld [vmem:[%s1613_s1 + $0xf8] sm:$0xff] }
  0x22   :  { %638 = vst [vmem:[%s1612_s2 + $0x100] sm:$0xff] %v637_v32  ;;  %v764_v32 = vld [vmem:[%s1613_s1 + $0x100] sm:$0xff] }
  0x23   :  { %640 = vst [vmem:[%s1612_s2 + $0x108] sm:$0xff] %v639_v33  ;;  %v766_v33 = vld [vmem:[%s1613_s1 + $0x108] sm:$0xff] }
  0x24   :  { %642 = vst [vmem:[%s1612_s2 + $0x110] sm:$0xff] %v641_v34  ;;  %v768_v34 = vld [vmem:[%s1613_s1 + $0x110] sm:$0xff] }
  0x25   :  { %644 = vst [vmem:[%s1612_s2 + $0x118] sm:$0xff] %v643_v35  ;;  %v770_v35 = vld [vmem:[%s1613_s1 + $0x118] sm:$0xff] }
  0x26   :  { %646 = vst [vmem:[%s1612_s2 + $0x120] sm:$0xff] %v645_v36  ;;  %v772_v36 = vld [vmem:[%s1613_s1 + $0x120] sm:$0xff] }
  0x27   :  { %648 = vst [vmem:[%s1612_s2 + $0x128] sm:$0xff] %v647_v37  ;;  %v774_v37 = vld [vmem:[%s1613_s1 + $0x128] sm:$0xff] }
  0x28   :  { %650 = vst [vmem:[%s1612_s2 + $0x130] sm:$0xff] %v649_v38  ;;  %v776_v38 = vld [vmem:[%s1613_s1 + $0x130] sm:$0xff] }
  0x29   :  { %652 = vst [vmem:[%s1612_s2 + $0x138] sm:$0xff] %v651_v39  ;;  %v778_v39 = vld [vmem:[%s1613_s1 + $0x138] sm:$0xff] }
  0x2a   :  { %654 = vst [vmem:[%s1612_s2 + $0x140] sm:$0xff] %v653_v40  ;;  %v780_v40 = vld [vmem:[%s1613_s1 + $0x140] sm:$0xff] }
  0x2b   :  { %656 = vst [vmem:[%s1612_s2 + $0x148] sm:$0xff] %v655_v41  ;;  %v782_v41 = vld [vmem:[%s1613_s1 + $0x148] sm:$0xff] }
  0x2c   :  { %658 = vst [vmem:[%s1612_s2 + $0x150] sm:$0xff] %v657_v42  ;;  %v784_v42 = vld [vmem:[%s1613_s1 + $0x150] sm:$0xff] }
  0x2d   :  { %660 = vst [vmem:[%s1612_s2 + $0x158] sm:$0xff] %v659_v43  ;;  %v786_v43 = vld [vmem:[%s1613_s1 + $0x158] sm:$0xff] }
  0x2e   :  { %662 = vst [vmem:[%s1612_s2 + $0x160] sm:$0xff] %v661_v44  ;;  %v788_v44 = vld [vmem:[%s1613_s1 + $0x160] sm:$0xff] }
  0x2f   :  { %664 = vst [vmem:[%s1612_s2 + $0x168] sm:$0xff] %v663_v45  ;;  %v790_v45 = vld [vmem:[%s1613_s1 + $0x168] sm:$0xff] }
  0x30   :  { %666 = vst [vmem:[%s1612_s2 + $0x170] sm:$0xff] %v665_v46  ;;  %v792_v46 = vld [vmem:[%s1613_s1 + $0x170] sm:$0xff] }
  0x31   :  { %668 = vst [vmem:[%s1612_s2 + $0x178] sm:$0xff] %v667_v47  ;;  %v794_v47 = vld [vmem:[%s1613_s1 + $0x178] sm:$0xff] }
  0x32   :  { %670 = vst [vmem:[%s1612_s2 + $0x180] sm:$0xff] %v669_v48  ;;  %v796_v48 = vld [vmem:[%s1613_s1 + $0x180] sm:$0xff] }
  0x33   :  { %672 = vst [vmem:[%s1612_s2 + $0x188] sm:$0xff] %v671_v49  ;;  %v798_v49 = vld [vmem:[%s1613_s1 + $0x188] sm:$0xff] }
  0x34   :  { %674 = vst [vmem:[%s1612_s2 + $0x190] sm:$0xff] %v673_v50  ;;  %v800_v50 = vld [vmem:[%s1613_s1 + $0x190] sm:$0xff] }
  0x35   :  { %676 = vst [vmem:[%s1612_s2 + $0x198] sm:$0xff] %v675_v51  ;;  %v802_v51 = vld [vmem:[%s1613_s1 + $0x198] sm:$0xff] }
  0x36   :  { %678 = vst [vmem:[%s1612_s2 + $0x1a0] sm:$0xff] %v677_v52  ;;  %v804_v52 = vld [vmem:[%s1613_s1 + $0x1a0] sm:$0xff] }
  0x37   :  { %680 = vst [vmem:[%s1612_s2 + $0x1a8] sm:$0xff] %v679_v53  ;;  %v806_v53 = vld [vmem:[%s1613_s1 + $0x1a8] sm:$0xff] }
  0x38   :  { %682 = vst [vmem:[%s1612_s2 + $0x1b0] sm:$0xff] %v681_v54  ;;  %v808_v54 = vld [vmem:[%s1613_s1 + $0x1b0] sm:$0xff] }
  0x39   :  { %684 = vst [vmem:[%s1612_s2 + $0x1b8] sm:$0xff] %v683_v55  ;;  %v810_v55 = vld [vmem:[%s1613_s1 + $0x1b8] sm:$0xff] }
  0x3a   :  { %686 = vst [vmem:[%s1612_s2 + $0x1c0] sm:$0xff] %v685_v56  ;;  %v812_v56 = vld [vmem:[%s1613_s1 + $0x1c0] sm:$0xff] }
  0x3b   :  { %688 = vst [vmem:[%s1612_s2 + $0x1c8] sm:$0xff] %v687_v57  ;;  %v814_v57 = vld [vmem:[%s1613_s1 + $0x1c8] sm:$0xff] }
  0x3c   :  { %690 = vst [vmem:[%s1612_s2 + $0x1d0] sm:$0xff] %v689_v58  ;;  %v816_v58 = vld [vmem:[%s1613_s1 + $0x1d0] sm:$0xff] }
  0x3d   :  { %692 = vst [vmem:[%s1612_s2 + $0x1d8] sm:$0xff] %v691_v59  ;;  %v818_v59 = vld [vmem:[%s1613_s1 + $0x1d8] sm:$0xff] }
  0x3e   :  { %694 = vst [vmem:[%s1612_s2 + $0x1e0] sm:$0xff] %v693_v60  ;;  %v820_v60 = vld [vmem:[%s1613_s1 + $0x1e0] sm:$0xff] }
  0x3f   :  { %696 = vst [vmem:[%s1612_s2 + $0x1e8] sm:$0xff] %v695_v61  ;;  %v822_v61 = vld [vmem:[%s1613_s1 + $0x1e8] sm:$0xff] }
  0x40   :  { %698 = vst [vmem:[%s1612_s2 + $0x1f0] sm:$0xff] %v697_v62  ;;  %v824_v62 = vld [vmem:[%s1613_s1 + $0x1f0] sm:$0xff] }
  0x41   :  { %700 = vst [vmem:[%s1612_s2 + $0x1f8] sm:$0xff] %v699_v63  ;;  %v826_v63 = vld [vmem:[%s1613_s1 + $0x1f8] sm:$0xff] }
  0x42   :  { %701 = vst [vmem:[%s1612_s2 + $0x200] sm:$0xff] %v258_v0 }
  0x43   :  { %703 = vst [vmem:[%s1612_s2 + $0x208] sm:$0xff] %v702_v1 }
  0x44   :  { %705 = vst [vmem:[%s1612_s2 + $0x210] sm:$0xff] %v704_v2 }
  0x45   :  { %707 = vst [vmem:[%s1612_s2 + $0x218] sm:$0xff] %v706_v3 }
  0x46   :  { %709 = vst [vmem:[%s1612_s2 + $0x220] sm:$0xff] %v708_v4 }
  0x47   :  { %711 = vst [vmem:[%s1612_s2 + $0x228] sm:$0xff] %v710_v5 }
  0x48   :  { %713 = vst [vmem:[%s1612_s2 + $0x230] sm:$0xff] %v712_v6 }
  0x49   :  { %715 = vst [vmem:[%s1612_s2 + $0x238] sm:$0xff] %v714_v7 }
  0x4a   :  { %717 = vst [vmem:[%s1612_s2 + $0x240] sm:$0xff] %v716_v8 }
  0x4b   :  { %719 = vst [vmem:[%s1612_s2 + $0x248] sm:$0xff] %v718_v9 }
  0x4c   :  { %721 = vst [vmem:[%s1612_s2 + $0x250] sm:$0xff] %v720_v10 }
  0x4d   :  { %723 = vst [vmem:[%s1612_s2 + $0x258] sm:$0xff] %v722_v11 }
  0x4e   :  { %725 = vst [vmem:[%s1612_s2 + $0x260] sm:$0xff] %v724_v12 }
  0x4f   :  { %727 = vst [vmem:[%s1612_s2 + $0x268] sm:$0xff] %v726_v13 }
  0x50   :  { %729 = vst [vmem:[%s1612_s2 + $0x270] sm:$0xff] %v728_v14 }
  0x51   :  { %731 = vst [vmem:[%s1612_s2 + $0x278] sm:$0xff] %v730_v15 }
  0x52   :  { %733 = vst [vmem:[%s1612_s2 + $0x280] sm:$0xff] %v732_v16 }
  0x53   :  { %735 = vst [vmem:[%s1612_s2 + $0x288] sm:$0xff] %v734_v17 }
  0x54   :  { %737 = vst [vmem:[%s1612_s2 + $0x290] sm:$0xff] %v736_v18 }
  0x55   :  { %739 = vst [vmem:[%s1612_s2 + $0x298] sm:$0xff] %v738_v19 }
  0x56   :  { %741 = vst [vmem:[%s1612_s2 + $0x2a0] sm:$0xff] %v740_v20 }
  0x57   :  { %743 = vst [vmem:[%s1612_s2 + $0x2a8] sm:$0xff] %v742_v21 }
  0x58   :  { %745 = vst [vmem:[%s1612_s2 + $0x2b0] sm:$0xff] %v744_v22 }
  0x59   :  { %747 = vst [vmem:[%s1612_s2 + $0x2b8] sm:$0xff] %v746_v23 }
  0x5a   :  { %749 = vst [vmem:[%s1612_s2 + $0x2c0] sm:$0xff] %v748_v24 }
  0x5b   :  { %751 = vst [vmem:[%s1612_s2 + $0x2c8] sm:$0xff] %v750_v25 }
  0x5c   :  { %753 = vst [vmem:[%s1612_s2 + $0x2d0] sm:$0xff] %v752_v26 }
  0x5d   :  { %755 = vst [vmem:[%s1612_s2 + $0x2d8] sm:$0xff] %v754_v27 }
  0x5e   :  { %757 = vst [vmem:[%s1612_s2 + $0x2e0] sm:$0xff] %v756_v28 }
  0x5f   :  { %759 = vst [vmem:[%s1612_s2 + $0x2e8] sm:$0xff] %v758_v29 }
  0x60   :  { %761 = vst [vmem:[%s1612_s2 + $0x2f0] sm:$0xff] %v760_v30 }
  0x61   :  { %763 = vst [vmem:[%s1612_s2 + $0x2f8] sm:$0xff] %v762_v31 }
  0x62   :  { %765 = vst [vmem:[%s1612_s2 + $0x300] sm:$0xff] %v764_v32 }
  0x63   :  { %767 = vst [vmem:[%s1612_s2 + $0x308] sm:$0xff] %v766_v33 }
  0x64   :  { %769 = vst [vmem:[%s1612_s2 + $0x310] sm:$0xff] %v768_v34 }
  0x65   :  { %771 = vst [vmem:[%s1612_s2 + $0x318] sm:$0xff] %v770_v35 }
  0x66   :  { %773 = vst [vmem:[%s1612_s2 + $0x320] sm:$0xff] %v772_v36 }
  0x67   :  { %775 = vst [vmem:[%s1612_s2 + $0x328] sm:$0xff] %v774_v37 }
  0x68   :  { %777 = vst [vmem:[%s1612_s2 + $0x330] sm:$0xff] %v776_v38 }
  0x69   :  { %779 = vst [vmem:[%s1612_s2 + $0x338] sm:$0xff] %v778_v39 }
  0x6a   :  { %781 = vst [vmem:[%s1612_s2 + $0x340] sm:$0xff] %v780_v40 }
  0x6b   :  { %783 = vst [vmem:[%s1612_s2 + $0x348] sm:$0xff] %v782_v41 }
  0x6c   :  { %785 = vst [vmem:[%s1612_s2 + $0x350] sm:$0xff] %v784_v42 }
  0x6d   :  { %787 = vst [vmem:[%s1612_s2 + $0x358] sm:$0xff] %v786_v43 }
  0x6e   :  { %789 = vst [vmem:[%s1612_s2 + $0x360] sm:$0xff] %v788_v44 }
  0x6f   :  { %791 = vst [vmem:[%s1612_s2 + $0x368] sm:$0xff] %v790_v45 }
  0x70   :  { %793 = vst [vmem:[%s1612_s2 + $0x370] sm:$0xff] %v792_v46 }
  0x71   :  { %795 = vst [vmem:[%s1612_s2 + $0x378] sm:$0xff] %v794_v47 }
  0x72   :  { %797 = vst [vmem:[%s1612_s2 + $0x380] sm:$0xff] %v796_v48 }
  0x73   :  { %799 = vst [vmem:[%s1612_s2 + $0x388] sm:$0xff] %v798_v49 }
  0x74   :  { %801 = vst [vmem:[%s1612_s2 + $0x390] sm:$0xff] %v800_v50 }
  0x75   :  { %803 = vst [vmem:[%s1612_s2 + $0x398] sm:$0xff] %v802_v51 }
  0x76   :  { %805 = vst [vmem:[%s1612_s2 + $0x3a0] sm:$0xff] %v804_v52 }
  0x77   :  { %807 = vst [vmem:[%s1612_s2 + $0x3a8] sm:$0xff] %v806_v53 }
  0x78   :  { %809 = vst [vmem:[%s1612_s2 + $0x3b0] sm:$0xff] %v808_v54 }
  0x79   :  { %811 = vst [vmem:[%s1612_s2 + $0x3b8] sm:$0xff] %v810_v55 }
  0x7a   :  { %813 = vst [vmem:[%s1612_s2 + $0x3c0] sm:$0xff] %v812_v56 }
  0x7b   :  { %815 = vst [vmem:[%s1612_s2 + $0x3c8] sm:$0xff] %v814_v57 }
  0x7c   :  { %817 = vst [vmem:[%s1612_s2 + $0x3d0] sm:$0xff] %v816_v58 }
  0x7d   :  { %819 = vst [vmem:[%s1612_s2 + $0x3d8] sm:$0xff] %v818_v59 }
  0x7e   :  { %821 = vst [vmem:[%s1612_s2 + $0x3e0] sm:$0xff] %v820_v60 }
  0x7f   :  { %823 = vst [vmem:[%s1612_s2 + $0x3e8] sm:$0xff] %v822_v61 }
  0x80   :  { %825 = vst [vmem:[%s1612_s2 + $0x3f0] sm:$0xff] %v824_v62 }
  0x81   :  { %827 = vst [vmem:[%s1612_s2 + $0x3f8] sm:$0xff] %v826_v63 }

// kernel: up_forward.1
= control target key start
LH: loop header
LB: loop body
LE: loop exit
PB: predicated region body
PF: predicated region fallthrough
CT: control target
= control target key end

     0   :  { %s6948_s15 = smov 0   ;;  %s6950_s16 = smov 0   ;;  %s8834_s0 = inlined_call_operand.vmem [shape: bf16[2,2,256,128], index: 0, kind: input, shape index: {}]   ;;  %s8835_s1 = inlined_call_operand.vmem [shape: bf16[9,128,128], index: 1, kind: input, shape index: {}]   ;;  %s8836_s2 = inlined_call_operand.vmem [shape: bf16[9,128,128], index: 2, kind: input, shape index: {}]   ;;  %s8837_s3 = inlined_call_operand.vmem [shape: bf16[128,128], index: 3, kind: input, shape index: {}]   ;;  %s8838_s4 = inlined_call_operand.vmem [shape: f32[2,2,160,128], index: 4, kind: output, shape index: {}]  }
   0x1   :  { %s6952_s17 = smov 0   ;;  %s6954_s18 = smov 0  }
   0x2   :  { %s6956_s19 = smov 0  }
   0x3 LB: > { %s23_s20 = sadd.s32 1, %s6913_s17  ;;  %s26_s21 = sadd.s32 1, %s6917_s18  ;;  %s6921_s19 = sphi %s6956_s19, %s14_s19   ;;  %s6917_s18 = sphi %s6954_s18, %s8936_s18   ;;  %s6913_s17 = sphi %s6952_s17, %s8935_s17   ;;  %s6909_s16 = sphi %s6950_s16, %s8934_s16   ;;  %s6905_s15 = sphi %s6948_s15, %s8933_s15  }
   0x4   : > { %p24_p0 = scmp.ge.s32.totalorder %s23_s20, 2  ;;  %p5167_p1 = scmp.ge.s32.totalorder %s6921_s19, 1 }
   0x5   : > { %p182_p2 = scmp.lt.s32.totalorder %s6921_s19, 5 }
   0x6   : > { %s8938_s20 = smov (%p24_p0, %s23_s20), 0  ;;  %s8940_s21 = smov (!%p24_p0, %s26_s21), %s6917_s18 }
   0x7   : > { %p183_p3 = pnand %p5167_p1, %p182_p2  ;;  %p28_p4 = scmp.ge.s32.totalorder %s8940_s21, 2 }
   0x9   : > { %s8942_s21 = smov (%p28_p4, %s8940_s21), 0  ;;  %186 = sbr.rel (%p183_p3) target bundleno = 1229 (0x4cd), region = 36 }
   0xe   : > { %v6489_v0 = vld [vmem:[%s8835_s1 + $0x78] sm:$0xff]  ;;  %p216_p5 = scmp.lt.s32.totalorder %s6909_s16, 1  ;;  %p218_p6 = scmp.lt.s32.totalorder %s6905_s15, 1  ;;  %v6488_v4 = vld [vmem:[%s8835_s1 + $0x70] sm:$0xff]  ;;  %v6487_v8 = vld [vmem:[%s8835_s1 + $0x68] sm:$0xff]  ;;  %vm762_vm1 = vcmask 1046528  }
   0xf   : > { %v6481_v1 = vld [vmem:[%s8835_s1 + $0x38] sm:$0xff]  ;;  %532 = vmatpush.bf16.msra.mxu0 %v6489_v0  ;;  %v6480_v5 = vld [vmem:[%s8835_s1 + $0x30] sm:$0xff]  ;;  %v6479_v9 = vld [vmem:[%s8835_s1 + $0x28] sm:$0xff]  ;;  %vm362_vm0 = vsmask.f32 7424  ;;  %vm1063_vm2 = vcmask 1045504  }
  0x10   : > { %v6497_v2 = vld [vmem:[%s8835_s1 + $0xb8] sm:$0xff]  ;;  %667 = vmatpush.bf16.msra.mxu1 %v6481_v1  ;;  %s8944_s16 = smov (!%p216_p5, %s6909_s16), 1  ;;  %v6496_v6 = vld [vmem:[%s8835_s1 + $0xb0] sm:$0xff]  ;;  %s8946_s15 = smov (!%p218_p6, %s6905_s15), 1  ;;  %v6495_v10 = vld [vmem:[%s8835_s1 + $0xa8] sm:$0xff]  ;;  %vm1581_vm4 = vcmask 1044480  }
  0x11   : > { %v6517_v3 = vld [vmem:[%s8835_s1 + $0xf8] sm:$0xff]  ;;  %851 = vmatpush.bf16.msra.mxu2 %v6497_v2  ;;  %v6516_v7 = vld [vmem:[%s8835_s1 + $0xf0] sm:$0xff]  ;;  %s5169_s12 = sshll.u32 %s8944_s16, 6  ;;  %s5168_s13 = sshll.u32 %s8946_s15, 5  ;;  %v6515_v11 = vld [vmem:[%s8835_s1 + $0xe8] sm:$0xff] }
  0x12   : > { %1152 = vmatpush.bf16.msra.mxu3 %v6517_v3  ;;  %s222_s25 = sadd.s32 %s5169_s12, %s5168_s13  ;;  %v6486_v12 = vld [vmem:[%s8835_s1 + $0x60] sm:$0xff]  ;;  %v6485_v16 = vld [vmem:[%s8835_s1 + $0x58] sm:$0xff]  ;;  %v6484_v23 = vld [vmem:[%s8835_s1 + $0x50] sm:$0xff]  ;;  %vm1273_vm3 = vsmask.f32 5376  ;;  %s6835_s11 = smul.u32 20, %s8946_s15 }
  0x13   : > { %533 = vmatpush.bf16.msra.mxu0 %v6488_v4  ;;  %s5170_s30 = sshll.u32 %s222_s25, 2  ;;  %v6478_v13 = vld [vmem:[%s8835_s1 + $0x20] sm:$0xff]  ;;  %v6477_v17 = vld [vmem:[%s8835_s1 + $0x18] sm:$0xff]  ;;  %v6476_v24 = vld [vmem:[%s8835_s1 + $0x10] sm:$0xff]  ;;  %s6836_s12 = smul.u32 40, %s8944_s16 }
  0x14   : > { %668 = vmatpush.bf16.msra.mxu1 %v6480_v5  ;;  %v6494_v14 = vld [vmem:[%s8835_s1 + $0xa0] sm:$0xff]  ;;  %s7039_s22 = scalar_lea.vmem %s8834_s0, %s5170_s30  ;;  %v6493_v18 = vld [vmem:[%s8835_s1 + $0x98] sm:$0xff]  ;;  %v6492_v27 = vld [vmem:[%s8835_s1 + $0x90] sm:$0xff] }
  0x15   : > { %852 = vmatpush.bf16.msra.mxu2 %v6496_v6  ;;  %v6514_v15 = vld [vmem:[%s8835_s1 + $0xe0] sm:$0xff]  ;;  %v6513_v19 = vld [vmem:[%s8835_s1 + $0xd8] sm:$0xff]  ;;  %v951_v21 = vld [vmem:[%s7039_s22 + $0x8] sm:$0xc]  ;;  %s231_s13 = sadd.s32 %s6836_s12, %s6835_s11 }
  0x16   : > { %1153 = vmatpush.bf16.msra.mxu3 %v6516_v7  ;;  %v6721_v20 = vld [vmem:[%s7039_s22] sm:$0xff]   ;;  %v7056_v22 = vld [vmem:[%s7039_s22 + $0xc] sm:$0xf]  ;;  %v6512_v28 = vld [vmem:[%s8835_s1 + $0xd0] sm:$0xff]  ;;  %v1022_v29 = vunpack.c.l.b16 %v951_v21  ;;  %s5171_s15 = sshll.u32 %s231_s13, 3 }
  0x17   : > { %534 = vmatpush.bf16.msra.mxu0 %v6487_v8  ;;  %v7065_v25 = vld [vmem:[%s7039_s22 + $0x8] sm:$0xff]  ;;  %v366_v26 = vshll.u32 %v6721_v20, 16  ;;  %v1023_v30 = vunpack.c.l.b16 %v7056_v22  ;;  %v6793_v31 = vld [vmem:[%s7039_s22] sm:$0xf0]  ;;  %v6794_v32 = vld [vmem:[%s7039_s22] sm:$0xe]  ;;  %s8716_s23 = scalar_lea.vmem %s8838_s4, %s5171_s15 }
  0x18   : > { %669 = vmatpush.bf16.msra.mxu1 %v6479_v9  ;;  %v6483_v33 = vld [vmem:[%s8835_s1 + $0x48] sm:$0xff]  ;;  %v364_v35 = vshrl.u32 %v6721_v20, 16  ;;  %v371_v37 = vshll.u32 %v7065_v25, 16  ;;  %v6795_v40 = vor.u32 %v6794_v32, %v6793_v31  ;;  %v7090_v41 = vld [vmem:[%s7039_s22 + $0x10] sm:$0xff]  ;;  %v6482_v43 = vld [vmem:[%s8835_s1 + $0x40] sm:$0xff]  ;;  %v764_v50 = vrot.slane %v7065_v25, 1 }
  0x19   : > { %853 = vmatpush.bf16.msra.mxu2 %v6495_v10  ;;  %v6475_v34 = vld [vmem:[%s8835_s1 + $0x8] sm:$0xff]  ;;  %v368_v36 = vrot.slane %v366_v26, 1  ;;  %v7094_v42 = vpack.c.b16 %v1023_v30, %v1022_v29  ;;  %v6474_v44 = vld [vmem:[%s8835_s1] sm:$0xff]  ;;  %v1065_v52 = vrot.slane %v7090_v41, 2  ;;  %v6525_v53 = vld [vmem:[%s8835_s1 + $0x138] sm:$0xff]  ;;  %v375_v59 = vshrl.u32 %v7065_v25, 16 }
  0x1a   : > { %1154 = vmatpush.bf16.msra.mxu3 %v6515_v11  ;;  %v6491_v38 = vld [vmem:[%s8835_s1 + $0x88] sm:$0xff]  ;;  %v373_v46 = vrot.slane %v371_v37, 1  ;;  %v6490_v47 = vld [vmem:[%s8835_s1 + $0x80] sm:$0xff]  ;;  %v763_v49 = vrot.slane %v6795_v40, 1  ;;  %v6524_v57 = vld [vmem:[%s8835_s1 + $0x130] sm:$0xff] }
  0x1b   : > { %535 = vmatpush.bf16.msra.mxu0 %v6486_v12  ;;  %v6511_v39 = vld [vmem:[%s8835_s1 + $0xc8] sm:$0xff]  ;;  %v369_v45 = vor.u32 %v368_v36, %v364_v35  ;;  %v6510_v48 = vld [vmem:[%s8835_s1 + $0xc0] sm:$0xff]  ;;  %v1064_v51 = vrot.slane %v7094_v42, 2  ;;  %v6463_v58 = vld [vmem:[%s7039_s22 + $0x10] sm:$0xff] }
  0x1c   : > { %670 = vmatpush.bf16.msra.mxu1 %v6478_v13  ;;  %v765_v55 = vsel %vm762_vm1, %v763_v49, %v764_v50  ;;  %v379_v60 = vshll.u32 %v6463_v58, 16  ;;  %v7123_v61 = vld [vmem:[%s7039_s22 + $0x18] sm:$0xff]  ;;  %v377_v62 = vor.u32 %v375_v59, %v373_v46  ;;  %v766_v0 = vrot.slane %v6463_v58, 1  ;;  %v6523_v6 = vld [vmem:[%s8835_s1 + $0x128] sm:$0xff]  ;;  %v7135_v9 = vld [vmem:[%s7039_s22 + $0x20] sm:$0xff] }
  0x1d   : > { %854 = vmatpush.bf16.msra.mxu2 %v6494_v14  ;;  %v374_v54 = vsel %vm362_vm0, %v369_v45, %v373_v46  ;;  %v1066_v56 = vsel %vm1063_vm2, %v1064_v51, %v1065_v52  ;;  %v1067_v1 = vrot.slane %v7123_v61, 2  ;;  %v6464_v5 = vld [vmem:[%s7039_s22 + $0x18] sm:$0xff]  ;;  %v383_v7 = vshrl.u32 %v6463_v58, 16  ;;  %v7146_v21 = vld [vmem:[%s7039_s22 + $0x28] sm:$0xff]  ;;  %v7173_v59 = vld [vmem:[%s7039_s22 + $0x40] sm:$0xff] }
  0x1e   : > { %1155 = vmatpush.bf16.msra.mxu3 %v6514_v15  ;;  %v381_v63 = vrot.slane %v379_v60, 1  ;;  %v767_v3 = vsel %vm762_vm1, %v764_v50, %v766_v0  ;;  %v387_v8 = vshll.u32 %v6464_v5, 16  ;;  %v768_v12 = vrot.slane %v6464_v5, 1  ;;  %v6466_v31 = vld [vmem:[%s7039_s22 + $0x28] sm:$0xff]  ;;  %v6521_v45 = vld [vmem:[%s8835_s1 + $0x118] sm:$0xff] }
  0x1f   : > { %536 = vmatpush.bf16.msra.mxu0 %v6485_v16  ;;  %v1068_v4 = vsel %vm1063_vm2, %v1065_v52, %v1067_v1  ;;  %v1069_v13 = vrot.slane %v7135_v9, 2  ;;  %v1071_v26 = vrot.slane %v7146_v21, 2  ;;  %v772_v37 = vrot.slane %v6466_v31, 1 }
  0x20   : > { %671 = vmatpush.bf16.msra.mxu1 %v6477_v17  ;;  %v382_v2 = vsel %vm362_vm0, %v377_v62, %v381_v63  ;;  %v385_v10 = vor.u32 %v383_v7, %v381_v63  ;;  %v389_v11 = vrot.slane %v387_v8, 1  ;;  %v769_v15 = vsel %vm762_vm1, %v766_v0, %v768_v12  ;;  %v6465_v17 = vld [vmem:[%s7039_s22 + $0x20] sm:$0xff]  ;;  %v7184_v8 = vld [vmem:[%s7039_s22 + $0x48] sm:$0xff] }
  0x21   : > { %855 = vmatpush.bf16.msra.mxu2 %v6493_v18  ;;  %v1070_v16 = vsel %vm1063_vm2, %v1067_v1, %v1069_v13  ;;  %v6522_v18 = vld [vmem:[%s8835_s1 + $0x120] sm:$0xff]  ;;  %v1072_v29 = vsel %vm1063_vm2, %v1069_v13, %v1071_v26  ;;  %v399_v32 = vshrl.u32 %v6465_v17, 16  ;;  %v407_v46 = vshrl.u32 %v6466_v31, 16 }
  0x22   : > { %1156 = vmatpush.bf16.msra.mxu3 %v6513_v19  ;;  %v390_v14 = vsel %vm362_vm0, %v385_v10, %v389_v11  ;;  %v391_v19 = vshrl.u32 %v6464_v5, 16  ;;  %v1077_v0 = vrot.slane %v7173_v59, 2  ;;  %v1079_v13 = vrot.slane %v7184_v8, 2 }
  0x23   : > { %537 = vmatpush.bf16.msra.mxu0 %v6484_v23 }
  0x24   : > { %672 = vmatpush.bf16.msra.mxu1 %v6476_v24  ;;  %v393_v23 = vor.u32 %v391_v19, %v389_v11 }
  0x25   : > { %856 = vmatpush.bf16.msra.mxu2 %v6492_v27 }
  0x26   : > { %1157 = vmatpush.bf16.msra.mxu3 %v6512_v28 }
  0x27   : > { %538 = vmatpush.bf16.msra.mxu0 %v6483_v33  ;;  %v403_v33 = vshll.u32 %v6466_v31, 16 }
  0x28   : > { %673 = vmatpush.bf16.msra.mxu1 %v6475_v34  ;;  %v7154_v34 = vld [vmem:[%s7039_s22 + $0x30] sm:$0xff] }
  0x29   : > { %857 = vmatpush.bf16.msra.mxu2 %v6491_v38  ;;  %v405_v36 = vrot.slane %v403_v33, 1  ;;  %v1073_v38 = vrot.slane %v7154_v34, 2 }
  0x2a   : > { %1158 = vmatpush.bf16.msra.mxu3 %v6511_v39 }
  0x2b   : > { %539 = vmatpush.bf16.msra.mxu0 %v6482_v43  ;;  %v1074_v43 = vsel %vm1063_vm2, %v1071_v26, %v1073_v38  ;;  %v409_v49 = vor.u32 %v407_v46, %v405_v36 }
  0x2c   : > { %674 = vmatpush.bf16.msra.mxu1 %v6474_v44  ;;  %v6467_v44 = vld [vmem:[%s7039_s22 + $0x30] sm:$0xff] }
  0x2d   : > { %858 = vmatpush.bf16.msra.mxu2 %v6490_v47  ;;  %v411_v47 = vshll.u32 %v6467_v44, 16  ;;  %v774_v51 = vrot.slane %v6467_v44, 1 }
  0x2e   : > { %1159 = vmatpush.bf16.msra.mxu3 %v6510_v48  ;;  %540 = vmatmul.bf16.vlgmr.msra.gmra.mxu0 %v374_v54  ;;  %v7165_v48 = vld [vmem:[%s7039_s22 + $0x38] sm:$0xff] }
  0x2f   : > { %1460 = vmatpush.bf16.msrb.mxu0 %v6525_v53  ;;  %675 = vmatmul.bf16.vlgmr.msra.gmra.mxu1 %v6721_v20  ;;  %v395_v20 = vshll.u32 %v6465_v17, 16  ;;  %v413_v50 = vrot.slane %v411_v47, 1  ;;  %v1075_v52 = vrot.slane %v7165_v48, 2  ;;  %v775_v54 = vsel %vm762_vm1, %v772_v37, %v774_v51  ;;  %v7206_v47 = vld [vmem:[%s7039_s22 + $0x58] sm:$0xff] }
  0x30   : > { %859 = vmatmul.bf16.vlgmr.msra.gmra.mxu2 %v765_v55 }
  0x31   : > { %1160 = vmatmul.bf16.vlgmr.msra.gmra.mxu3 %v1066_v56  ;;  %v397_v24 = vrot.slane %v395_v20, 1  ;;  %v414_v53 = vsel %vm362_vm0, %v409_v49, %v413_v50  ;;  %v1076_v55 = vsel %vm1063_vm2, %v1073_v38, %v1075_v52  ;;  %v6468_v56 = vld [vmem:[%s7039_s22 + $0x38] sm:$0xff]  ;;  %v7192_v20 = vld [vmem:[%s7039_s22 + $0x50] sm:$0xff] }
  0x32   : > { %v776_v63 = vrot.slane %v6468_v56, 1  ;;  %v1081_v26 = vrot.slane %v7192_v20, 2 }
  0x33   : > { %1461 = vmatpush.bf16.msrb.mxu0 %v6524_v57  ;;  %v398_v27 = vsel %vm362_vm0, %v393_v23, %v397_v24  ;;  %v401_v35 = vor.u32 %v399_v32, %v397_v24  ;;  %v415_v57 = vshrl.u32 %v6467_v44, 16 }
  0x35   : > { %v406_v39 = vsel %vm362_vm0, %v401_v35, %v405_v36  ;;  %v417_v60 = vor.u32 %v415_v57, %v413_v50  ;;  %v1082_v35 = vsel %vm1063_vm2, %v1079_v13, %v1081_v26  ;;  %v7202_v36 = vld [vmem:[%s7039_s22 + $0x50] sm:$0xff] }
  0x37   : > { %1462 = vmatpush.bf16.msrb.mxu0 %v6523_v6  ;;  %v423_v6 = vshrl.u32 %v6468_v56, 16 }
  0x3b   : > { %1463 = vmatpush.bf16.msrb.mxu0 %v6522_v18 }
  0x3e   : > { %545 = vmatmul.bf16.gmra.mxu0 %v382_v2  ;;  %v777_v2 = vsel %vm762_vm1, %v774_v51, %v776_v63 }
  0x3f   : > { %680 = vmatmul.bf16.gmra.mxu1 %v7065_v25  ;;  %v770_v25 = vrot.slane %v6465_v17, 1  ;;  %1464 = vmatpush.bf16.msrb.mxu0 %v6521_v45  ;;  %v443_v45 = vshll.u32 %v7202_v36, 16 }
  0x40   : > { %864 = vmatmul.bf16.gmra.mxu2 %v767_v3  ;;  %v1078_v3 = vsel %vm1063_vm2, %v1075_v52, %v1077_v0  ;;  %v782_v52 = vrot.slane %v7202_v36, 1 }
  0x41   : > { %1165 = vmatmul.bf16.gmra.mxu3 %v1068_v4  ;;  %v771_v28 = vsel %vm762_vm1, %v768_v12, %v770_v25  ;;  %v773_v40 = vsel %vm762_vm1, %v770_v25, %v772_v37  ;;  %v6469_v4 = vld [vmem:[%s7039_s22 + $0x40] sm:$0xff]  ;;  %v445_v51 = vrot.slane %v443_v45, 1 }
  0x42   : > { %v427_v7 = vshll.u32 %v6469_v4, 16  ;;  %v778_v12 = vrot.slane %v6469_v4, 1  ;;  %v431_v18 = vshrl.u32 %v6469_v4, 16 }
  0x44   : > { %v429_v11 = vrot.slane %v427_v7, 1 }
  0x46   : > { %v433_v23 = vor.u32 %v431_v18, %v429_v11  ;;  %v6532_v18 = vld [vmem:[%s8835_s1 + $0x170] sm:$0xff] }
  0x4e   : > { %550 = vmatmul.bf16.gmra.mxu0 %v390_v14 }
  0x4f   : > { %685 = vmatmul.bf16.gmra.mxu1 %v6463_v58  ;;  %v419_v58 = vshll.u32 %v6468_v56, 16 }
  0x50   : > { %869 = vmatmul.bf16.gmra.mxu2 %v769_v15  ;;  %v779_v15 = vsel %vm762_vm1, %v776_v63, %v778_v12 }
  0x51   : > { %1170 = vmatmul.bf16.gmra.mxu3 %v1070_v16  ;;  %v421_v62 = vrot.slane %v419_v58, 1  ;;  %v1080_v16 = vsel %vm1063_vm2, %v1077_v0, %v1079_v13 }
  0x53   : > { %v422_v1 = vsel %vm362_vm0, %v417_v60, %v421_v62  ;;  %v425_v10 = vor.u32 %v423_v6, %v421_v62  ;;  %v6554_v62 = vld [vmem:[%s8835_s1 + $0x1b8] sm:$0xff] }
  0x54   : > { %1939 = vmatpush.bf16.msrb.mxu2 %v6554_v62 }
  0x55   : > { %v430_v14 = vsel %vm362_vm0, %v425_v10, %v429_v11  ;;  %v6553_v10 = vld [vmem:[%s8835_s1 + $0x1b0] sm:$0xff] }
  0x58   : > { %1940 = vmatpush.bf16.msrb.mxu2 %v6553_v10 }
  0x5e   : > { %555 = vmatmul.bf16.gmra.mxu0 %v398_v27 }
  0x5f   : > { %690 = vmatmul.bf16.gmra.mxu1 %v6464_v5  ;;  %v6520_v5 = vld [vmem:[%s8835_s1 + $0x110] sm:$0xff] }
  0x60   : > { %874 = vmatmul.bf16.gmra.mxu2 %v771_v28  ;;  %1465 = vmatpush.bf16.msrb.mxu0 %v6520_v5  ;;  %v7227_v5 = vld [vmem:[%s7039_s22 + $0x58] sm:$0xff] }
  0x61   : > { %1175 = vmatmul.bf16.gmra.mxu3 %v1072_v29 }
  0x6e   : > { %560 = vmatmul.bf16.gmra.mxu0 %v406_v39 }
  0x6f   : > { %695 = vmatmul.bf16.gmra.mxu1 %v6465_v17  ;;  %v6470_v17 = vld [vmem:[%s7039_s22 + $0x48] sm:$0xff] }
  0x70   : > { %879 = vmatmul.bf16.gmra.mxu2 %v773_v40  ;;  %v435_v19 = vshll.u32 %v6470_v17, 16  ;;  %v780_v25 = vrot.slane %v6470_v17, 1 }
  0x71   : > { %1180 = vmatmul.bf16.gmra.mxu3 %v1074_v43 }
  0x72   : > { %v437_v24 = vrot.slane %v435_v19, 1  ;;  %v781_v33 = vsel %vm762_vm1, %v778_v12, %v780_v25  ;;  %v783_v0 = vsel %vm762_vm1, %v780_v25, %v782_v52  ;;  %v6573_v19 = vld [vmem:[%s8835_s1 + $0x1f0] sm:$0xff]  ;;  %v6552_v25 = vld [vmem:[%s8835_s1 + $0x1a8] sm:$0xff] }
  0x73   : > { %1941 = vmatpush.bf16.msrb.mxu2 %v6552_v25 }
  0x74   : > { %v438_v29 = vsel %vm362_vm0, %v433_v23, %v437_v24 }
  0x7e   : > { %565 = vmatmul.bf16.gmra.mxu0 %v414_v53  ;;  %v1083_v53 = vrot.slane %v7206_v47, 2 }
  0x7f   : > { %700 = vmatmul.bf16.gmra.mxu1 %v6466_v31  ;;  %v6519_v31 = vld [vmem:[%s8835_s1 + $0x108] sm:$0xff] }
  0x80   : > { %884 = vmatmul.bf16.gmra.mxu2 %v775_v54  ;;  %1466 = vmatpush.bf16.msrb.mxu0 %v6519_v31  ;;  %v6531_v31 = vld [vmem:[%s8835_s1 + $0x168] sm:$0xff] }
  0x81   : > { %1185 = vmatmul.bf16.gmra.mxu3 %v1076_v55 }
  0x8e   : > { %570 = vmatmul.bf16.gmra.mxu0 %v422_v1  ;;  %v1084_v1 = vsel %vm1063_vm2, %v1081_v26, %v1083_v53 }
  0x8f   : > { %705 = vmatmul.bf16.gmra.mxu1 %v6467_v44  ;;  %v439_v44 = vshrl.u32 %v6470_v17, 16 }
  0x90   : > { %889 = vmatmul.bf16.gmra.mxu2 %v777_v2 }
  0x91   : > { %1190 = vmatmul.bf16.gmra.mxu3 %v1078_v3  ;;  %v441_v50 = vor.u32 %v439_v44, %v437_v24  ;;  %v6574_v3 = vld [vmem:[%s8835_s1 + $0x1f8] sm:$0xff]  ;;  %v6518_v24 = vld [vmem:[%s8835_s1 + $0x100] sm:$0xff] }
  0x92   : > { %2320 = vmatpush.bf16.msrb.mxu3 %v6574_v3  ;;  %1467 = vmatpush.bf16.msrb.mxu0 %v6518_v24 }
  0x93   : > { %v446_v60 = vsel %vm362_vm0, %v441_v50, %v445_v51  ;;  %v6530_v50 = vld [vmem:[%s8835_s1 + $0x160] sm:$0xff] }
  0x96   : > { %2321 = vmatpush.bf16.msrb.mxu3 %v6573_v19  ;;  %v6568_v19 = vld [vmem:[%s8835_s1 + $0x1c8] sm:$0xff] }
  0x9e   : > { %575 = vmatmul.bf16.gmra.mxu0 %v430_v14  ;;  %v447_v14 = vshrl.u32 %v7202_v36, 16 }
  0x9f   : > { %710 = vmatmul.bf16.gmra.mxu1 %v6468_v56 }
  0xa0   : > { %894 = vmatmul.bf16.gmra.mxu2 %v779_v15  ;;  %v451_v15 = vshll.u32 %v7227_v5, 16  ;;  %v449_v26 = vor.u32 %v447_v14, %v445_v51  ;;  %v6571_v51 = vld [vmem:[%s8835_s1 + $0x1e0] sm:$0xff] }
  0xa1   : > { %1195 = vmatmul.bf16.gmra.mxu3 %v1080_v16 }
  0xab   : > { %v541_v27 = vpop.f32.mrf.mxu0 }
  0xac   : > { %v676_v28 = vpop.f32.mrf.mxu1 }
  0xad   : > { %v677_v32 = vadd.f32 %v676_v28, %v541_v27  ;;  %v453_v27 = vrot.slane %v451_v15, 1  ;;  %v784_v28 = vrot.slane %v7227_v5, 1 }
  0xae   : > { %580 = vmatmul.bf16.gmra.mxu0 %v438_v29 }
  0xaf   : > { %715 = vmatmul.bf16.gmra.mxu1 %v6469_v4  ;;  %v6533_v4 = vld [vmem:[%s8835_s1 + $0x178] sm:$0xff]  ;;  %v785_v45 = vsel %vm762_vm1, %v782_v52, %v784_v28 }
  0xb0   : > { %899 = vmatmul.bf16.gmra.mxu2 %v781_v33  ;;  %1670 = vmatpush.bf16.msrb.mxu1 %v6533_v4  ;;  %v6550_v52 = vld [vmem:[%s8835_s1 + $0x198] sm:$0xff]  ;;  %v7296_v4 = vld [vmem:[%s7039_s22 + $0x68] sm:$0xff] }
  0xb1   : > { %1200 = vmatmul.bf16.gmra.mxu3 %v1082_v35  ;;  %v1087_v15 = vrot.slane %v7296_v4, 2 }
  0xb3   : > { %v860_v37 = vpop.f32.mrf.mxu2  ;;  %v543_v40 = vpop.f32.mrf.mxu0 }
  0xb4   : > { %v1161_v38 = vpop.f32.mrf.mxu3  ;;  %v925_v39 = vadd.f32 %v860_v37, %v677_v32  ;;  %v678_v43 = vpop.f32.mrf.mxu1  ;;  %1671 = vmatpush.bf16.msrb.mxu1 %v6532_v18  ;;  %v6572_v32 = vld [vmem:[%s8835_s1 + $0x1e8] sm:$0xff]  ;;  %v6551_v37 = vld [vmem:[%s8835_s1 + $0x1a0] sm:$0xff] }
  0xb5   : > { %v679_v46 = vadd.f32 %v678_v43, %v543_v40  ;;  %2322 = vmatpush.bf16.msrb.mxu3 %v6572_v32  ;;  %v454_v43 = vsel %vm362_vm0, %v449_v26, %v453_v27  ;;  %1942 = vmatpush.bf16.msrb.mxu2 %v6551_v37  ;;  %v6527_v18 = vld [vmem:[%s8835_s1 + $0x148] sm:$0xff]  ;;  %v6547_v26 = vld [vmem:[%s8835_s1 + $0x180] sm:$0xff] }
  0xb6   : > { %v7208_v49 = vadd.f32 %v1161_v38, %v925_v39 }
  0xb8   : > { %1672 = vmatpush.bf16.msrb.mxu1 %v6531_v31 }
  0xb9   : > { %2323 = vmatpush.bf16.msrb.mxu3 %v6571_v51  ;;  %1943 = vmatpush.bf16.msrb.mxu2 %v6550_v52 }
  0xbb   : > { %v862_v54 = vpop.f32.mrf.mxu2  ;;  %v546_v57 = vpop.f32.mrf.mxu0 }
  0xbc   : > { %v1163_v55 = vpop.f32.mrf.mxu3  ;;  %v926_v56 = vadd.f32 %v862_v54, %v679_v46  ;;  %v681_v58 = vpop.f32.mrf.mxu1  ;;  %1673 = vmatpush.bf16.msrb.mxu1 %v6530_v50 }
  0xbd   : > { %v682_v63 = vadd.f32 %v681_v58, %v546_v57  ;;  %v6549_v58 = vld [vmem:[%s8835_s1 + $0x190] sm:$0xff] }
  0xbe   : > { %v7218_v2 = vadd.f32 %v1163_v55, %v926_v56  ;;  %585 = vmatmul.bf16.gmra.mxu0 %v446_v60  ;;  %v6529_v55 = vld [vmem:[%s8835_s1 + $0x158] sm:$0xff]  ;;  %1944 = vmatpush.bf16.msrb.mxu2 %v6549_v58 }
  0xbf   : > { %720 = vmatmul.bf16.gmra.mxu1 %v6470_v17  ;;  %v7235_v17 = vld [vmem:[%s7039_s22 + $0x60] sm:$0xff]  ;;  %v6570_v56 = vld [vmem:[%s8835_s1 + $0x1d8] sm:$0xff] }
  0xc0   : > { %904 = vmatmul.bf16.gmra.mxu2 %v783_v0  ;;  %v1085_v29 = vrot.slane %v7235_v17, 2  ;;  %v455_v0 = vshrl.u32 %v7227_v5, 16  ;;  %1674 = vmatpush.bf16.msrb.mxu1 %v6529_v55 }
  0xc1   : > { %1205 = vmatmul.bf16.gmra.mxu3 %v1084_v1 }
  0xc2   : > { %v1086_v46 = vsel %vm1063_vm2, %v1083_v53, %v1085_v29  ;;  %v7282_v53 = vld [vmem:[%s7039_s22 + $0x60] sm:$0xff]  ;;  %2324 = vmatpush.bf16.msrb.mxu3 %v6570_v56 }
  0xc3   : > { %v865_v6 = vpop.f32.mrf.mxu2  ;;  %v548_v12 = vpop.f32.mrf.mxu0  ;;  %v459_v1 = vshll.u32 %v7282_v53, 16  ;;  %v786_v14 = vrot.slane %v7282_v53, 1 }
  0xc4   : > { %v1166_v7 = vpop.f32.mrf.mxu3  ;;  %v927_v11 = vadd.f32 %v865_v6, %v682_v63  ;;  %v683_v13 = vpop.f32.mrf.mxu1  ;;  %v6528_v6 = vld [vmem:[%s8835_s1 + $0x150] sm:$0xff] }
  0xc5   : > { %v684_v16 = vadd.f32 %v683_v13, %v548_v12  ;;  %v457_v12 = vor.u32 %v455_v0, %v453_v27  ;;  %v461_v13 = vrot.slane %v459_v1, 1  ;;  %1675 = vmatpush.bf16.msrb.mxu1 %v6528_v6 }
  0xc6   : > { %v7243_v23 = vadd.f32 %v1166_v7, %v927_v11  ;;  %v6569_v7 = vld [vmem:[%s8835_s1 + $0x1d0] sm:$0xff]  ;;  %v6548_v11 = vld [vmem:[%s8835_s1 + $0x188] sm:$0xff] }
  0xc7   : > { %2325 = vmatpush.bf16.msrb.mxu3 %v6569_v7  ;;  %1945 = vmatpush.bf16.msrb.mxu2 %v6548_v11 }
  0xc9   : > { %1676 = vmatpush.bf16.msrb.mxu1 %v6527_v18 }
  0xcb   : > { %v867_v33 = vpop.f32.mrf.mxu2  ;;  %v551_v39 = vpop.f32.mrf.mxu0  ;;  %2326 = vmatpush.bf16.msrb.mxu3 %v6568_v19  ;;  %1946 = vmatpush.bf16.msrb.mxu2 %v6547_v26 }
  0xcc   : > { %v1168_v35 = vpop.f32.mrf.mxu3  ;;  %v928_v38 = vadd.f32 %v867_v33, %v684_v16  ;;  %v686_v40 = vpop.f32.mrf.mxu1  ;;  %v276_v16 = vld [vmem:[%s7039_s22 + $0x68] sm:$0x1]  ;;  %v462_v33 = vsel %vm362_vm0, %v457_v12, %v461_v13 }
  0xcd   : > { %v687_v44 = vadd.f32 %v686_v40, %v551_v39  ;;  %v1088_v39 = vsel %vm1063_vm2, %v1085_v29, %v1087_v15  ;;  %v6526_v40 = vld [vmem:[%s8835_s1 + $0x140] sm:$0xff]  ;;  %v6582_v29 = vld [vmem:[%s8835_s1 + $0x238] sm:$0xff] }
  0xce   : > { %v7275_v54 = vadd.f32 %v1168_v35, %v928_v38  ;;  %590 = vmatmul.bf16.gmra.mxu0 %v454_v43  ;;  %v347_v35 = vunpack.c.l.b16 %v276_v16  ;;  %v787_v38 = vsel %vm762_vm1, %v784_v28, %v786_v14  ;;  %v6567_v43 = vld [vmem:[%s8835_s1 + $0x1c0] sm:$0xff]  ;;  %1677 = vmatpush.bf16.msrb.mxu1 %v6526_v40 }
  0xcf   : > { %725 = vmatmul.bf16.gmra.mxu1 %v7202_v36  ;;  %2327 = vmatpush.bf16.msrb.mxu3 %v6567_v43 }
  0xd0   : > { %909 = vmatmul.bf16.gmra.mxu2 %v785_v45  ;;  %v977_v45 = vld [vmem:[%s7039_s22 + $0x70] sm:$0x3]  ;;  %v361_v28 = vpack.c.b16 %v347_v35, %v347_v35  ;;  %2529 = vmatpush.bf16.msra.mxu0 %v6582_v29  ;;  %v1286_v35 = vshll.u32 %v7090_v41, 16 }
  0xd1   : > { %1210 = vmatmul.bf16.gmra.mxu3 %v1086_v46  ;;  %v1048_v46 = vunpack.c.l.b16 %v977_v45 }
  0xd3   : > { %v870_v36 = vpop.f32.mrf.mxu2  ;;  %v553_v62 = vpop.f32.mrf.mxu0  ;;  %v1062_v58 = vpack.c.b16 %v1048_v46, %v1048_v46  ;;  %v1288_v46 = vrot.slane %v1286_v35, 3 }
  0xd4   : > { %v1171_v57 = vpop.f32.mrf.mxu3  ;;  %v929_v60 = vadd.f32 %v870_v36, %v687_v44  ;;  %v688_v63 = vpop.f32.mrf.mxu1  ;;  %v467_v36 = vshll.u32 %v361_v28, 16 }
  0xd5   : > { %v689_v3 = vadd.f32 %v688_v63, %v553_v62  ;;  %v2039_v62 = vld [vmem:[%s7039_s22 + $0x14] sm:$0xff]   ;;  %v1089_v6 = vrot.slane %v1062_v58, 2 }
  0xd6   : > { %v7304_v10 = vadd.f32 %v1171_v57, %v929_v60  ;;  %v7346_v63 = vld [vmem:[%s7039_s22 + $0x14] sm:$0xf0]  ;;  %v469_v1 = vrot.slane %v467_v36, 1 }
  0xd7   : > { %v1090_v26 = vsel %vm1063_vm2, %v1087_v15, %v1089_v6  ;;  %v2154_v15 = vshll.u32 %v2039_v62, 16 }
  0xdb   : > { %v872_v24 = vpop.f32.mrf.mxu2  ;;  %v556_v31 = vpop.f32.mrf.mxu0 }
  0xdc   : > { %v1173_v25 = vpop.f32.mrf.mxu3  ;;  %v930_v27 = vadd.f32 %v872_v24, %v689_v3  ;;  %v691_v32 = vpop.f32.mrf.mxu1  ;;  %v788_v3 = vrot.slane %v361_v28, 1 }
  0xdd   : > { %v692_v37 = vadd.f32 %v691_v32, %v556_v31  ;;  %v1278_v32 = vshll.u32 %v7094_v42, 16 }
  0xde   : > { %v7334_v44 = vadd.f32 %v1173_v25, %v930_v27  ;;  %595 = vmatmul.bf16.gmra.mxu0 %v462_v33  ;;  %v789_v25 = vsel %vm762_vm1, %v786_v14, %v788_v3  ;;  %v1560_v27 = vld [vmem:[%s7039_s22 + $0x8] sm:$0x8]  ;;  %v1283_v33 = vshrl.u32 %v7090_v41, 16  ;;  %v7360_v14 = vld [vmem:[%s7039_s22 + $0x1c] sm:$0xff] }
  0xdf   : > { %730 = vmatmul.bf16.gmra.mxu1 %v7227_v5  ;;  %v463_v5 = vshrl.u32 %v7282_v53, 16  ;;  %v1280_v43 = vrot.slane %v1278_v32, 3 }
  0xe0   : > { %914 = vmatmul.bf16.gmra.mxu2 %v787_v38  ;;  %v1285_v29 = vrot.slane %v1283_v33, 2 }
  0xe1   : > { %1215 = vmatmul.bf16.gmra.mxu3 %v1088_v39  ;;  %v465_v0 = vor.u32 %v463_v5, %v461_v13  ;;  %v1275_v13 = vshrl.u32 %v7094_v42, 16  ;;  %v6581_v5 = vld [vmem:[%s8835_s1 + $0x230] sm:$0xff] }
  0xe2   : > { %2530 = vmatpush.bf16.msra.mxu0 %v6581_v5  ;;  %v6535_v5 = vld [vmem:[%s7039_s22 + $0x1c] sm:$0xff] }
  0xe3   : > { %v875_v50 = vpop.f32.mrf.mxu2  ;;  %v558_v55 = vpop.f32.mrf.mxu0  ;;  %v470_v19 = vsel %vm362_vm0, %v465_v0, %v469_v1  ;;  %v1277_v40 = vrot.slane %v1275_v13, 2  ;;  %v1583_v0 = vrot.slane %v7090_v41, 3 }
  0xe4   : > { %v1176_v51 = vpop.f32.mrf.mxu3  ;;  %v931_v52 = vadd.f32 %v875_v50, %v692_v37  ;;  %v693_v56 = vpop.f32.mrf.mxu1  ;;  %v1579_v37 = vunpack.c.l.b16 %v1560_v27 }
  0xe5   : > { %v694_v57 = vadd.f32 %v693_v56, %v558_v55  ;;  %v2159_v55 = vshll.u32 %v7360_v14, 16  ;;  %v1281_v36 = vor.u32 %v1280_v43, %v1277_v40 }
  0xe6   : > { %v7342_v60 = vadd.f32 %v1176_v51, %v931_v52  ;;  %v1580_v42 = vpack.c.b16 %v1023_v30, %v1579_v37  ;;  %v2152_v51 = vshrl.u32 %v2039_v62, 16  ;;  %v2156_v52 = vrot.slane %v2154_v15, 1 }
  0xe7   : > { %v2161_v30 = vrot.slane %v2159_v55, 1 }
  0xe8   : > { %v1582_v58 = vrot.slane %v1580_v42, 3  ;;  %v2157_v22 = vor.u32 %v2156_v52, %v2152_v51 }
  0xeb   : > { %v877_v7 = vpop.f32.mrf.mxu2  ;;  %v561_v16 = vpop.f32.mrf.mxu0 }
  0xec   : > { %v1178_v11 = vpop.f32.mrf.mxu3  ;;  %v932_v12 = vadd.f32 %v877_v7, %v694_v57  ;;  %v696_v18 = vpop.f32.mrf.mxu1  ;;  %v1289_v57 = vor.u32 %v1288_v46, %v1285_v29 }
  0xed   : > { %v697_v24 = vadd.f32 %v696_v18, %v561_v16  ;;  %v1584_v16 = vsel %vm1581_vm4, %v1582_v58, %v1583_v0 }
  0xee   : > { %v7352_v31 = vadd.f32 %v1178_v11, %v932_v12  ;;  %600 = vmatmul.bf16.gmra.mxu0 %v470_v19  ;;  %v1290_v11 = vsel %vm1273_vm3, %v1281_v36, %v1289_v57  ;;  %v6534_v12 = vld [vmem:[%s7039_s22 + $0x14] sm:$0xff]  ;;  %v2162_v19 = vsel %vm362_vm0, %v2157_v22, %v2161_v30 }
  0xef   : > { %735 = vmatmul.bf16.gmra.mxu1 %v7282_v53 }
  0xf0   : > { %919 = vmatmul.bf16.gmra.mxu2 %v789_v25  ;;  %v1295_v25 = vshll.u32 %v7123_v61, 16 }
  0xf1   : > { %1220 = vmatmul.bf16.gmra.mxu3 %v1090_v26  ;;  %v7380_v26 = vld [vmem:[%s7039_s22 + $0x24] sm:$0xff] }
  0xf2   : > { %v1297_v15 = vrot.slane %v1295_v25, 3  ;;  %v2167_v40 = vshll.u32 %v7380_v26, 16 }
  0xf3   : > { %v880_v38 = vpop.f32.mrf.mxu2  ;;  %v563_v53 = vpop.f32.mrf.mxu0 }
  0xf4   : > { %v1181_v39 = vpop.f32.mrf.mxu3  ;;  %v933_v45 = vadd.f32 %v880_v38, %v697_v24  ;;  %v698_v28 = vpop.f32.mrf.mxu1  ;;  %v1292_v24 = vshrl.u32 %v7123_v61, 16  ;;  %v2169_v29 = vrot.slane %v2167_v40, 1 }
  0xf5   : > { %v699_v50 = vadd.f32 %v698_v28, %v563_v53  ;;  %v1585_v53 = vrot.slane %v7123_v61, 3  ;;  %v1301_v61 = vshrl.u32 %v7135_v9, 16 }
  0xf6   : > { %v7365_v56 = vadd.f32 %v1181_v39, %v933_v45  ;;  %v1294_v37 = vrot.slane %v1292_v24, 2  ;;  %v2163_v39 = vshrl.u32 %v7360_v14, 16 }
  0xf7   : > { %v1586_v36 = vsel %vm1581_vm4, %v1583_v0, %v1585_v53 }
  0xf8   : > { %v1298_v45 = vor.u32 %v1297_v15, %v1294_v37  ;;  %v2165_v28 = vor.u32 %v2163_v39, %v2161_v30  ;;  %v1304_v30 = vshll.u32 %v7135_v9, 16 }
  0xfa   : > { %v1299_v55 = vsel %vm1273_vm3, %v1289_v57, %v1298_v45  ;;  %v2170_v22 = vsel %vm362_vm0, %v2165_v28, %v2169_v29  ;;  %v6536_v28 = vld [vmem:[%s7039_s22 + $0x24] sm:$0xff] }
  0xfb   : > { %v882_v62 = vpop.f32.mrf.mxu2  ;;  %v566_v6 = vpop.f32.mrf.mxu0 }
  0xfc   : > { %v1183_v1 = vpop.f32.mrf.mxu3  ;;  %v934_v3 = vadd.f32 %v882_v62, %v699_v50  ;;  %v701_v7 = vpop.f32.mrf.mxu1 }
  0xfd   : > { %v702_v18 = vadd.f32 %v701_v7, %v566_v6 }
  0xfe   : > { %v7375_v41 = vadd.f32 %v1183_v1, %v934_v3  ;;  %1468 = vmatmul.bf16.vlgmr.msrb.gmra.mxu0 %v1290_v11  ;;  %v7396_v1 = vld [vmem:[%s7039_s22 + $0x2c] sm:$0xff]  ;;  %v1303_v11 = vrot.slane %v1301_v61, 2 }
  0xff   : > { %1678 = vmatmul.bf16.vlgmr.msrb.gmra.mxu1 %v1584_v16  ;;  %v6580_v16 = vld [vmem:[%s8835_s1 + $0x228] sm:$0xff]  ;;  %v2175_v24 = vshll.u32 %v7396_v1, 16 }
 0x100   : > { %1947 = vmatmul.bf16.vlgmr.msrb.gmra.mxu2 %v6534_v12  ;;  %v1306_v12 = vrot.slane %v1304_v30, 3  ;;  %2531 = vmatpush.bf16.msra.mxu0 %v6580_v16  ;;  %v2179_v30 = vshrl.u32 %v7396_v1, 16 }
 0x101   : > { %2328 = vmatmul.bf16.vlgmr.msrb.gmra.mxu3 %v2162_v19  ;;  %v2171_v19 = vshrl.u32 %v7380_v26, 16 }
 0x103   : > { %v885_v27 = vpop.f32.mrf.mxu2  ;;  %v568_v33 = vpop.f32.mrf.mxu0 }
 0x104   : > { %v1186_v13 = vpop.f32.mrf.mxu3  ;;  %v935_v32 = vadd.f32 %v885_v27, %v702_v18  ;;  %v703_v35 = vpop.f32.mrf.mxu1  ;;  %v1307_v27 = vor.u32 %v1306_v12, %v1303_v11 }
 0x105   : > { %v704_v38 = vadd.f32 %v703_v35, %v568_v33  ;;  %v2177_v33 = vrot.slane %v2175_v24, 1 }
 0x106   : > { %v7384_v43 = vadd.f32 %v1186_v13, %v935_v32  ;;  %v1587_v13 = vrot.slane %v7135_v9, 3  ;;  %v2173_v32 = vor.u32 %v2171_v19, %v2169_v29  ;;  %v1308_v40 = vsel %vm1273_vm3, %v1298_v45, %v1307_v27 }
 0x107   : > { %v1310_v9 = vshrl.u32 %v7146_v21, 16  ;;  %v1313_v29 = vshll.u32 %v7146_v21, 16 }
 0x10b   : > { %v887_v46 = vpop.f32.mrf.mxu2  ;;  %v571_v51 = vpop.f32.mrf.mxu0 }
 0x10c   : > { %v1188_v42 = vpop.f32.mrf.mxu3  ;;  %v936_v50 = vadd.f32 %v887_v46, %v704_v38  ;;  %v706_v52 = vpop.f32.mrf.mxu1  ;;  %v1588_v46 = vsel %vm1581_vm4, %v1585_v53, %v1587_v13 }
 0x10d   : > { %v707_v58 = vadd.f32 %v706_v52, %v571_v51  ;;  %v7415_v52 = vld [vmem:[%s7039_s22 + $0x34] sm:$0xff] }
 0x10e   : > { %v7391_v62 = vadd.f32 %v1188_v42, %v936_v50  ;;  %1473 = vmatmul.bf16.gmra.mxu0 %v1299_v55  ;;  %v2178_v50 = vsel %vm362_vm0, %v2173_v32, %v2177_v33 }
 0x10f   : > { %1683 = vmatmul.bf16.gmra.mxu1 %v1586_v36 }
 0x110   : > { %1952 = vmatmul.bf16.gmra.mxu2 %v6535_v5 }
 0x111   : > { %2333 = vmatmul.bf16.gmra.mxu3 %v2170_v22  ;;  %v1315_v22 = vrot.slane %v1313_v29, 3 }
 0x113   : > { %v890_v3 = vpop.f32.mrf.mxu2  ;;  %v573_v7 = vpop.f32.mrf.mxu0 }
 0x114   : > { %v1191_v57 = vpop.f32.mrf.mxu3  ;;  %v937_v6 = vadd.f32 %v890_v3, %v707_v58  ;;  %v708_v0 = vpop.f32.mrf.mxu1  ;;  %v1312_v58 = vrot.slane %v1310_v9, 2  ;;  %v2183_v3 = vshll.u32 %v7415_v52, 16 }
 0x115   : > { %v709_v18 = vadd.f32 %v708_v0, %v573_v7  ;;  %v1589_v7 = vrot.slane %v7146_v21, 3  ;;  %v2181_v0 = vor.u32 %v2179_v30, %v2177_v33  ;;  %v6579_v21 = vld [vmem:[%s8835_s1 + $0x220] sm:$0xff]  ;;  %v1319_v33 = vshrl.u32 %v7154_v34, 16 }
 0x116   : > { %v7403_v25 = vadd.f32 %v1191_v57, %v937_v6  ;;  %v1316_v6 = vor.u32 %v1315_v22, %v1312_v58  ;;  %v2185_v11 = vrot.slane %v2183_v3, 1  ;;  %2532 = vmatpush.bf16.msra.mxu0 %v6579_v21  ;;  %v1591_v58 = vrot.slane %v7154_v34, 3 }
 0x117   : > { %v1321_v9 = vrot.slane %v1319_v33, 2 }
 0x118   : > { %v1317_v32 = vsel %vm1273_vm3, %v1307_v27, %v1316_v6  ;;  %v1322_v27 = vshll.u32 %v7154_v34, 16  ;;  %v1328_v34 = vshrl.u32 %v7165_v48, 16 }
 0x11a   : > { %v1324_v29 = vrot.slane %v1322_v27, 3  ;;  %v1330_v27 = vrot.slane %v1328_v34, 2  ;;  %v7469_v34 = vld [vmem:[%s7039_s22 + $0x4c] sm:$0xff] }
 0x11b   : > { %v892_v35 = vpop.f32.mrf.mxu2  ;;  %v576_v38 = vpop.f32.mrf.mxu0 }
 0x11c   : > { %v1193_v37 = vpop.f32.mrf.mxu3  ;;  %v938_v15 = vadd.f32 %v892_v35, %v709_v18  ;;  %v711_v39 = vpop.f32.mrf.mxu1  ;;  %v6537_v35 = vld [vmem:[%s7039_s22 + $0x2c] sm:$0xff] }
 0x11d   : > { %v712_v42 = vadd.f32 %v711_v39, %v576_v38  ;;  %v2186_v38 = vsel %vm362_vm0, %v2181_v0, %v2185_v11 }
 0x11e   : > { %v7410_v51 = vadd.f32 %v1193_v37, %v938_v15  ;;  %1478 = vmatmul.bf16.gmra.mxu0 %v1308_v40  ;;  %v1590_v37 = vsel %vm1581_vm4, %v1587_v13, %v1589_v7  ;;  %v7434_v40 = vld [vmem:[%s7039_s22 + $0x3c] sm:$0xff] }
 0x11f   : > { %1688 = vmatmul.bf16.gmra.mxu1 %v1588_v46 }
 0x120   : > { %1957 = vmatmul.bf16.gmra.mxu2 %v6536_v28 }
 0x121   : > { %2338 = vmatmul.bf16.gmra.mxu3 %v2178_v50 }
 0x123   : > { %v895_v55 = vpop.f32.mrf.mxu2  ;;  %v578_v36 = vpop.f32.mrf.mxu0 }
 0x124   : > { %v1196_v45 = vpop.f32.mrf.mxu3  ;;  %v939_v5 = vadd.f32 %v895_v55, %v712_v42  ;;  %v713_v53 = vpop.f32.mrf.mxu1 }
 0x125   : > { %v714_v61 = vadd.f32 %v713_v53, %v578_v36  ;;  %v1325_v53 = vor.u32 %v1324_v29, %v1321_v9  ;;  %v6578_v9 = vld [vmem:[%s8835_s1 + $0x218] sm:$0xff] }
 0x126   : > { %v7419_v57 = vadd.f32 %v1196_v45, %v939_v5  ;;  %v2187_v45 = vshrl.u32 %v7415_v52, 16  ;;  %v2191_v5 = vshll.u32 %v7434_v40, 16  ;;  %2533 = vmatpush.bf16.msra.mxu0 %v6578_v9 }
 0x128   : > { %v2189_v22 = vor.u32 %v2187_v45, %v2185_v11  ;;  %v1331_v11 = vshll.u32 %v7165_v48, 16 }
 0x12b   : > { %v897_v12 = vpop.f32.mrf.mxu2  ;;  %v581_v19 = vpop.f32.mrf.mxu0 }
 0x12c   : > { %v1198_v16 = vpop.f32.mrf.mxu3  ;;  %v940_v18 = vadd.f32 %v897_v12, %v714_v61  ;;  %v716_v24 = vpop.f32.mrf.mxu1  ;;  %v2193_v61 = vrot.slane %v2191_v5, 1 }
 0x12d   : > { %v717_v15 = vadd.f32 %v716_v24, %v581_v19  ;;  %v6538_v19 = vld [vmem:[%s7039_s22 + $0x34] sm:$0xff]  ;;  %v1592_v24 = vsel %vm1581_vm4, %v1589_v7, %v1591_v58 }
 0x12e   : > { %v7426_v39 = vadd.f32 %v1198_v16, %v940_v18  ;;  %1483 = vmatmul.bf16.gmra.mxu0 %v1317_v32  ;;  %v1326_v18 = vsel %vm1273_vm3, %v1316_v6, %v1325_v53 }
 0x12f   : > { %1693 = vmatmul.bf16.gmra.mxu1 %v1590_v37 }
 0x130   : > { %1962 = vmatmul.bf16.gmra.mxu2 %v6537_v35  ;;  %v2194_v35 = vsel %vm362_vm0, %v2189_v22, %v2193_v61 }
 0x131   : > { %2343 = vmatmul.bf16.gmra.mxu3 %v2186_v38 }
 0x133   : > { %v900_v13 = vpop.f32.mrf.mxu2  ;;  %v583_v42 = vpop.f32.mrf.mxu0 }
 0x134   : > { %v1201_v28 = vpop.f32.mrf.mxu3  ;;  %v941_v46 = vadd.f32 %v900_v13, %v717_v15  ;;  %v718_v50 = vpop.f32.mrf.mxu1  ;;  %v7450_v15 = vld [vmem:[%s7039_s22 + $0x44] sm:$0xff]  ;;  %v1333_v13 = vrot.slane %v1331_v11, 3 }
 0x135   : > { %v719_v55 = vadd.f32 %v718_v50, %v583_v42  ;;  %v2199_v42 = vshll.u32 %v7450_v15, 16 }
 0x136   : > { %v7438_v36 = vadd.f32 %v1201_v28, %v941_v46  ;;  %v2195_v46 = vshrl.u32 %v7434_v40, 16  ;;  %v1334_v29 = vor.u32 %v1333_v13, %v1330_v27  ;;  %v2203_v27 = vshrl.u32 %v7450_v15, 16 }
 0x137   : > { %v2201_v5 = vrot.slane %v2199_v42, 1  ;;  %v2207_v13 = vshll.u32 %v7469_v34, 16  ;;  %v1595_v42 = vrot.slane %v7173_v59, 3 }
 0x138   : > { %v2197_v45 = vor.u32 %v2195_v46, %v2193_v61  ;;  %v1340_v61 = vshll.u32 %v7173_v59, 16 }
 0x139   : > { %v2205_v9 = vor.u32 %v2203_v27, %v2201_v5 }
 0x13b   : > { %v902_v30 = vpop.f32.mrf.mxu2  ;;  %v586_v12 = vpop.f32.mrf.mxu0 }
 0x13c   : > { %v1203_v3 = vpop.f32.mrf.mxu3  ;;  %v942_v0 = vadd.f32 %v902_v30, %v719_v55  ;;  %v721_v16 = vpop.f32.mrf.mxu1  ;;  %v1593_v55 = vrot.slane %v7165_v48, 3  ;;  %v1337_v48 = vshrl.u32 %v7173_v59, 16  ;;  %v1346_v59 = vshrl.u32 %v7184_v8, 16 }
 0x13d   : > { %v722_v32 = vadd.f32 %v721_v16, %v586_v12  ;;  %v1335_v16 = vsel %vm1273_vm3, %v1325_v53, %v1334_v29 }
 0x13e   : > { %v7445_v37 = vadd.f32 %v1203_v3, %v942_v0  ;;  %1488 = vmatmul.bf16.gmra.mxu0 %v1326_v18  ;;  %v6539_v18 = vld [vmem:[%s7039_s22 + $0x3c] sm:$0xff] }
 0x13f   : > { %1698 = vmatmul.bf16.gmra.mxu1 %v1592_v24 }
 0x140   : > { %1967 = vmatmul.bf16.gmra.mxu2 %v6538_v19  ;;  %v1594_v19 = vsel %vm1581_vm4, %v1591_v58, %v1593_v55 }
 0x141   : > { %2348 = vmatmul.bf16.gmra.mxu3 %v2194_v35 }
 0x143   : > { %v905_v38 = vpop.f32.mrf.mxu2  ;;  %v588_v33 = vpop.f32.mrf.mxu0 }
 0x144   : > { %v1206_v6 = vpop.f32.mrf.mxu3  ;;  %v943_v21 = vadd.f32 %v905_v38, %v722_v32  ;;  %v723_v7 = vpop.f32.mrf.mxu1  ;;  %v2202_v32 = vsel %vm362_vm0, %v2197_v45, %v2201_v5  ;;  %v2209_v45 = vrot.slane %v2207_v13, 1  ;;  %v1349_v5 = vshll.u32 %v7184_v8, 16 }
 0x145   : > { %v724_v28 = vadd.f32 %v723_v7, %v588_v33  ;;  %v1342_v33 = vrot.slane %v1340_v61, 3  ;;  %v7488_v61 = vld [vmem:[%s7039_s22 + $0x54] sm:$0xff] }
 0x146   : > { %v7454_v50 = vadd.f32 %v1206_v6, %v943_v21  ;;  %v1339_v21 = vrot.slane %v1337_v48, 2  ;;  %v2215_v27 = vshll.u32 %v7488_v61, 16 }
 0x148   : > { %v1343_v46 = vor.u32 %v1342_v33, %v1339_v21  ;;  %v1351_v21 = vrot.slane %v1349_v5, 3 }
 0x14b   : > { %v907_v22 = vpop.f32.mrf.mxu2  ;;  %v591_v0 = vpop.f32.mrf.mxu0 }
 0x14c   : > { %v1208_v30 = vpop.f32.mrf.mxu3  ;;  %v944_v3 = vadd.f32 %v907_v22, %v724_v28  ;;  %v726_v12 = vpop.f32.mrf.mxu1 }
 0x14d   : > { %v727_v24 = vadd.f32 %v726_v12, %v591_v0 }
 0x14e   : > { %v7464_v35 = vadd.f32 %v1208_v30, %v944_v3  ;;  %1493 = vmatmul.bf16.gmra.mxu0 %v1335_v16  ;;  %v1344_v16 = vsel %vm1273_vm3, %v1334_v29, %v1343_v46  ;;  %v6577_v29 = vld [vmem:[%s8835_s1 + $0x210] sm:$0xff] }
 0x14f   : > { %1703 = vmatmul.bf16.gmra.mxu1 %v1594_v19  ;;  %v1596_v19 = vsel %vm1581_vm4, %v1593_v55, %v1595_v42  ;;  %2534 = vmatpush.bf16.msra.mxu0 %v6577_v29 }
 0x150   : > { %1972 = vmatmul.bf16.gmra.mxu2 %v6539_v18  ;;  %v6540_v18 = vld [vmem:[%s7039_s22 + $0x44] sm:$0xff] }
 0x151   : > { %2353 = vmatmul.bf16.gmra.mxu3 %v2202_v32  ;;  %v2210_v32 = vsel %vm362_vm0, %v2205_v9, %v2209_v45 }
 0x153   : > { %v910_v11 = vpop.f32.mrf.mxu2  ;;  %v593_v6 = vpop.f32.mrf.mxu0 }
 0x154   : > { %v1211_v53 = vpop.f32.mrf.mxu3  ;;  %v945_v38 = vadd.f32 %v910_v11, %v727_v24  ;;  %v728_v58 = vpop.f32.mrf.mxu1 }
 0x155   : > { %v729_v7 = vadd.f32 %v728_v58, %v593_v6  ;;  %v1348_v58 = vrot.slane %v1346_v59, 2 }
 0x156   : > { %v7473_v28 = vadd.f32 %v1211_v53, %v945_v38 }
 0x157   : > { %v1352_v9 = vor.u32 %v1351_v21, %v1348_v58 }
 0x15b   : > { %v912_v22 = vpop.f32.mrf.mxu2  ;;  %v596_v0 = vpop.f32.mrf.mxu0 }
 0x15c   : > { %v1213_v30 = vpop.f32.mrf.mxu3  ;;  %v946_v3 = vadd.f32 %v912_v22, %v729_v7  ;;  %v731_v12 = vpop.f32.mrf.mxu1  ;;  %v2211_v7 = vshrl.u32 %v7469_v34, 16  ;;  %v1597_v22 = vrot.slane %v7184_v8, 3  ;;  %v1355_v8 = vshrl.u32 %v7192_v20, 16 }
 0x15d   : > { %v732_v24 = vadd.f32 %v731_v12, %v596_v0 }
 0x15e   : > { %v7480_v48 = vadd.f32 %v1213_v30, %v946_v3  ;;  %1498 = vmatmul.bf16.gmra.mxu0 %v1344_v16  ;;  %v2213_v30 = vor.u32 %v2211_v7, %v2209_v45  ;;  %v2217_v3 = vrot.slane %v2215_v27, 1  ;;  %v1598_v59 = vsel %vm1581_vm4, %v1595_v42, %v1597_v22 }
 0x15f   : > { %1708 = vmatmul.bf16.gmra.mxu1 %v1596_v19  ;;  %v1358_v45 = vshll.u32 %v7192_v20, 16  ;;  %v1357_v58 = vrot.slane %v1355_v8, 2  ;;  %v2219_v7 = vshrl.u32 %v7488_v61, 16  ;;  %v6542_v8 = vld [vmem:[%s7039_s22 + $0x54] sm:$0xff] }
 0x160   : > { %1977 = vmatmul.bf16.gmra.mxu2 %v6540_v18  ;;  %v2218_v29 = vsel %vm362_vm0, %v2213_v30, %v2217_v3 }
 0x161   : > { %2358 = vmatmul.bf16.gmra.mxu3 %v2210_v32  ;;  %v6541_v32 = vld [vmem:[%s7039_s22 + $0x4c] sm:$0xff]  ;;  %v1360_v21 = vrot.slane %v1358_v45, 3 }
 0x163   : > { %v915_v55 = vpop.f32.mrf.mxu2  ;;  %v598_v38 = vpop.f32.mrf.mxu0 }
 0x164   : > { %v1216_v11 = vpop.f32.mrf.mxu3  ;;  %v947_v53 = vadd.f32 %v915_v55, %v732_v24  ;;  %v733_v6 = vpop.f32.mrf.mxu1  ;;  %v1353_v24 = vsel %vm1273_vm3, %v1343_v46, %v1352_v9 }
 0x165   : > { %v734_v33 = vadd.f32 %v733_v6, %v598_v38 }
 0x166   : > { %v7492_v13 = vadd.f32 %v1216_v11, %v947_v53  ;;  %v7504_v11 = vld [vmem:[%s7039_s22 + $0x5c] sm:$0xff] }
 0x167   : > { %v2223_v27 = vshll.u32 %v7504_v11, 16 }
 0x16b   : > { %v917_v0 = vpop.f32.mrf.mxu2  ;;  %v601_v18 = vpop.f32.mrf.mxu0 }
 0x16c   : > { %v1218_v12 = vpop.f32.mrf.mxu3  ;;  %v948_v16 = vadd.f32 %v917_v0, %v734_v33  ;;  %v736_v19 = vpop.f32.mrf.mxu1  ;;  %v1361_v0 = vor.u32 %v1360_v21, %v1357_v58 }
 0x16d   : > { %v737_v5 = vadd.f32 %v736_v19, %v601_v18  ;;  %v2225_v18 = vrot.slane %v2223_v27, 1 }
 0x16e   : > { %v7499_v55 = vadd.f32 %v1218_v12, %v948_v16  ;;  %1503 = vmatmul.bf16.gmra.mxu0 %v1353_v24  ;;  %v1599_v12 = vrot.slane %v7192_v20, 3  ;;  %v2221_v16 = vor.u32 %v2219_v7, %v2217_v3 }
 0x16f   : > { %1713 = vmatmul.bf16.gmra.mxu1 %v1598_v59 }
 0x170   : > { %1982 = vmatmul.bf16.gmra.mxu2 %v6541_v32  ;;  %v1600_v45 = vsel %vm1581_vm4, %v1597_v22, %v1599_v12  ;;  %v2226_v20 = vsel %vm362_vm0, %v2221_v16, %v2225_v18  ;;  %v1367_v22 = vshll.u32 %v7206_v47, 16 }
 0x171   : > { %2363 = vmatmul.bf16.gmra.mxu3 %v2218_v29  ;;  %v1362_v29 = vsel %vm1273_vm3, %v1352_v9, %v1361_v0  ;;  %v1364_v9 = vshrl.u32 %v7206_v47, 16 }
 0x172   : > { %v1369_v27 = vrot.slane %v1367_v22, 3 }
 0x173   : > { %v920_v53 = vpop.f32.mrf.mxu2  ;;  %v603_v6 = vpop.f32.mrf.mxu0  ;;  %v1366_v7 = vrot.slane %v1364_v9, 2 }
 0x174   : > { %v1221_v46 = vpop.f32.mrf.mxu3  ;;  %v949_v38 = vadd.f32 %v920_v53, %v737_v5  ;;  %v738_v42 = vpop.f32.mrf.mxu1  ;;  %v6576_v53 = vld [vmem:[%s8835_s1 + $0x208] sm:$0xff] }
 0x175   : > { %v739_v33 = vadd.f32 %v738_v42, %v603_v6  ;;  %2535 = vmatpush.bf16.msra.mxu0 %v6576_v53  ;;  %v7524_v6 = vld [vmem:[%s7039_s22 + $0x64] sm:$0xff] }
 0x176   : > { %v7508_v30 = vadd.f32 %v1221_v46, %v949_v38 }
 0x17b   : > { %v922_v19 = vpop.f32.mrf.mxu2  ;;  %v1469_v59 = vpop.f32.mrf.mxu0 }
 0x17c   : > { %v1223_v24 = vpop.f32.mrf.mxu3  ;;  %v950_v32 = vadd.f32 %v922_v19, %v739_v33  ;;  %v1679_v5 = vpop.f32.mrf.mxu1  ;;  %v1534_v46 = vadd.f32 %v1469_v59, %v7208_v49  ;;  %v2227_v19 = vshrl.u32 %v7504_v11, 16 }
 0x17e   : > { %v7519_v3 = vadd.f32 %v1223_v24, %v950_v32  ;;  %v1744_v38 = vadd.f32 %v1679_v5, %v1534_v46  ;;  %1508 = vmatmul.bf16.gmra.mxu0 %v1362_v29  ;;  %v2231_v24 = vshll.u32 %v7524_v6, 16  ;;  %v1370_v5 = vor.u32 %v1369_v27, %v1366_v7 }
 0x17f   : > { %1718 = vmatmul.bf16.gmra.mxu1 %v1600_v45  ;;  %v1601_v29 = vrot.slane %v7206_v47, 3 }
 0x180   : > { %1987 = vmatmul.bf16.gmra.mxu2 %v6542_v8  ;;  %v2229_v8 = vor.u32 %v2227_v19, %v2225_v18  ;;  %v2233_v45 = vrot.slane %v2231_v24, 1  ;;  %v1371_v22 = vsel %vm1273_vm3, %v1361_v0, %v1370_v5  ;;  %v6618_v0 = vld [vmem:[%s8836_s2 + $0x38] sm:$0xff] }
 0x181   : > { %2368 = vmatmul.bf16.gmra.mxu3 %v2226_v20  ;;  %2888 = vmatpush.bf16.msra.mxu1 %v6618_v0 }
 0x182   : > { %v2234_v47 = vsel %vm362_vm0, %v2229_v8, %v2233_v45 }
 0x183   : > { %v1948_v42 = vpop.f32.mrf.mxu2  ;;  %v1471_v49 = vpop.f32.mrf.mxu0 }
 0x184   : > { %v2329_v58 = vpop.f32.mrf.mxu3  ;;  %v2013_v21 = vadd.f32 %v1948_v42, %v1744_v38  ;;  %v1681_v33 = vpop.f32.mrf.mxu1  ;;  %v1535_v16 = vadd.f32 %v1471_v49, %v7218_v2  ;;  %v6543_v2 = vld [vmem:[%s7039_s22 + $0x5c] sm:$0xff]  ;;  %v1602_v42 = vsel %vm1581_vm4, %v1599_v12, %v1601_v29  ;;  %v1373_v12 = vshrl.u32 %v7235_v17, 16 }
 0x185   : > { %v6635_v49 = vld [vmem:[%s8836_s2 + $0x78] sm:$0xff] }
 0x186   : > { %v7529_v32 = vadd.f32 %v2329_v58, %v2013_v21  ;;  %v1745_v59 = vadd.f32 %v1681_v33, %v1535_v16  ;;  %v6600_v58 = vld [vmem:[%s8837_s3 + $0x38] sm:$0xff]  ;;  %v7551_v33 = vld [vmem:[%s7039_s22 + $0x6c] sm:$0xff]  ;;  %3371 = vmatpush.bf16.msra.mxu3 %v6635_v49 }
 0x187   : > { %3079 = vmatpush.bf16.msra.mxu2 %v6600_v58 }
 0x18b   : > { %v1950_v53 = vpop.f32.mrf.mxu2  ;;  %v1474_v38 = vpop.f32.mrf.mxu0 }
 0x18c   : > { %v2331_v46 = vpop.f32.mrf.mxu3  ;;  %v2014_v20 = vadd.f32 %v1950_v53, %v1745_v59  ;;  %v1684_v9 = vpop.f32.mrf.mxu1  ;;  %v1536_v21 = vadd.f32 %v1474_v38, %v7243_v23  ;;  %v1376_v23 = vshll.u32 %v7235_v17, 16  ;;  %v1375_v59 = vrot.slane %v1373_v12, 2  ;;  %v6575_v38 = vld [vmem:[%s8835_s1 + $0x200] sm:$0xff] }
 0x18d   : > { %2536 = vmatpush.bf16.msra.mxu0 %v6575_v38  ;;  %v6544_v12 = vld [vmem:[%s7039_s22 + $0x64] sm:$0xff] }
 0x18e   : > { %v7540_v18 = vadd.f32 %v2331_v46, %v2014_v20  ;;  %1513 = vmatmul.bf16.gmra.mxu0 %v1371_v22  ;;  %v1746_v7 = vadd.f32 %v1684_v9, %v1536_v21  ;;  %v1378_v8 = vrot.slane %v1376_v23, 3  ;;  %v2235_v46 = vshrl.u32 %v7524_v6, 16 }
 0x18f   : > { %1723 = vmatmul.bf16.gmra.mxu1 %v1602_v42  ;;  %v2239_v20 = vshll.u32 %v7551_v33, 16  ;;  %v1603_v9 = vrot.slane %v7235_v17, 3  ;;  %v1382_v17 = vshrl.u32 %v7296_v4, 16 }
 0x190   : > { %1992 = vmatmul.bf16.gmra.mxu2 %v6543_v2  ;;  %v1379_v22 = vor.u32 %v1378_v8, %v1375_v59  ;;  %v2237_v2 = vor.u32 %v2235_v46, %v2233_v45  ;;  %v1385_v45 = vshll.u32 %v7296_v4, 16 }
 0x191   : > { %2373 = vmatmul.bf16.gmra.mxu3 %v2234_v47  ;;  %v2241_v42 = vrot.slane %v2239_v20, 1  ;;  %v1604_v23 = vsel %vm1581_vm4, %v1601_v29, %v1603_v9  ;;  %v2243_v20 = vshrl.u32 %v7551_v33, 16 }
 0x192   : > { %v1380_v0 = vsel %vm1273_vm3, %v1370_v5, %v1379_v22 }
 0x193   : > { %v1953_v27 = vpop.f32.mrf.mxu2  ;;  %v1476_v19 = vpop.f32.mrf.mxu0 }
 0x194   : > { %v7553_v16 = vadd.f32 %v1953_v27, %v1746_v7  ;;  %v1686_v24 = vpop.f32.mrf.mxu1  ;;  %v1537_v53 = vadd.f32 %v1476_v19, %v7275_v54  ;;  %v2242_v27 = vsel %vm362_vm0, %v2237_v2, %v2241_v42  ;;  %v7572_v19 = vld [vmem:[%s7039_s22 + $0x74] sm:$0xff]  ;;  %v1252_v2 = vld [vmem:[%s7039_s22 + $0x70] sm:$0x7] }
 0x195   : > { %v2247_v38 = vshll.u32 %v7572_v19, 16 }
 0x196   : > { %v1747_v58 = vadd.f32 %v1686_v24, %v1537_v53  ;;  %v1387_v53 = vrot.slane %v1385_v45, 3 }
 0x19b   : > { %v1955_v21 = vpop.f32.mrf.mxu2  ;;  %v1479_v54 = vpop.f32.mrf.mxu0 }
 0x19c   : > { %v7562_v47 = vadd.f32 %v1955_v21, %v1747_v58  ;;  %v1689_v49 = vpop.f32.mrf.mxu1  ;;  %v1538_v7 = vadd.f32 %v1479_v54, %v7304_v10  ;;  %v1384_v10 = vrot.slane %v1382_v17, 2  ;;  %v6599_v58 = vld [vmem:[%s8837_s3 + $0x30] sm:$0xff] }
 0x19d   : > { %v6634_v21 = vld [vmem:[%s8836_s2 + $0x70] sm:$0xff]  ;;  %3080 = vmatpush.bf16.msra.mxu2 %v6599_v58 }
 0x19e   : > { %1518 = vmatmul.bf16.gmra.mxu0 %v1380_v0  ;;  %v1748_v24 = vadd.f32 %v1689_v49, %v1538_v7  ;;  %v6617_v54 = vld [vmem:[%s8836_s2 + $0x30] sm:$0xff]  ;;  %v1605_v49 = vrot.slane %v7296_v4, 3  ;;  %v1271_v0 = vunpack.c.l.b16 %v1252_v2  ;;  %3372 = vmatpush.bf16.msra.mxu3 %v6634_v21 }
 0x19f   : > { %1728 = vmatmul.bf16.gmra.mxu1 %v1604_v23  ;;  %v2249_v23 = vrot.slane %v2247_v38, 1 }
 0x1a0   : > { %1997 = vmatmul.bf16.gmra.mxu2 %v6544_v12  ;;  %v2245_v12 = vor.u32 %v2243_v20, %v2241_v42  ;;  %2889 = vmatpush.bf16.msra.mxu1 %v6617_v54 }
 0x1a1   : > { %2378 = vmatmul.bf16.gmra.mxu3 %v2242_v27  ;;  %v2065_v27 = vld [vmem:[%s7039_s22 + $0x7c] sm:$0x1] }
 0x1a2   : > { %v2250_v42 = vsel %vm362_vm0, %v2245_v12, %v2249_v23  ;;  %v2136_v20 = vunpack.c.l.b16 %v2065_v27 }
 0x1a3   : > { %v1958_v5 = vpop.f32.mrf.mxu2  ;;  %v1481_v29 = vpop.f32.mrf.mxu0 }
 0x1a4   : > { %v7574_v59 = vadd.f32 %v1958_v5, %v1748_v24  ;;  %v1691_v8 = vpop.f32.mrf.mxu1  ;;  %v1539_v46 = vadd.f32 %v1481_v29, %v7334_v44  ;;  %v1388_v44 = vor.u32 %v1387_v53, %v1384_v10  ;;  %v1606_v10 = vsel %vm1581_vm4, %v1603_v9, %v1605_v49 }
 0x1a5   : > { %v1272_v53 = vpack.c.b16 %v1271_v0, %v1271_v0 }
 0x1a6   : > { %8851 = vst [vmem:[#allocation3_spill] sm:$0xff] %v7574_v59  ;;  %v1749_v7 = vadd.f32 %v1691_v8, %v1539_v46  ;;  %v1389_v29 = vsel %vm1273_vm3, %v1379_v22, %v1388_v44  ;;  %v6545_v59 = vld [vmem:[%s7039_s22 + $0x6c] sm:$0xff]  ;;  %v7601_v22 = vpack.c.b16 %v2136_v20, %v2136_v20 }
 0x1a7   : > { %v6598_v8 = vld [vmem:[%s8837_s3 + $0x28] sm:$0xff]  ;;  %v1391_v46 = vshrl.u32 %v1272_v53, 16  ;;  %v1394_v38 = vshll.u32 %v1272_v53, 16 }
 0x1a8   : > { %3081 = vmatpush.bf16.msra.mxu2 %v6598_v8  ;;  %v2255_v27 = vshll.u32 %v7601_v22, 16 }
 0x1a9   : > { %v1393_v0 = vrot.slane %v1391_v46, 2  ;;  %v1396_v12 = vrot.slane %v1394_v38, 3 }
 0x1ab   : > { %v1960_v17 = vpop.f32.mrf.mxu2  ;;  %v1484_v24 = vpop.f32.mrf.mxu0 }
 0x1ac   : > { %v7591_v45 = vadd.f32 %v1960_v17, %v1749_v7  ;;  %v1694_v5 = vpop.f32.mrf.mxu1  ;;  %v1540_v4 = vadd.f32 %v1484_v24, %v7342_v60  ;;  %v6597_v60 = vld [vmem:[%s8837_s3 + $0x20] sm:$0xff]  ;;  %v2251_v7 = vshrl.u32 %v7572_v19, 16  ;;  %v6596_v17 = vld [vmem:[%s8837_s3 + $0x18] sm:$0xff]  ;;  %v1397_v24 = vor.u32 %v1396_v12, %v1393_v0 }
 0x1ad   : > { %3082 = vmatpush.bf16.msra.mxu2 %v6597_v60  ;;  %v6878_v60 = vld [vmem:[%s7039_s22 + $0x14] sm:$0xe]  ;;  %v6593_v12 = vld [vmem:[%s8837_s3] sm:$0xff] }
 0x1ae   : > { %1523 = vmatmul.bf16.gmra.mxu0 %v1389_v29  ;;  %v1750_v9 = vadd.f32 %v1694_v5, %v1540_v4  ;;  %v1607_v5 = vrot.slane %v1272_v53, 3  ;;  %v2253_v29 = vor.u32 %v2251_v7, %v2249_v23  ;;  %v1398_v38 = vsel %vm1273_vm3, %v1388_v44, %v1397_v24  ;;  %v6594_v44 = vld [vmem:[%s8837_s3 + $0x8] sm:$0xff] }
 0x1af   : > { %1733 = vmatmul.bf16.gmra.mxu1 %v1606_v10  ;;  %v2257_v10 = vrot.slane %v2255_v27, 1  ;;  %v6616_v24 = vld [vmem:[%s8836_s2 + $0x28] sm:$0xff] }
 0x1b0   : > { %2002 = vmatmul.bf16.gmra.mxu2 %v6545_v59  ;;  %v1608_v53 = vsel %vm1581_vm4, %v1605_v49, %v1607_v5  ;;  %v5858_v49 = vld [vmem:[%s7039_s22 + $0x14] sm:$0xe]  ;;  %2890 = vmatpush.bf16.msra.mxu1 %v6616_v24 }
 0x1b1   : > { %2383 = vmatmul.bf16.gmra.mxu3 %v2250_v42  ;;  %3083 = vmatpush.bf16.msra.mxu2 %v6596_v17  ;;  %v6879_v17 = vor.u32 %v6878_v60, %v7346_v63 }
 0x1b3   : > { %v1963_v2 = vpop.f32.mrf.mxu2  ;;  %v1486_v21 = vpop.f32.mrf.mxu0 }
 0x1b4   : > { %v7606_v58 = vadd.f32 %v1963_v2, %v1750_v9  ;;  %v1696_v54 = vpop.f32.mrf.mxu1  ;;  %v1541_v59 = vadd.f32 %v1486_v21, %v7352_v31  ;;  %v6595_v31 = vld [vmem:[%s8837_s3 + $0x10] sm:$0xff]  ;;  %v2258_v2 = vsel %vm362_vm0, %v2253_v29, %v2257_v10  ;;  %v6633_v21 = vld [vmem:[%s8836_s2 + $0x68] sm:$0xff]  ;;  %v6584_v29 = vld [vmem:[%s7039_s22 + $0x1c] sm:$0xff] }
 0x1b5   : > { %v6546_v9 = vld [vmem:[%s7039_s22 + $0x74] sm:$0xff]  ;;  %3084 = vmatpush.bf16.msra.mxu2 %v6595_v31  ;;  %3373 = vmatpush.bf16.msra.mxu3 %v6633_v21 }
 0x1b6   : > { %v1751_v4 = vadd.f32 %v1696_v54, %v1541_v59  ;;  %v6583_v54 = vld [vmem:[%s7039_s22 + $0x14] sm:$0xf0] }
 0x1b7   : > { %v5859_v10 = vor.u32 %v6583_v54, %v5858_v49  ;;  %v6585_v54 = vld [vmem:[%s7039_s22 + $0x24] sm:$0xff] }
 0x1b9   : > { %3085 = vmatpush.bf16.msra.mxu2 %v6594_v44  ;;  %v3000_v31 = vrot.slane %v5859_v10, 1 }
 0x1bb   : > { %v1965_v42 = vpop.f32.mrf.mxu2  ;;  %v1489_v8 = vpop.f32.mrf.mxu0 }
 0x1bc   : > { %v7617_v20 = vadd.f32 %v1965_v42, %v1751_v4  ;;  %v1699_v46 = vpop.f32.mrf.mxu1  ;;  %v1542_v23 = vadd.f32 %v1489_v8, %v7365_v56  ;;  %v2441_v4 = vrot.slane %v6879_v17, 1  ;;  %v2442_v42 = vrot.slane %v7360_v14, 1 }
 0x1bd   : > { %3086 = vmatpush.bf16.msra.mxu2 %v6593_v12  ;;  %v3001_v8 = vrot.slane %v6584_v29, 1  ;;  %v3003_v12 = vrot.slane %v6585_v54, 1  ;;  %v6632_v29 = vld [vmem:[%s8836_s2 + $0x60] sm:$0xff] }
 0x1be   : > { %1528 = vmatmul.bf16.gmra.mxu0 %v1398_v38  ;;  %v1752_v56 = vadd.f32 %v1699_v46, %v1542_v23  ;;  %v2443_v23 = vsel %vm762_vm1, %v2441_v4, %v2442_v42  ;;  %3374 = vmatpush.bf16.msra.mxu3 %v6632_v29 }
 0x1bf   : > { %1738 = vmatmul.bf16.gmra.mxu1 %v1608_v53 }
 0x1c0   : > { %2007 = vmatmul.bf16.gmra.mxu2 %v6546_v9 }
 0x1c1   : > { %2388 = vmatmul.bf16.gmra.mxu3 %v2258_v2  ;;  %v3002_v2 = vsel %vm762_vm1, %v3000_v31, %v3001_v8 }
 0x1c3   : > { %v1968_v0 = vpop.f32.mrf.mxu2  ;;  %v1491_v7 = vpop.f32.mrf.mxu0 }
 0x1c4   : > { %v7636_v59 = vadd.f32 %v1968_v0, %v1752_v56  ;;  %v1701_v27 = vpop.f32.mrf.mxu1  ;;  %v1543_v5 = vadd.f32 %v1491_v7, %v7375_v41  ;;  %v2444_v0 = vrot.slane %v7380_v26, 1  ;;  %v6615_v26 = vld [vmem:[%s8836_s2 + $0x20] sm:$0xff] }
 0x1c5   : > { %2891 = vmatpush.bf16.msra.mxu1 %v6615_v26 }
 0x1c6   : > { %v1753_v46 = vadd.f32 %v1701_v27, %v1543_v5  ;;  %v2445_v5 = vsel %vm762_vm1, %v2442_v42, %v2444_v0 }
 0x1cb   : > { %v1970_v38 = vpop.f32.mrf.mxu2  ;;  %v1494_v63 = vpop.f32.mrf.mxu0 }
 0x1cc   : > { %v7645_v9 = vadd.f32 %v1970_v38, %v1753_v46  ;;  %v1704_v53 = vpop.f32.mrf.mxu1  ;;  %v1544_v41 = vadd.f32 %v1494_v63, %v7384_v43 }
 0x1ce   : > { %2537 = vmatmul.bf16.vlgmr.msra.gmra.mxu0 %v2443_v23  ;;  %v1754_v60 = vadd.f32 %v1704_v53, %v1544_v41  ;;  %v6586_v53 = vld [vmem:[%s7039_s22 + $0x2c] sm:$0xff] }
 0x1d0   : > { %3087 = vmatmul.bf16.vlgmr.msra.gmra.mxu2 %v3002_v2 }
 0x1d3   : > { %v1973_v21 = vpop.f32.mrf.mxu2  ;;  %v1496_v44 = vpop.f32.mrf.mxu0 }
 0x1d4   : > { %v7650_v14 = vadd.f32 %v1973_v21, %v1754_v60  ;;  %v1706_v56 = vpop.f32.mrf.mxu1  ;;  %v1545_v49 = vadd.f32 %v1496_v44, %v7391_v62  ;;  %v3004_v62 = vsel %vm762_vm1, %v3001_v8, %v3003_v12  ;;  %v3005_v8 = vrot.slane %v6586_v53, 1 }
 0x1d6   : > { %v1755_v7 = vadd.f32 %v1706_v56, %v1545_v49  ;;  %v3006_v49 = vsel %vm762_vm1, %v3003_v12, %v3005_v8 }
 0x1db   : > { %v1975_v27 = vpop.f32.mrf.mxu2  ;;  %v1499_v43 = vpop.f32.mrf.mxu0 }
 0x1dc   : > { %v7655_v17 = vadd.f32 %v1975_v27, %v1755_v7  ;;  %v1709_v24 = vpop.f32.mrf.mxu1  ;;  %v1546_v10 = vadd.f32 %v1499_v43, %v7403_v25  ;;  %v2446_v25 = vrot.slane %v7396_v1, 1 }
 0x1de   : > { %2542 = vmatmul.bf16.gmra.mxu0 %v2445_v5  ;;  %v1756_v4 = vadd.f32 %v1709_v24, %v1546_v10  ;;  %v2447_v44 = vsel %vm762_vm1, %v2444_v0, %v2446_v25  ;;  %v6587_v24 = vld [vmem:[%s7039_s22 + $0x34] sm:$0xff]  ;;  %v2448_v0 = vrot.slane %v7415_v52, 1 }
 0x1df   : > { %v6631_v5 = vld [vmem:[%s8836_s2 + $0x58] sm:$0xff]  ;;  %v3007_v12 = vrot.slane %v6587_v24, 1 }
 0x1e0   : > { %3092 = vmatmul.bf16.gmra.mxu2 %v3004_v62  ;;  %3375 = vmatpush.bf16.msra.mxu3 %v6631_v5 }
 0x1e3   : > { %v1978_v31 = vpop.f32.mrf.mxu2  ;;  %v1501_v42 = vpop.f32.mrf.mxu0 }
 0x1e4   : > { %v7666_v46 = vadd.f32 %v1978_v31, %v1756_v4  ;;  %v1711_v38 = vpop.f32.mrf.mxu1  ;;  %v1547_v63 = vadd.f32 %v1501_v42, %v7410_v51  ;;  %v2449_v4 = vsel %vm762_vm1, %v2446_v25, %v2448_v0  ;;  %v3008_v42 = vsel %vm762_vm1, %v3005_v8, %v3007_v12 }
 0x1e6   : > { %v1757_v23 = vadd.f32 %v1711_v38, %v1547_v63 }
 0x1eb   : > { %v1980_v41 = vpop.f32.mrf.mxu2  ;;  %v1504_v60 = vpop.f32.mrf.mxu0 }
 0x1ec   : > { %v7671_v2 = vadd.f32 %v1980_v41, %v1757_v23  ;;  %v1714_v21 = vpop.f32.mrf.mxu1  ;;  %v1548_v56 = vadd.f32 %v1504_v60, %v7419_v57  ;;  %v6614_v57 = vld [vmem:[%s8836_s2 + $0x18] sm:$0xff] }
 0x1ed   : > { %2892 = vmatpush.bf16.msra.mxu1 %v6614_v57  ;;  %v6588_v60 = vld [vmem:[%s7039_s22 + $0x3c] sm:$0xff] }
 0x1ee   : > { %2547 = vmatmul.bf16.gmra.mxu0 %v2447_v44  ;;  %v1758_v51 = vadd.f32 %v1714_v21, %v1548_v56  ;;  %v2450_v21 = vrot.slane %v7434_v40, 1  ;;  %v3009_v44 = vrot.slane %v6588_v60, 1  ;;  %v6630_v40 = vld [vmem:[%s8836_s2 + $0x50] sm:$0xff] }
 0x1ef   : > { %3376 = vmatpush.bf16.msra.mxu3 %v6630_v40 }
 0x1f0   : > { %3097 = vmatmul.bf16.gmra.mxu2 %v3006_v49 }
 0x1f3   : > { %v1983_v54 = vpop.f32.mrf.mxu2  ;;  %v1506_v1 = vpop.f32.mrf.mxu0 }
 0x1f4   : > { %v7676_v7 = vadd.f32 %v1983_v54, %v1758_v51  ;;  %v1716_v27 = vpop.f32.mrf.mxu1  ;;  %v1549_v43 = vadd.f32 %v1506_v1, %v7426_v39  ;;  %v2451_v51 = vsel %vm762_vm1, %v2448_v0, %v2450_v21  ;;  %v7700_v54 = vpop.f32.mrf.mxu3 }
 0x1f6   : > { %v1759_v29 = vadd.f32 %v1716_v27, %v1549_v43  ;;  %v3010_v27 = vsel %vm762_vm1, %v3007_v12, %v3009_v44  ;;  %v6589_v12 = vld [vmem:[%s7039_s22 + $0x44] sm:$0xff] }
 0x1fb   : > { %v1985_v10 = vpop.f32.mrf.mxu2  ;;  %v1509_v39 = vpop.f32.mrf.mxu0 }
 0x1fc   : > { %v7687_v62 = vadd.f32 %v1985_v10, %v1759_v29  ;;  %v1719_v26 = vpop.f32.mrf.mxu1  ;;  %v1550_v31 = vadd.f32 %v1509_v39, %v7438_v36  ;;  %v7714_v29 = vpop.f32.mrf.mxu3  ;;  %v2452_v10 = vrot.slane %v7450_v15, 1  ;;  %v3011_v39 = vrot.slane %v6589_v12, 1 }
 0x1fe   : > { %2552 = vmatmul.bf16.gmra.mxu0 %v2449_v4  ;;  %v1760_v38 = vadd.f32 %v1719_v26, %v1550_v31 }
 0x200   : > { %3102 = vmatmul.bf16.gmra.mxu2 %v3008_v42 }
 0x203   : > { %v1988_v52 = vpop.f32.mrf.mxu2  ;;  %v1511_v53 = vpop.f32.mrf.mxu0 }
 0x204   : > { %v7692_v63 = vadd.f32 %v1988_v52, %v1760_v38  ;;  %v1721_v23 = vpop.f32.mrf.mxu1  ;;  %v1551_v41 = vadd.f32 %v1511_v53, %v7445_v37  ;;  %v6613_v37 = vld [vmem:[%s8836_s2 + $0x10] sm:$0xff]  ;;  %v2453_v52 = vsel %vm762_vm1, %v2450_v21, %v2452_v10  ;;  %v6629_v21 = vld [vmem:[%s8836_s2 + $0x48] sm:$0xff] }
 0x205   : > { %2893 = vmatpush.bf16.msra.mxu1 %v6613_v37  ;;  %3377 = vmatpush.bf16.msra.mxu3 %v6629_v21 }
 0x206   : > { %v1761_v56 = vadd.f32 %v1721_v23, %v1551_v41  ;;  %v3012_v23 = vsel %vm762_vm1, %v3009_v44, %v3011_v39 }
 0x20b   : > { %v1990_v25 = vpop.f32.mrf.mxu2  ;;  %v1514_v36 = vpop.f32.mrf.mxu0 }
 0x20c   : > { %v7697_v49 = vadd.f32 %v1990_v25, %v1761_v56  ;;  %v1724_v8 = vpop.f32.mrf.mxu1  ;;  %v1552_v1 = vadd.f32 %v1514_v36, %v7454_v50 }
 0x20e   : > { %2557 = vmatmul.bf16.gmra.mxu0 %v2451_v51  ;;  %v1762_v43 = vadd.f32 %v1724_v8, %v1552_v1  ;;  %v6590_v8 = vld [vmem:[%s7039_s22 + $0x4c] sm:$0xff] }
 0x20f   : > { %v3013_v44 = vrot.slane %v6590_v8, 1 }
 0x210   : > { %3107 = vmatmul.bf16.gmra.mxu2 %v3010_v27 }
 0x213   : > { %v1993_v24 = vpop.f32.mrf.mxu2  ;;  %v1516_v57 = vpop.f32.mrf.mxu0 }
 0x214   : > { %v7710_v5 = vadd.f32 %v1993_v24, %v1762_v43  ;;  %v1726_v50 = vpop.f32.mrf.mxu1  ;;  %v1553_v0 = vadd.f32 %v1516_v57, %v7464_v35  ;;  %v7722_v35 = vpop.f32.mrf.mxu3  ;;  %v6612_v24 = vld [vmem:[%s8836_s2 + $0x8] sm:$0xff] }
 0x215   : > { %2894 = vmatpush.bf16.msra.mxu1 %v6612_v24 }
 0x216   : > { %v1763_v26 = vadd.f32 %v1726_v50, %v1553_v0 }
 0x21b   : > { %v1995_v4 = vpop.f32.mrf.mxu2  ;;  %v1519_v42 = vpop.f32.mrf.mxu0 }
 0x21c   : > { %v7717_v31 = vadd.f32 %v1995_v4, %v1763_v26  ;;  %v1729_v38 = vpop.f32.mrf.mxu1  ;;  %v1554_v53 = vadd.f32 %v1519_v42, %v7473_v28  ;;  %v2454_v28 = vrot.slane %v7469_v34, 1  ;;  %v7732_v1 = vpop.f32.mrf.mxu3  ;;  %v3014_v34 = vsel %vm762_vm1, %v3011_v39, %v3013_v44  ;;  %v6591_v42 = vld [vmem:[%s7039_s22 + $0x54] sm:$0xff] }
 0x21e   : > { %2562 = vmatmul.bf16.gmra.mxu0 %v2453_v52  ;;  %v1764_v41 = vadd.f32 %v1729_v38, %v1554_v53  ;;  %v3015_v52 = vrot.slane %v6591_v42, 1 }
 0x220   : > { %3112 = vmatmul.bf16.gmra.mxu2 %v3012_v23 }
 0x223   : > { %v1998_v15 = vpop.f32.mrf.mxu2  ;;  %v1521_v56 = vpop.f32.mrf.mxu0 }
 0x224   : > { %v7724_v60 = vadd.f32 %v1998_v15, %v1764_v41  ;;  %v1731_v25 = vpop.f32.mrf.mxu1  ;;  %v1555_v36 = vadd.f32 %v1521_v56, %v7480_v48  ;;  %v2455_v48 = vsel %vm762_vm1, %v2452_v10, %v2454_v28  ;;  %v7750_v38 = vpop.f32.mrf.mxu3  ;;  %v3016_v15 = vsel %vm762_vm1, %v3013_v44, %v3015_v52  ;;  %v6611_v56 = vld [vmem:[%s8836_s2] sm:$0xff] }
 0x225   : > { %2895 = vmatpush.bf16.msra.mxu1 %v6611_v56  ;;  %v6592_v44 = vld [vmem:[%s7039_s22 + $0x5c] sm:$0xff] }
 0x226   : > { %v1765_v51 = vadd.f32 %v1731_v25, %v1555_v36 }
 0x22b   : > { %v2000_v27 = vpop.f32.mrf.mxu2  ;;  %v1524_v37 = vpop.f32.mrf.mxu0 }
 0x22c   : > { %v7734_v40 = vadd.f32 %v2000_v27, %v1765_v51  ;;  %v1734_v43 = vpop.f32.mrf.mxu1  ;;  %v1556_v57 = vadd.f32 %v1524_v37, %v7492_v13  ;;  %v2456_v13 = vrot.slane %v7488_v61, 1  ;;  %v6628_v61 = vld [vmem:[%s8836_s2 + $0x40] sm:$0xff]  ;;  %v7764_v25 = vpop.f32.mrf.mxu3  ;;  %v6660_v51 = vld [vmem:[%s8836_s2 + $0xf8] sm:$0xff]  ;;  %v2458_v27 = vrot.slane %v7504_v11, 1 }
 0x22d   : > { %3378 = vmatpush.bf16.msra.mxu3 %v6628_v61  ;;  %v3017_v37 = vrot.slane %v6592_v44, 1  ;;  %3799 = vmatpush.bf16.msrb.mxu2 %v6660_v51  ;;  %v2727_v11 = vld [vmem:[%s7039_s22 + $0x64] sm:$0x1]  ;;  %v6668_v51 = vld [vmem:[%s8836_s2 + $0x138] sm:$0xff] }
 0x22e   : > { %2567 = vmatmul.bf16.gmra.mxu0 %v2455_v48  ;;  %v1766_v50 = vadd.f32 %v1734_v43, %v1556_v57  ;;  %v2457_v23 = vsel %vm762_vm1, %v2454_v28, %v2456_v13  ;;  %v6659_v48 = vld [vmem:[%s8836_s2 + $0xf0] sm:$0xff]  ;;  %v2459_v57 = vsel %vm762_vm1, %v2456_v13, %v2458_v27 }
 0x230   : > { %3117 = vmatmul.bf16.gmra.mxu2 %v3014_v34  ;;  %v6658_v34 = vld [vmem:[%s8836_s2 + $0xe8] sm:$0xff] }
 0x231   : > { %3800 = vmatpush.bf16.msrb.mxu2 %v6659_v48  ;;  %v6643_v48 = vld [vmem:[%s8836_s2 + $0xb8] sm:$0xff]  ;;  %4055 = vmatpush.bf16.msrb.mxu3 %v6668_v51 }
 0x232   : > { %3550 = vmatpush.bf16.msrb.mxu1 %v6643_v48 }
 0x233   : > { %v2003_v0 = vpop.f32.mrf.mxu2  ;;  %v1526_v26 = vpop.f32.mrf.mxu0 }
 0x234   : > { %v7742_v12 = vadd.f32 %v2003_v0, %v1766_v50  ;;  %v7745_v4 = vadd.f32 %v1526_v26, %v7499_v55  ;;  %v7747_v10 = vpop.f32.mrf.mxu1  ;;  %v7776_v43 = vpop.f32.mrf.mxu3  ;;  %v2988_v50 = vunpack.c.l.b16 %v2727_v11  ;;  %v6657_v26 = vld [vmem:[%s8836_s2 + $0xe0] sm:$0xff]  ;;  %v6675_v11 = vld [vmem:[%s8836_s2 + $0x170] sm:$0xff] }
 0x235   : > { %3801 = vmatpush.bf16.msrb.mxu2 %v6658_v34 }
 0x239   : > { %3802 = vmatpush.bf16.msrb.mxu2 %v6657_v26 }
 0x23b   : > { %v7753_v39 = vpop.f32.mrf.mxu2  ;;  %v1529_v53 = vpop.f32.mrf.mxu0 }
 0x23c   : > { %v1558_v41 = vadd.f32 %v1529_v53, %v7508_v30  ;;  %v1739_v55 = vpop.f32.mrf.mxu1  ;;  %v7791_v42 = vpop.f32.mrf.mxu3  ;;  %v2999_v53 = vpack.c.b16 %v2988_v50, %v2988_v50  ;;  %v6653_v50 = vld [vmem:[%s8836_s2 + $0xc0] sm:$0xff] }
 0x23e   : > { %2572 = vmatmul.bf16.gmra.mxu0 %v2457_v23  ;;  %v1768_v36 = vadd.f32 %v1739_v55, %v1558_v41  ;;  %v6656_v55 = vld [vmem:[%s8836_s2 + $0xd8] sm:$0xff]  ;;  %v3019_v61 = vrot.slane %v2999_v53, 1 }
 0x23f   : > { %3803 = vmatpush.bf16.msrb.mxu2 %v6656_v55 }
 0x240   : > { %3122 = vmatmul.bf16.gmra.mxu2 %v3016_v15 }
 0x243   : > { %v2008_v8 = vpop.f32.mrf.mxu2  ;;  %v1531_v21 = vpop.f32.mrf.mxu0 }
 0x244   : > { %v7766_v30 = vadd.f32 %v2008_v8, %v1768_v36  ;;  %v7769_v28 = vadd.f32 %v1531_v21, %v7519_v3  ;;  %v3018_v3 = vsel %vm762_vm1, %v3015_v52, %v3017_v37  ;;  %v3020_v21 = vsel %vm762_vm1, %v3017_v37, %v3019_v61  ;;  %v7808_v44 = vpop.f32.mrf.mxu3  ;;  %v6654_v37 = vld [vmem:[%s8836_s2 + $0xc8] sm:$0xff] }
 0x24b   : > { %v2538_v24 = vpop.f32.mrf.mxu0  ;;  %v7794_v23 = vpop.f32.mrf.mxu2 }
 0x24c   : > { %v2603_v0 = vadd.f32 %v2538_v24, %v7529_v32  ;;  %v2460_v32 = vrot.slane %v7524_v6, 1  ;;  %v2396_v24 = vadd.f32 %v7700_v54, %v7553_v16 }
 0x24e   : > { %2577 = vmatmul.bf16.gmra.mxu0 %v2459_v57  ;;  %v2629_v41 = vmax.f32 %v2603_v0, 0.0  ;;  %v2461_v8 = vsel %vm762_vm1, %v2458_v27, %v2460_v32  ;;  %v6676_v27 = vld [vmem:[%s8836_s2 + $0x178] sm:$0xff] }
 0x24f   : > { %4234 = vmatpush.bf16.msrb.mxu0 %v6676_v27 }
 0x250   : > { %3127 = vmatmul.bf16.gmra.mxu2 %v3018_v3  ;;  %v2397_v3 = vadd.f32 %v7714_v29, %v7562_v47  ;;  %v6674_v47 = vld [vmem:[%s8836_s2 + $0x168] sm:$0xff]  ;;  %v7837_v29 = vpop.f32.mrf.mxu3 }
 0x253   : > { %v2540_v13 = vpop.f32.mrf.mxu0  ;;  %v7810_v6 = vpop.f32.mrf.mxu2  ;;  %4235 = vmatpush.bf16.msrb.mxu0 %v6675_v11 }
 0x254   : > { %v2604_v52 = vadd.f32 %v2540_v13, %v7540_v18  ;;  %v6655_v18 = vld [vmem:[%s8836_s2 + $0xd0] sm:$0xff]  ;;  %v2462_v13 = vrot.slane %v7551_v33, 1 }
 0x255   : > { %3804 = vmatpush.bf16.msrb.mxu2 %v6655_v18  ;;  %v6667_v33 = vld [vmem:[%s8836_s2 + $0x130] sm:$0xff]  ;;  %v6672_v18 = vld [vmem:[%s8836_s2 + $0x158] sm:$0xff] }
 0x256   : > { %v2630_v15 = vmax.f32 %v2604_v52, 0.0  ;;  %v2463_v55 = vsel %vm762_vm1, %v2460_v32, %v2462_v13  ;;  %4056 = vmatpush.bf16.msrb.mxu3 %v6667_v33 }
 0x257   : > { %4236 = vmatpush.bf16.msrb.mxu0 %v6674_v47  ;;  %v6670_v47 = vld [vmem:[%s8836_s2 + $0x148] sm:$0xff] }
 0x258   : > { %v7800_v56 = vpack.c.bf16 %v2630_v15, %v2629_v41  ;;  %v6673_v41 = vld [vmem:[%s8836_s2 + $0x160] sm:$0xff]  ;;  %v7858_v32 = vpop.f32.mrf.mxu3 }
 0x259   : > { %3805 = vmatpush.bf16.msrb.mxu2 %v6654_v37  ;;  %v2399_v37 = vadd.f32 %v7732_v1, %v7591_v45 }
 0x25a   : > { %6728 = vst [vmem:[#allocation2] sm:$0xff] %v7800_v56   ;;  %v3232_v61 = vshll.u32 %v7800_v56, 16 }
 0x25b   : > { %v2543_v36 = vpop.f32.mrf.mxu0  ;;  %v7840_v53 = vpop.f32.mrf.mxu2  ;;  %4237 = vmatpush.bf16.msrb.mxu0 %v6673_v41  ;;  %v2464_v41 = vrot.slane %v7572_v19, 1 }
 0x25c   : > { %v2605_v34 = vadd.f32 %v2543_v36, %v2396_v24  ;;  %v6642_v36 = vld [vmem:[%s8836_s2 + $0xb0] sm:$0xff]  ;;  %v3234_v27 = vrot.slane %v3232_v61, 1  ;;  %v6669_v61 = vld [vmem:[%s8836_s2 + $0x140] sm:$0xff] }
 0x25d   : > { %3806 = vmatpush.bf16.msrb.mxu2 %v6653_v50  ;;  %3551 = vmatpush.bf16.msrb.mxu1 %v6642_v36  ;;  %v2465_v36 = vsel %vm762_vm1, %v2462_v13, %v2464_v41  ;;  %v2401_v13 = vadd.f32 %v7764_v25, %v7617_v20 }
 0x25e   : > { %2582 = vmatmul.bf16.gmra.mxu0 %v2461_v8  ;;  %v2631_v54 = vmax.f32 %v2605_v34, 0.0  ;;  %v8852_v8 = vld [vmem:[#allocation3_spill] sm:$0xff]  ;;  %v3230_v34 = vshrl.u32 %v7800_v56, 16 }
 0x25f   : > { %4238 = vmatpush.bf16.msrb.mxu0 %v6672_v18 }
 0x260   : > { %3132 = vmatmul.bf16.gmra.mxu2 %v3020_v21  ;;  %v2398_v21 = vadd.f32 %v7722_v35, %v8852_v8  ;;  %v7882_v33 = vpop.f32.mrf.mxu3 }
 0x261   : > { %v6601_v57 = vld [vmem:[#allocation2] sm:$0xff] }
 0x262   : > { %2896 = vmatmul.bf16.vlgmr.msra.gmra.mxu1 %v6601_v57 }
 0x263   : > { %v2545_v0 = vpop.f32.mrf.mxu0  ;;  %v7864_v57 = vpop.f32.mrf.mxu2 }
 0x264   : > { %v2606_v16 = vadd.f32 %v2545_v0, %v2397_v3  ;;  %v6671_v3 = vld [vmem:[%s8836_s2 + $0x150] sm:$0xff] }
 0x265   : > { %4239 = vmatpush.bf16.msrb.mxu0 %v6671_v3 }
 0x266   : > { %v2632_v26 = vmax.f32 %v2606_v16, 0.0 }
 0x268   : > { %v6732_v52 = vpack.c.bf16 %v2632_v26, %v2631_v54  ;;  %v3235_v54 = vor.u32 %v3234_v27, %v3230_v34  ;;  %v7904_v25 = vpop.f32.mrf.mxu3 }
 0x269   : > { %4240 = vmatpush.bf16.msrb.mxu0 %v6670_v47 }
 0x26a   : > { %6796 = vst [vmem:[#allocation2 + $0x8] sm:$0xff] %v6732_v52  }
 0x26b   : > { %v2548_v15 = vpop.f32.mrf.mxu0  ;;  %v7887_v19 = vpop.f32.mrf.mxu2 }
 0x26c   : > { %v2607_v24 = vadd.f32 %v2548_v15, %v2398_v21  ;;  %v2400_v21 = vadd.f32 %v7750_v38, %v7606_v58 }
 0x26d   : > { %4241 = vmatpush.bf16.msrb.mxu0 %v6669_v61 }
 0x26e   : > { %2587 = vmatmul.bf16.gmra.mxu0 %v2463_v55  ;;  %v2633_v45 = vmax.f32 %v2607_v24, 0.0 }
 0x271   : > { %v6602_v51 = vld [vmem:[#allocation2 + $0x8] sm:$0xff] }
 0x272   : > { %v7860_v48 = vld [vmem:[#allocation2 + $0x8] sm:$0xff]  ;;  %2901 = vmatmul.bf16.gmra.mxu1 %v6602_v51 }
 0x273   : > { %v2550_v35 = vpop.f32.mrf.mxu0  ;;  %v3237_v11 = vshll.u32 %v7860_v48, 16  ;;  %v3629_v0 = vld [vmem:[#allocation2 + $0x8] sm:$0xc]  ;;  %v7871_v16 = vld [vmem:[#allocation2 + $0xc] sm:$0xf] }
 0x274   : > { %v2608_v50 = vadd.f32 %v2550_v35, %v2399_v37  ;;  %v3688_v56 = vunpack.c.l.b16 %v3629_v0  ;;  %v3689_v15 = vunpack.c.l.b16 %v7871_v16 }
 0x275   : > { %v3239_v26 = vrot.slane %v3237_v11, 1  ;;  %v3241_v11 = vshrl.u32 %v7860_v48, 16 }
 0x276   : > { %v2634_v1 = vmax.f32 %v2608_v50, 0.0  ;;  %v3709_v8 = vpack.c.b16 %v3689_v15, %v3688_v56  ;;  %v8839_v50 = vrot.slane %v7860_v48, 1 }
 0x277   : > { %v3240_v52 = vsel %vm362_vm0, %v3235_v54, %v3239_v26  ;;  %v3243_v61 = vor.u32 %v3241_v11, %v3239_v26  ;;  %v6666_v11 = vld [vmem:[%s8836_s2 + $0x128] sm:$0xff] }
 0x278   : > { %v6737_v55 = vpack.c.bf16 %v2634_v1, %v2633_v45  ;;  %3379 = vmatmul.bf16.vlgmr.msra.gmra.mxu3 %v3240_v52  ;;  %v3900_v51 = vshrl.u32 %v3709_v8, 16  ;;  %v3903_v27 = vshll.u32 %v3709_v8, 16  ;;  %v3720_v34 = vrot.slane %v3709_v8, 2  ;;  %v7907_v8 = vpop.f32.mrf.mxu2 }
 0x279   : > { %4057 = vmatpush.bf16.msrb.mxu3 %v6666_v11 }
 0x27a   : > { %6797 = vst [vmem:[#allocation2 + $0x10] sm:$0xff] %v6737_v55   ;;  %v3902_v54 = vrot.slane %v3900_v51, 2  ;;  %v3905_v45 = vrot.slane %v3903_v27, 3 }
 0x27b   : > { %v2553_v18 = vpop.f32.mrf.mxu0 }
 0x27c   : > { %v2609_v37 = vadd.f32 %v2553_v18, %v2400_v21 }
 0x27e   : > { %2592 = vmatmul.bf16.gmra.mxu0 %v2465_v36  ;;  %v2635_v56 = vmax.f32 %v2609_v37, 0.0 }
 0x281   : > { %v6603_v24 = vld [vmem:[#allocation2 + $0x10] sm:$0xff] }
 0x282   : > { %v7891_v3 = vld [vmem:[#allocation2 + $0x10] sm:$0xff]  ;;  %2906 = vmatmul.bf16.gmra.mxu1 %v6603_v24 }
 0x283   : > { %v7893_v35 = vld [vmem:[#allocation2 + $0x10] sm:$0xff]  ;;  %v2555_v0 = vpop.f32.mrf.mxu0  ;;  %v3721_v58 = vrot.slane %v7891_v3, 2  ;;  %v3908_v52 = vshrl.u32 %v7891_v3, 16  ;;  %v3911_v20 = vshll.u32 %v7891_v3, 16 }
 0x284   : > { %v3245_v38 = vshll.u32 %v7893_v35, 16  ;;  %v2610_v1 = vadd.f32 %v2555_v0, %v2401_v13  ;;  %v3474_v47 = vrot.slane %v7893_v35, 1  ;;  %v2466_v13 = vrot.slane %v7601_v22, 1  ;;  %v6641_v0 = vld [vmem:[%s8836_s2 + $0xa8] sm:$0xff] }
 0x285   : > { %v3722_v55 = vsel %vm1063_vm2, %v3720_v34, %v3721_v58  ;;  %v3910_v51 = vrot.slane %v3908_v52, 2  ;;  %v3913_v27 = vrot.slane %v3911_v20, 3  ;;  %v3906_v34 = vor.u32 %v3905_v45, %v3902_v54  ;;  %3552 = vmatpush.bf16.msrb.mxu1 %v6641_v0  ;;  %v7928_v54 = vpop.f32.mrf.mxu3  ;;  %v7930_v45 = vpop.f32.mrf.mxu2  ;;  %v4134_v20 = vld [vmem:[#allocation2 + $0x8] sm:$0x8] }
 0x286   : > { %v3247_v18 = vrot.slane %v3245_v38, 1  ;;  %v2636_v36 = vmax.f32 %v2610_v1, 0.0  ;;  %3807 = vmatmul.bf16.vlgmr.msrb.gmra.mxu2 %v3722_v55  ;;  %v7912_v21 = vsel %vm762_vm1, %v8839_v50, %v3474_v47  ;;  %v2467_v52 = vsel %vm762_vm1, %v2464_v41, %v2466_v13 }
 0x287   : > { %v3914_v26 = vor.u32 %v3913_v27, %v3910_v51  ;;  %v2402_v22 = vadd.f32 %v7776_v43, %v7636_v59  ;;  %v2403_v41 = vadd.f32 %v7791_v42, %v7645_v9  ;;  %v3249_v59 = vshrl.u32 %v7893_v35, 16 }
 0x288   : > { %v3248_v24 = vsel %vm362_vm0, %v3243_v61, %v3247_v18  ;;  %v6742_v37 = vpack.c.bf16 %v2636_v36, %v2635_v56 }
 0x289   : > { %3384 = vmatmul.bf16.gmra.mxu3 %v3248_v24  ;;  %v7923_v38 = vsel %vm1273_vm3, %v3906_v34, %v3914_v26  ;;  %v4153_v24 = vunpack.c.l.b16 %v4134_v20  ;;  %v3251_v9 = vor.u32 %v3249_v59, %v3247_v18  ;;  %v6640_v59 = vld [vmem:[%s8836_s2 + $0xa0] sm:$0xff] }
 0x28a   : > { %6798 = vst [vmem:[#allocation2 + $0x18] sm:$0xff] %v6742_v37   ;;  %3553 = vmatpush.bf16.msrb.mxu1 %v6640_v59 }
 0x28b   : > { %v2558_v1 = vpop.f32.mrf.mxu0 }
 0x28c   : > { %v2611_v56 = vadd.f32 %v2558_v1, %v2402_v22 }
 0x28d   : > { %v7954_v18 = vpop.f32.mrf.mxu2 }
 0x28e   : > { %2597 = vmatmul.bf16.gmra.mxu0 %v2467_v52  ;;  %v2637_v0 = vmax.f32 %v2611_v56, 0.0  ;;  %v7951_v56 = vpop.f32.mrf.mxu3 }
 0x291   : > { %v6604_v55 = vld [vmem:[#allocation2 + $0x18] sm:$0xff] }
 0x292   : > { %v7932_v61 = vld [vmem:[#allocation2 + $0x18] sm:$0xff]  ;;  %2911 = vmatmul.bf16.gmra.mxu1 %v6604_v55 }
 0x293   : > { %v7934_v36 = vld [vmem:[#allocation2 + $0x18] sm:$0xff]  ;;  %v2560_v51 = vpop.f32.mrf.mxu0  ;;  %v3723_v27 = vrot.slane %v7932_v61, 2  ;;  %v3917_v34 = vshrl.u32 %v7932_v61, 16  ;;  %v3920_v11 = vshll.u32 %v7932_v61, 16 }
 0x294   : > { %v3253_v43 = vshll.u32 %v7934_v36, 16  ;;  %v2612_v13 = vadd.f32 %v2560_v51, %v2403_v41  ;;  %v3476_v37 = vrot.slane %v7934_v36, 1  ;;  %v4154_v41 = vpack.c.b16 %v3689_v15, %v4153_v24 }
 0x295   : > { %v3724_v1 = vsel %vm1063_vm2, %v3721_v58, %v3723_v27  ;;  %v3919_v35 = vrot.slane %v3917_v34, 2  ;;  %v3922_v55 = vrot.slane %v3920_v11, 3  ;;  %v4156_v58 = vrot.slane %v7891_v3, 3 }
 0x296   : > { %v3255_v42 = vrot.slane %v3253_v43, 1  ;;  %v2638_v52 = vmax.f32 %v2612_v13, 0.0  ;;  %3812 = vmatmul.bf16.gmra.mxu2 %v3724_v1  ;;  %v7946_v22 = vsel %vm762_vm1, %v3474_v47, %v3476_v37  ;;  %v6665_v47 = vld [vmem:[%s8836_s2 + $0x120] sm:$0xff]  ;;  %v4155_v43 = vrot.slane %v4154_v41, 3  ;;  %v7974_v1 = vpop.f32.mrf.mxu3 }
 0x297   : > { %v3923_v50 = vor.u32 %v3922_v55, %v3919_v35  ;;  %4058 = vmatpush.bf16.msrb.mxu3 %v6665_v47  ;;  %v2404_v24 = vadd.f32 %v7808_v44, %v7650_v14  ;;  %v3257_v35 = vshrl.u32 %v7934_v36, 16  ;;  %v7979_v14 = vpop.f32.mrf.mxu2 }
 0x298   : > { %v3256_v20 = vsel %vm362_vm0, %v3251_v9, %v3255_v42  ;;  %v6747_v51 = vpack.c.bf16 %v2638_v52, %v2637_v0  ;;  %v4157_v3 = vsel %vm1581_vm4, %v4155_v43, %v4156_v58  ;;  %v2405_v0 = vadd.f32 %v7837_v29, %v7655_v17 }
 0x299   : > { %3389 = vmatmul.bf16.gmra.mxu3 %v3256_v20  ;;  %v7963_v16 = vsel %vm1273_vm3, %v3914_v26, %v3923_v50 }
 0x29a   : > { %6799 = vst [vmem:[#allocation2 + $0x20] sm:$0xff] %v6747_v51   ;;  %v3259_v51 = vor.u32 %v3257_v35, %v3255_v42 }
 0x29b   : > { %v2563_v15 = vpop.f32.mrf.mxu0 }
 0x29c   : > { %v2613_v26 = vadd.f32 %v2563_v15, %v2404_v24 }
 0x29e   : > { %4242 = vmatmul.bf16.vlgmr.msrb.gmra.mxu0 %v4157_v3  ;;  %v2639_v47 = vmax.f32 %v2613_v26, 0.0 }
 0x29f   : > { %v7996_v35 = vpop.f32.mrf.mxu2 }
 0x2a1   : > { %v6605_v13 = vld [vmem:[#allocation2 + $0x20] sm:$0xff] }
 0x2a2   : > { %v7968_v34 = vld [vmem:[#allocation2 + $0x20] sm:$0xff]  ;;  %2916 = vmatmul.bf16.gmra.mxu1 %v6605_v13 }
 0x2a3   : > { %v7970_v11 = vld [vmem:[#allocation2 + $0x20] sm:$0xff]  ;;  %v2565_v9 = vpop.f32.mrf.mxu0  ;;  %v3725_v52 = vrot.slane %v7968_v34, 2  ;;  %v3926_v29 = vshrl.u32 %v7968_v34, 16  ;;  %v3929_v36 = vshll.u32 %v7968_v34, 16 }
 0x2a4   : > { %v3261_v55 = vshll.u32 %v7970_v11, 16  ;;  %v2614_v44 = vadd.f32 %v2565_v9, %v2405_v0  ;;  %v3478_v20 = vrot.slane %v7970_v11, 1  ;;  %v7993_v9 = vpop.f32.mrf.mxu3 }
 0x2a5   : > { %v3726_v41 = vsel %vm1063_vm2, %v3723_v27, %v3725_v52  ;;  %v3928_v3 = vrot.slane %v3926_v29, 2  ;;  %v3931_v13 = vrot.slane %v3929_v36, 3  ;;  %v4158_v27 = vrot.slane %v7932_v61, 3  ;;  %v6639_v61 = vld [vmem:[%s8836_s2 + $0x98] sm:$0xff] }
 0x2a6   : > { %v3263_v17 = vrot.slane %v3261_v55, 1  ;;  %v2640_v59 = vmax.f32 %v2614_v44, 0.0  ;;  %3817 = vmatmul.bf16.gmra.mxu2 %v3726_v41  ;;  %v7985_v15 = vsel %vm762_vm1, %v3476_v37, %v3478_v20  ;;  %v6664_v55 = vld [vmem:[%s8836_s2 + $0x118] sm:$0xff]  ;;  %v2406_v44 = vadd.f32 %v7858_v32, %v7666_v46  ;;  %3554 = vmatpush.bf16.msrb.mxu1 %v6639_v61 }
 0x2a7   : > { %v3932_v42 = vor.u32 %v3931_v13, %v3928_v3  ;;  %v4159_v37 = vsel %vm1581_vm4, %v4156_v58, %v4158_v27  ;;  %4059 = vmatpush.bf16.msrb.mxu3 %v6664_v55  ;;  %v3265_v36 = vshrl.u32 %v7970_v11, 16  ;;  %v8015_v46 = vld [vmem:[#allocation2 + $0x1c] sm:$0xff] }
 0x2a8   : > { %v3264_v43 = vsel %vm362_vm0, %v3259_v51, %v3263_v17  ;;  %v6752_v24 = vpack.c.bf16 %v2640_v59, %v2639_v47  ;;  %v2407_v51 = vadd.f32 %v7882_v33, %v7671_v2 }
 0x2a9   : > { %3394 = vmatmul.bf16.gmra.mxu3 %v3264_v43  ;;  %v7991_v26 = vsel %vm1273_vm3, %v3923_v50, %v3932_v42 }
 0x2aa   : > { %6800 = vst [vmem:[#allocation2 + $0x28] sm:$0xff] %v6752_v24  }
 0x2ab   : > { %v2568_v0 = vpop.f32.mrf.mxu0 }
 0x2ac   : > { %v2615_v29 = vadd.f32 %v2568_v0, %v2406_v44  ;;  %v8026_v44 = vpop.f32.mrf.mxu3 }
 0x2ae   : > { %4247 = vmatmul.bf16.gmra.mxu0 %v4159_v37  ;;  %v3267_v37 = vor.u32 %v3265_v36, %v3263_v17  ;;  %v2641_v0 = vmax.f32 %v2615_v29, 0.0  ;;  %v8031_v17 = vpop.f32.mrf.mxu2 }
 0x2af   : > { %8854 = vst [vmem:[#allocation4_spill] sm:$0xff] %v8031_v17 }
 0x2b1   : > { %v6606_v50 = vld [vmem:[#allocation2 + $0x28] sm:$0xff] }
 0x2b2   : > { %v8006_v41 = vld [vmem:[#allocation2 + $0x28] sm:$0xff]  ;;  %2921 = vmatmul.bf16.gmra.mxu1 %v6606_v50 }
 0x2b3   : > { %v8008_v58 = vld [vmem:[#allocation2 + $0x28] sm:$0xff]  ;;  %v2570_v47 = vpop.f32.mrf.mxu0  ;;  %v3727_v59 = vrot.slane %v8006_v41, 2  ;;  %v3935_v33 = vshrl.u32 %v8006_v41, 16  ;;  %v3938_v61 = vshll.u32 %v8006_v41, 16 }
 0x2b4   : > { %v3269_v43 = vshll.u32 %v8008_v58, 16  ;;  %v8017_v32 = vld [vmem:[#allocation2 + $0x24] sm:$0xff]  ;;  %v2616_v3 = vadd.f32 %v2570_v47, %v2407_v51  ;;  %v3480_v24 = vrot.slane %v8008_v58, 1  ;;  %v8840_v47 = vrot.slane %v8015_v46, 1 }
 0x2b5   : > { %v3728_v13 = vsel %vm1063_vm2, %v3725_v52, %v3727_v59  ;;  %v3937_v51 = vrot.slane %v3935_v33, 2  ;;  %v4873_v52 = vrot.slane %v8017_v32, 1  ;;  %v3940_v29 = vrot.slane %v3938_v61, 3 }
 0x2b6   : > { %v3271_v2 = vrot.slane %v3269_v43, 1  ;;  %v2642_v55 = vmax.f32 %v2616_v3, 0.0  ;;  %3822 = vmatmul.bf16.gmra.mxu2 %v3728_v13  ;;  %v8023_v11 = vsel %vm762_vm1, %v3478_v20, %v3480_v24  ;;  %v4160_v43 = vrot.slane %v7968_v34, 3 }
 0x2b7   : > { %8853 = vst [vmem:[#allocation3_spill] sm:$0xff] %v8023_v11  ;;  %v8037_v20 = vsel %vm762_vm1, %v8840_v47, %v4873_v52  ;;  %v3941_v3 = vor.u32 %v3940_v29, %v3937_v51  ;;  %v2408_v34 = vadd.f32 %v7904_v25, %v7676_v7  ;;  %v6638_v29 = vld [vmem:[%s8836_s2 + $0x90] sm:$0xff]  ;;  %v3273_v25 = vshrl.u32 %v8008_v58, 16 }
 0x2b8   : > { %v3272_v50 = vsel %vm362_vm0, %v3267_v37, %v3271_v2  ;;  %v6757_v36 = vpack.c.bf16 %v2642_v55, %v2641_v0  ;;  %8855 = vst [vmem:[#allocation5_spill] sm:$0xff] %v8037_v20  ;;  %v4161_v33 = vsel %vm1581_vm4, %v4158_v27, %v4160_v43  ;;  %v6663_v0 = vld [vmem:[%s8836_s2 + $0x110] sm:$0xff]  ;;  %v8048_v55 = vpop.f32.mrf.mxu3  ;;  %v8056_v27 = vpop.f32.mrf.mxu2  ;;  %3555 = vmatpush.bf16.msrb.mxu1 %v6638_v29 }
 0x2b9   : > { %3399 = vmatmul.bf16.gmra.mxu3 %v3272_v50  ;;  %v8040_v37 = vsel %vm1273_vm3, %v3932_v42, %v3941_v3  ;;  %v2409_v42 = vadd.f32 %v7928_v54, %v7687_v62  ;;  %8857 = vst [vmem:[#allocation7_spill] sm:$0xff] %v8056_v27 }
 0x2ba   : > { %6801 = vst [vmem:[#allocation2 + $0x30] sm:$0xff] %v6757_v36   ;;  %4060 = vmatpush.bf16.msrb.mxu3 %v6663_v0 }
 0x2bb   : > { %v2573_v13 = vpop.f32.mrf.mxu0  ;;  %8856 = vst [vmem:[#allocation6_spill] sm:$0xff] %v8040_v37 }
 0x2bc   : > { %v2617_v36 = vadd.f32 %v2573_v13, %v2408_v34  ;;  %v3275_v13 = vor.u32 %v3273_v25, %v3271_v2  ;;  %v4162_v2 = vrot.slane %v8006_v41, 3 }
 0x2be   : > { %4252 = vmatmul.bf16.gmra.mxu0 %v4161_v33  ;;  %v2643_v27 = vmax.f32 %v2617_v36, 0.0 }
 0x2c0   : > { %v8079_v36 = vpop.f32.mrf.mxu3 }
 0x2c1   : > { %v6607_v61 = vld [vmem:[#allocation2 + $0x30] sm:$0xff] }
 0x2c2   : > { %v8050_v50 = vld [vmem:[#allocation2 + $0x30] sm:$0xff]  ;;  %2926 = vmatmul.bf16.gmra.mxu1 %v6607_v61 }
 0x2c3   : > { %v8052_v51 = vld [vmem:[#allocation2 + $0x30] sm:$0xff]  ;;  %v2575_v33 = vpop.f32.mrf.mxu0  ;;  %v3729_v7 = vrot.slane %v8050_v50, 2  ;;  %v3944_v37 = vshrl.u32 %v8050_v50, 16  ;;  %v3947_v58 = vshll.u32 %v8050_v50, 16 }
 0x2c4   : > { %v3277_v0 = vshll.u32 %v8052_v51, 16  ;;  %v8064_v47 = vld [vmem:[#allocation2 + $0x2c] sm:$0xff]  ;;  %v2618_v20 = vadd.f32 %v2575_v33, %v2409_v42  ;;  %v3482_v62 = vrot.slane %v8052_v51, 1 }
 0x2c5   : > { %v3730_v54 = vsel %vm1063_vm2, %v3727_v59, %v3729_v7  ;;  %v3946_v42 = vrot.slane %v3944_v37, 2  ;;  %v4875_v29 = vrot.slane %v8064_v47, 1  ;;  %v3949_v59 = vrot.slane %v3947_v58, 3 }
 0x2c6   : > { %v3279_v34 = vrot.slane %v3277_v0, 1  ;;  %v2644_v61 = vmax.f32 %v2618_v20, 0.0  ;;  %3827 = vmatmul.bf16.gmra.mxu2 %v3730_v54  ;;  %v8070_v11 = vsel %vm762_vm1, %v3480_v24, %v3482_v62  ;;  %v8081_v0 = vpop.f32.mrf.mxu2  ;;  %v4163_v37 = vsel %vm1581_vm4, %v4160_v43, %v4162_v2 }
 0x2c7   : > { %8858 = vst [vmem:[#allocation8_spill] sm:$0xff] %v8070_v11  ;;  %v8077_v25 = vsel %vm762_vm1, %v4873_v52, %v4875_v29  ;;  %v3950_v20 = vor.u32 %v3949_v59, %v3946_v42  ;;  %v3281_v42 = vshrl.u32 %v8052_v51, 16 }
 0x2c8   : > { %v3280_v17 = vsel %vm362_vm0, %v3275_v13, %v3279_v34  ;;  %v6762_v33 = vpack.c.bf16 %v2644_v61, %v2643_v27  ;;  %8859 = vst [vmem:[#allocation9_spill] sm:$0xff] %v8077_v25  ;;  %v2411_v13 = vadd.f32 %v7974_v1, %v7697_v49  ;;  %v8101_v59 = vpop.f32.mrf.mxu3 }
 0x2c9   : > { %3404 = vmatmul.bf16.gmra.mxu3 %v3280_v17  ;;  %8860 = vst [vmem:[#allocation10_spill] sm:$0xff] %v8081_v0  ;;  %v8084_v54 = vsel %vm1273_vm3, %v3941_v3, %v3950_v20  ;;  %v2410_v17 = vadd.f32 %v7951_v56, %v7692_v63  ;;  %v3283_v25 = vor.u32 %v3281_v42, %v3279_v34 }
 0x2ca   : > { %6802 = vst [vmem:[#allocation2 + $0x38] sm:$0xff] %v6762_v33  }
 0x2cb   : > { %v2578_v24 = vpop.f32.mrf.mxu0  ;;  %8861 = vst [vmem:[#allocation11_spill] sm:$0xff] %v8084_v54 }
 0x2cc   : > { %v2619_v61 = vadd.f32 %v2578_v24, %v2410_v17 }
 0x2ce   : > { %4257 = vmatmul.bf16.gmra.mxu0 %v4163_v37  ;;  %v8105_v24 = vpop.f32.mrf.mxu2  ;;  %v2645_v17 = vmax.f32 %v2619_v61, 0.0 }
 0x2cf   : > { %8862 = vst [vmem:[#allocation12_spill] sm:$0xff] %v8105_v24 }
 0x2d1   : > { %v6608_v41 = vld [vmem:[#allocation2 + $0x38] sm:$0xff] }
 0x2d2   : > { %v8089_v27 = vld [vmem:[#allocation2 + $0x38] sm:$0xff]  ;;  %2931 = vmatmul.bf16.gmra.mxu1 %v6608_v41 }
 0x2d3   : > { %v8091_v52 = vld [vmem:[#allocation2 + $0x38] sm:$0xff]  ;;  %v2580_v58 = vpop.f32.mrf.mxu0  ;;  %v3731_v3 = vrot.slane %v8089_v27, 2  ;;  %v3953_v1 = vshrl.u32 %v8089_v27, 16 }
 0x2d4   : > { %v3285_v43 = vshll.u32 %v8091_v52, 16  ;;  %v8098_v33 = vld [vmem:[#allocation2 + $0x34] sm:$0xff]  ;;  %v2620_v63 = vadd.f32 %v2580_v58, %v2411_v13  ;;  %v3484_v56 = vrot.slane %v8091_v52, 1  ;;  %v3956_v13 = vshll.u32 %v8089_v27, 16 }
 0x2d5   : > { %v3732_v37 = vsel %vm1063_vm2, %v3729_v7, %v3731_v3  ;;  %v3955_v54 = vrot.slane %v3953_v1, 2  ;;  %v4877_v11 = vrot.slane %v8098_v33, 1  ;;  %v8113_v7 = vpop.f32.mrf.mxu1 }
 0x2d6   : > { %v3287_v49 = vrot.slane %v3285_v43, 1  ;;  %v2646_v41 = vmax.f32 %v2620_v63, 0.0  ;;  %3832 = vmatmul.bf16.gmra.mxu2 %v3732_v37  ;;  %v8108_v51 = vsel %vm762_vm1, %v3482_v62, %v3484_v56  ;;  %v3958_v42 = vrot.slane %v3956_v13, 3  ;;  %v6662_v62 = vld [vmem:[%s8836_s2 + $0x108] sm:$0xff]  ;;  %v8138_v13 = vpop.f32.mrf.mxu2 }
 0x2d7   : > { %8863 = vst [vmem:[#allocation13_spill] sm:$0xff] %v8108_v51  ;;  %v8841_v43 = vrot.slane %v8050_v50, 3  ;;  %v8117_v61 = vsel %vm762_vm1, %v4875_v29, %v4877_v11  ;;  %4061 = vmatpush.bf16.msrb.mxu3 %v6662_v62 }
 0x2d8   : > { %v3288_v58 = vsel %vm362_vm0, %v3283_v25, %v3287_v49  ;;  %v6767_v34 = vpack.c.bf16 %v2646_v41, %v2645_v17  ;;  %8864 = vst [vmem:[#allocation14_spill] sm:$0xff] %v8117_v61  ;;  %v6637_v25 = vld [vmem:[%s8836_s2 + $0x88] sm:$0xff]  ;;  %v3959_v63 = vor.u32 %v3958_v42, %v3955_v54  ;;  %v8131_v17 = vpop.f32.mrf.mxu3  ;;  %v6636_v41 = vld [vmem:[%s8836_s2 + $0x80] sm:$0xff]  ;;  %v2412_v54 = vadd.f32 %v7993_v9, %v7710_v5 }
 0x2d9   : > { %3409 = vmatmul.bf16.gmra.mxu3 %v3288_v58  ;;  %3556 = vmatpush.bf16.msrb.mxu1 %v6637_v25  ;;  %v4165_v29 = vsel %vm1581_vm4, %v4162_v2, %v8841_v43  ;;  %8866 = vst [vmem:[#allocation16_spill] sm:$0xff] %v8138_v13  ;;  %v2413_v2 = vadd.f32 %v8026_v44, %v7717_v31  ;;  %v3289_v5 = vshrl.u32 %v8091_v52, 16 }
 0x2da   : > { %6803 = vst [vmem:[#allocation2 + $0x40] sm:$0xff] %v6767_v34   ;;  %v8126_v1 = vsel %vm1273_vm3, %v3950_v20, %v3959_v63 }
 0x2db   : > { %v2583_v37 = vpop.f32.mrf.mxu0  ;;  %8865 = vst [vmem:[#allocation15_spill] sm:$0xff] %v8126_v1  ;;  %v6694_v1 = vld [vmem:[%s8836_s2 + $0x1b8] sm:$0xff]  ;;  %v3291_v44 = vor.u32 %v3289_v5, %v3287_v49 }
 0x2dc   : > { %v2621_v62 = vadd.f32 %v2583_v37, %v2412_v54  ;;  %4458 = vmatpush.bf16.msra.mxu0 %v6694_v1 }
 0x2dd   : > { %3557 = vmatpush.bf16.msrb.mxu1 %v6636_v41 }
 0x2de   : > { %4262 = vmatmul.bf16.gmra.mxu0 %v4165_v29  ;;  %v2647_v54 = vmax.f32 %v2621_v62, 0.0 }
 0x2df   : > { %v8140_v58 = vpop.f32.mrf.mxu1 }
 0x2e1   : > { %v6609_v20 = vld [vmem:[#allocation2 + $0x40] sm:$0xff]  ;;  %6811 = vmatpush.bf16.msra.mxu1 %v6694_v1  ;;  %v8183_v1 = vld [vmem:[%s8836_s2 + $0x1f8] sm:$0xff] }
 0x2e2   : > { %v8142_v34 = vld [vmem:[#allocation2 + $0x40] sm:$0xff]  ;;  %2936 = vmatmul.bf16.gmra.mxu1 %v6609_v20  ;;  %6819 = vmatpush.bf16.msra.mxu2 %v8183_v1 }
 0x2e3   : > { %v8144_v42 = vld [vmem:[#allocation2 + $0x40] sm:$0xff]  ;;  %v2585_v25 = vpop.f32.mrf.mxu0  ;;  %v8845_v29 = vrot.slane %v8142_v34, 2  ;;  %v3962_v52 = vshrl.u32 %v8142_v34, 16 }
 0x2e4   : > { %v3293_v9 = vshll.u32 %v8144_v42, 16  ;;  %v8151_v43 = vld [vmem:[#allocation2 + $0x3c] sm:$0xff]  ;;  %v2622_v61 = vadd.f32 %v2585_v25, %v2413_v2  ;;  %v8844_v41 = vrot.slane %v8144_v42, 1  ;;  %v3965_v25 = vshll.u32 %v8142_v34, 16 }
 0x2e5   : > { %8867 = vst [vmem:[#allocation17_spill] sm:$0xff] %v8151_v43  ;;  %v3734_v31 = vsel %vm1063_vm2, %v3731_v3, %v8845_v29  ;;  %v3964_v3 = vrot.slane %v3962_v52, 2  ;;  %v8843_v49 = vrot.slane %v8151_v43, 1  ;;  %v6661_v52 = vld [vmem:[%s8836_s2 + $0x100] sm:$0xff]  ;;  %v3297_v29 = vshrl.u32 %v8144_v42, 16 }
 0x2e6   : > { %v8160_v37 = vrot.slane %v3293_v9, 1  ;;  %v2648_v20 = vmax.f32 %v2622_v61, 0.0  ;;  %3837 = vmatmul.bf16.gmra.mxu2 %v3734_v31  ;;  %v8166_v2 = vsel %vm762_vm1, %v3484_v56, %v8844_v41  ;;  %v6693_v61 = vld [vmem:[%s8836_s2 + $0x1b0] sm:$0xff]  ;;  %v3967_v62 = vrot.slane %v3965_v25, 3  ;;  %v8177_v56 = vpop.f32.mrf.mxu3  ;;  %4062 = vmatpush.bf16.msrb.mxu3 %v6661_v52 }
 0x2e7   : > { %8868 = vst [vmem:[#allocation18_spill] sm:$0xff] %v8166_v2  ;;  %v8172_v9 = vpop.f32.mrf.mxu1  ;;  %v8842_v31 = vrot.slane %v8089_v27, 3  ;;  %4459 = vmatpush.bf16.msra.mxu0 %v6693_v61  ;;  %6812 = vmatpush.bf16.msra.mxu1 %v6693_v61  ;;  %v2414_v61 = vadd.f32 %v8048_v55, %v7724_v60  ;;  %v8232_v60 = vld [vmem:[%s8836_s2 + $0x1e8] sm:$0xff]  ;;  %v8875_v24 = vrot.slane %v8144_v42, 1 }
 0x2e8   : > { %v3296_v51 = vsel %vm362_vm0, %v3291_v44, %v8160_v37  ;;  %v6772_v5 = vpack.c.bf16 %v2648_v20, %v2647_v54  ;;  %v8188_v44 = vsel %vm762_vm1, %v4877_v11, %v8843_v49  ;;  %v8195_v54 = vor.u32 %v3967_v62, %v3964_v3  ;;  %v6692_v11 = vld [vmem:[%s8836_s2 + $0x1a8] sm:$0xff]  ;;  %v8213_v62 = vld [vmem:[%s8836_s2 + $0x1f0] sm:$0xff] }
 0x2e9   : > { %3414 = vmatmul.bf16.gmra.mxu3 %v3296_v51  ;;  %8869 = vst [vmem:[#allocation19_spill] sm:$0xff] %v8188_v44  ;;  %v8190_v51 = vpop.f32.mrf.mxu2  ;;  %6820 = vmatpush.bf16.msra.mxu2 %v8213_v62 }
 0x2ea   : > { %8870 = vst [vmem:[#allocation20_spill] sm:$0xff] %v8190_v51  ;;  %v8203_v25 = vsel %vm1273_vm3, %v3959_v63, %v8195_v54  ;;  %v3299_v51 = vor.u32 %v3297_v29, %v8160_v37 }
 0x2eb   : > { %6804 = vst [vmem:[#allocation2 + $0x48] sm:$0xff] %v6772_v5   ;;  %v2588_v20 = vpop.f32.mrf.mxu0  ;;  %v8872_v5 = vrot.slane %v8050_v50, 3  ;;  %4460 = vmatpush.bf16.msra.mxu0 %v6692_v11  ;;  %v6691_v50 = vld [vmem:[%s8836_s2 + $0x1a0] sm:$0xff]  ;;  %6813 = vmatpush.bf16.msra.mxu1 %v6692_v11 }
 0x2ec   : > { %8871 = vst [vmem:[#allocation21_spill] sm:$0xff] %v8203_v25  ;;  %v2623_v49 = vadd.f32 %v2588_v20, %v2414_v61  ;;  %v6690_v20 = vld [vmem:[%s8836_s2 + $0x198] sm:$0xff] }
 0x2ed   : > { %v4167_v3 = vsel %vm1581_vm4, %v8872_v5, %v8842_v31  ;;  %6821 = vmatpush.bf16.msra.mxu2 %v8232_v60 }
 0x2ee   : > { %4267 = vmatmul.bf16.gmra.mxu0 %v4167_v3  ;;  %v2415_v3 = vadd.f32 %v8079_v36, %v7734_v40  ;;  %v8234_v55 = vpop.f32.mrf.mxu3 }
 0x2ef   : > { %v8218_v63 = vpop.f32.mrf.mxu1  ;;  %4461 = vmatpush.bf16.msra.mxu0 %v6691_v50  ;;  %6814 = vmatpush.bf16.msra.mxu1 %v6691_v50  ;;  %v2649_v50 = vmax.f32 %v2623_v49, 0.0 }
 0x2f1   : > { %v8241_v40 = vpop.f32.mrf.mxu2 }
 0x2f2   : > { %v6610_v52 = vld [vmem:[#allocation2 + $0x48] sm:$0xff]  ;;  %8873 = vst [vmem:[#allocation22_spill] sm:$0xff] %v8241_v40 }
 0x2f3   : > { %v8223_v5 = vld [vmem:[#allocation2 + $0x48] sm:$0xff]  ;;  %v2590_v41 = vpop.f32.mrf.mxu0  ;;  %2941 = vmatmul.bf16.gmra.mxu1 %v6610_v52  ;;  %v8874_v52 = vrot.slane %v8142_v34, 2  ;;  %4462 = vmatpush.bf16.msra.mxu0 %v6690_v20 }
 0x2f4   : > { %v8225_v31 = vld [vmem:[#allocation2 + $0x48] sm:$0xff]  ;;  %v8846_v11 = vrot.slane %v8223_v5, 2  ;;  %v2624_v36 = vadd.f32 %v2590_v41, %v2415_v3  ;;  %v8259_v41 = vld [vmem:[%s8836_s2 + $0x1e0] sm:$0xff]  ;;  %v3971_v3 = vshrl.u32 %v8223_v5, 16  ;;  %v3974_v29 = vshll.u32 %v8223_v5, 16  ;;  %6815 = vmatpush.bf16.msra.mxu1 %v6690_v20  ;;  %v8301_v20 = vld [vmem:[%s8836_s2 + $0x238] sm:$0xff] }
 0x2f5   : > { %v3301_v44 = vshll.u32 %v8225_v31, 16  ;;  %v8239_v25 = vld [vmem:[#allocation2 + $0x44] sm:$0xff]  ;;  %v8847_v61 = vrot.slane %v8225_v31, 1  ;;  %6822 = vmatpush.bf16.msra.mxu2 %v8259_v41  ;;  %6827 = vmatpush.bf16.msra.mxu3 %v8301_v20 }
 0x2f6   : > { %v3736_v2 = vsel %vm1063_vm2, %v8874_v52, %v8846_v11  ;;  %v2650_v40 = vmax.f32 %v2624_v36, 0.0  ;;  %v8850_v11 = vrot.slane %v8239_v25, 1  ;;  %v3976_v42 = vrot.slane %v3974_v29, 3  ;;  %v6808_v36 = vld [vmem:[#allocation2] sm:$0xf0] }
 0x2f7   : > { %v8254_v13 = vrot.slane %v3301_v44, 1  ;;  %3842 = vmatmul.bf16.gmra.mxu2 %v3736_v2  ;;  %v8267_v52 = vsel %vm762_vm1, %v8875_v24, %v8847_v61  ;;  %v3973_v44 = vrot.slane %v3971_v3, 2  ;;  %v8273_v49 = vpop.f32.mrf.mxu1  ;;  %v6689_v24 = vld [vmem:[%s8836_s2 + $0x190] sm:$0xff]  ;;  %v6809_v61 = vld [vmem:[#allocation2] sm:$0xe] }
 0x2f8   : > { %8876 = vst [vmem:[#allocation23_spill] sm:$0xff] %v8267_v52  ;;  %v6777_v0 = vpack.c.bf16 %v2650_v40, %v2649_v50  ;;  %v8877_v40 = vrot.slane %v8151_v43, 1  ;;  %v3089_v50 = vadd.f32 %v7810_v6, %v8140_v58  ;;  %4463 = vmatpush.bf16.msra.mxu0 %v6689_v24  ;;  %v6688_v6 = vld [vmem:[%s8836_s2 + $0x188] sm:$0xff]  ;;  %v8882_v58 = vrot.slane %v8089_v27, 3  ;;  %6816 = vmatpush.bf16.msra.mxu1 %v6689_v24 }
 0x2f9   : > { %v3304_v37 = vsel %vm362_vm0, %v3299_v51, %v8254_v13  ;;  %v8283_v51 = vld [vmem:[%s8836_s2 + $0x1d8] sm:$0xff]  ;;  %v8294_v29 = vor.u32 %v3976_v42, %v3973_v44  ;;  %v8326_v44 = vld [vmem:[%s8836_s2 + $0x1d0] sm:$0xff] }
 0x2fa   : > { %3419 = vmatmul.bf16.gmra.mxu3 %v3304_v37  ;;  %v8290_v3 = vsel %vm762_vm1, %v8877_v40, %v8850_v11  ;;  %6805 = vst [vmem:[#allocation2 + $0x50] sm:$0xff] %v6777_v0   ;;  %v1767_v37 = vadd.f32 %v7747_v10, %v7745_v4  ;;  %v6810_v40 = vor.u32 %v6809_v61, %v6808_v36  ;;  %v8881_v0 = vrot.slane %v8142_v34, 3  ;;  %v8321_v61 = vpop.f32.mrf.mxu2 }
 0x2fb   : > { %8878 = vst [vmem:[#allocation24_spill] sm:$0xff] %v8290_v3  ;;  %v2593_v2 = vpop.f32.mrf.mxu0  ;;  %v3380_v52 = vpop.f32.mrf.mxu3  ;;  %6823 = vmatpush.bf16.msra.mxu2 %v8283_v51  ;;  %v8312_v4 = vsel %vm1273_vm3, %v8195_v54, %v8294_v29 }
 0x2fc   : > { %v8303_v43 = vadd.f32 %v3380_v52, %v3089_v50  ;;  %8880 = vst [vmem:[#allocation26_spill] sm:$0xff] %v8312_v4  ;;  %v2036_v10 = vadd.f32 %v7753_v39, %v1767_v37  ;;  %v4169_v52 = vsel %vm1581_vm4, %v8882_v58, %v8881_v0  ;;  %4464 = vmatpush.bf16.msra.mxu0 %v6688_v6  ;;  %v3471_v27 = vrot.slane %v6810_v40, 1  ;;  %v6687_v50 = vld [vmem:[%s8836_s2 + $0x180] sm:$0xff] }
 0x2fd   : > { %v2416_v39 = vadd.f32 %v8101_v59, %v7742_v12  ;;  %6817 = vmatpush.bf16.msra.mxu1 %v6688_v6  ;;  %v3091_v37 = vadd.f32 %v7840_v53, %v8172_v9  ;;  %v8883_v12 = vrot.slane %v7860_v48, 1 }
 0x2fe   : > { %8879 = vst [vmem:[#allocation25_spill] sm:$0xff] %v8303_v43  ;;  %4272 = vmatmul.bf16.gmra.mxu0 %v4169_v52  ;;  %v2417_v42 = vadd.f32 %v8131_v17, %v2036_v10  ;;  %v8347_v17 = vld [vmem:[%s8836_s2 + $0x1c8] sm:$0xff] }
 0x2ff   : > { %v8330_v54 = vpop.f32.mrf.mxu1  ;;  %6824 = vmatpush.bf16.msra.mxu2 %v8326_v44  ;;  %v2625_v0 = vadd.f32 %v2593_v2, %v2416_v39  ;;  %v3473_v59 = vsel %vm762_vm1, %v3471_v27, %v8883_v12  ;;  %v8361_v27 = vld [vmem:[%s8836_s2 + $0x1c0] sm:$0xff] }
 0x300   : > { %4465 = vmatpush.bf16.msra.mxu0 %v6687_v50 }
 0x301   : > { %v8334_v24 = vld [vmem:[#allocation2 + $0x50] sm:$0xff]  ;;  %6818 = vmatpush.bf16.msra.mxu1 %v6687_v50  ;;  %v4170_v50 = vrot.slane %v8223_v5, 3 }
 0x302   : > { %v3158_v36 = vld [vmem:[#allocation2 + $0x50] sm:$0x1]  ;;  %v3737_v52 = vrot.slane %v8334_v24, 2  ;;  %v3980_v53 = vshrl.u32 %v8334_v24, 16  ;;  %v3983_v48 = vshll.u32 %v8334_v24, 16  ;;  %v8370_v3 = vpop.f32.mrf.mxu2 }
 0x303   : > { %v3217_v40 = vunpack.c.l.b16 %v3158_v36  ;;  %v2595_v10 = vpop.f32.mrf.mxu0  ;;  %v3382_v58 = vpop.f32.mrf.mxu3  ;;  %3558 = vmatmul.bf16.vlgmr.msrb.gmra.mxu1 %v3473_v59  ;;  %v8350_v6 = vld [vmem:[#allocation2 + $0x4c] sm:$0xff]  ;;  %6825 = vmatpush.bf16.msra.mxu2 %v8347_v17  ;;  %v8885_v36 = vrot.slane %v8223_v5, 2  ;;  %v2651_v59 = vmax.f32 %v2625_v0, 0.0  ;;  %v8886_v0 = vrot.slane %v8225_v31, 1 }
 0x304   : > { %v2626_v9 = vadd.f32 %v2595_v10, %v2417_v42  ;;  %v8354_v2 = vadd.f32 %v3382_v58, %v3091_v37  ;;  %4770 = vmatpush.bf16.msrb.mxu0 %v8183_v1  ;;  %v3305_v42 = vshrl.u32 %v8225_v31, 16  ;;  %v3982_v37 = vrot.slane %v3980_v53, 2 }
 0x305   : > { %v3228_v39 = vpack.c.b16 %v3217_v40, %v3217_v40  ;;  %v3738_v12 = vsel %vm1063_vm2, %v8885_v36, %v3737_v52  ;;  %v3985_v58 = vrot.slane %v3983_v48, 3  ;;  %v4883_v11 = vrot.slane %v8350_v6, 1 }
 0x306   : > { %8884 = vst [vmem:[#allocation27_spill] sm:$0xff] %v8354_v2  ;;  %v2652_v40 = vmax.f32 %v2626_v9, 0.0  ;;  %v3307_v4 = vor.u32 %v3305_v42, %v8254_v13  ;;  %v8887_v9 = vrot.slane %v8239_v25, 1  ;;  %v3094_v13 = vadd.f32 %v7864_v57, %v8218_v63 }
 0x307   : > { %3847 = vmatmul.bf16.gmra.mxu2 %v3738_v12  ;;  %v3309_v1 = vshll.u32 %v3228_v39, 16  ;;  %v3490_v10 = vrot.slane %v3228_v39, 1  ;;  %v8372_v43 = vpop.f32.mrf.mxu1  ;;  %v8383_v48 = vor.u32 %v3985_v58, %v3982_v37  ;;  %v1769_v12 = vadd.f32 %v8113_v7, %v7769_v28  ;;  %v8412_v7 = vld [vmem:[%s8836_s2 + $0x230] sm:$0xff] }
 0x308   : > { %v6782_v2 = vpack.c.bf16 %v2652_v40, %v2651_v59  ;;  %4771 = vmatpush.bf16.msrb.mxu0 %v8213_v62  ;;  %6826 = vmatpush.bf16.msra.mxu2 %v8361_v27  ;;  %v8388_v39 = vsel %vm762_vm1, %v8887_v9, %v4883_v11  ;;  %v8888_v63 = vrot.slane %v8142_v34, 3  ;;  %v3096_v40 = vadd.f32 %v7887_v19, %v8273_v49 }
 0x309   : > { %v3311_v36 = vrot.slane %v3309_v1, 1  ;;  %v8381_v53 = vsel %vm762_vm1, %v8886_v0, %v3490_v10  ;;  %v8398_v37 = vsel %vm1273_vm3, %v8294_v29, %v8383_v48  ;;  %v2038_v57 = vadd.f32 %v7794_v23, %v1769_v12  ;;  %6828 = vmatpush.bf16.msra.mxu3 %v8412_v7 }
 0x30a   : > { %6806 = vst [vmem:[#allocation2 + $0x58] sm:$0xff] %v6782_v2   ;;  %v4171_v28 = vsel %vm1581_vm4, %v8888_v63, %v4170_v50  ;;  %v2418_v29 = vadd.f32 %v8177_v56, %v7766_v30  ;;  %v8425_v1 = vpop.f32.mrf.mxu2  ;;  %v3101_v5 = vadd.f32 %v7930_v45, %v8372_v43 }
 0x30b   : > { %v3312_v62 = vsel %vm362_vm0, %v3307_v4, %v3311_v36  ;;  %v2598_v31 = vpop.f32.mrf.mxu0  ;;  %v2419_v23 = vadd.f32 %v8234_v55, %v2038_v57 }
 0x30c   : > { %3424 = vmatmul.bf16.gmra.mxu3 %v3312_v62  ;;  %v3385_v42 = vpop.f32.mrf.mxu3  ;;  %4772 = vmatpush.bf16.msrb.mxu0 %v8232_v60  ;;  %v2627_v10 = vadd.f32 %v2598_v31, %v2418_v29  ;;  %v3099_v29 = vadd.f32 %v7907_v8, %v8330_v54 }
 0x30d   : > { %v8400_v59 = vadd.f32 %v3385_v42, %v3094_v13 }
 0x30e   : > { %4277 = vmatmul.bf16.gmra.mxu0 %v4171_v28  ;;  %v2653_v49 = vmax.f32 %v2627_v10, 0.0 }
 0x30f   : > { %v8416_v4 = vpop.f32.mrf.mxu1 }
 0x310   : > { %4773 = vmatpush.bf16.msrb.mxu0 %v8259_v41 }
 0x311   : > { %v3649_v34 = vld [vmem:[#allocation2 + $0x58] sm:$0x3] }
 0x312   : > { %v3878_v60 = vld [vmem:[#allocation2 + $0x58] sm:$0x7]  ;;  %v3708_v58 = vunpack.c.l.b16 %v3649_v34 }
 0x313   : > { %v8421_v2 = vld [vmem:[#allocation2 + $0x54] sm:$0xff]  ;;  %v3897_v30 = vunpack.c.l.b16 %v3878_v60  ;;  %v2600_v56 = vpop.f32.mrf.mxu0  ;;  %3563 = vmatmul.bf16.gmra.mxu1 %v7912_v21 }
 0x314   : > { %v3387_v36 = vpop.f32.mrf.mxu3  ;;  %v4885_v41 = vrot.slane %v8421_v2, 1  ;;  %v2628_v0 = vadd.f32 %v2600_v56, %v2419_v23  ;;  %v3719_v9 = vpack.c.b16 %v3708_v58, %v3708_v58  ;;  %4774 = vmatpush.bf16.msrb.mxu0 %v8283_v51  ;;  %v8476_v56 = vld [vmem:[%s8836_s2 + $0x228] sm:$0xff] }
 0x315   : > { %v8429_v55 = vadd.f32 %v3387_v36, %v3096_v40  ;;  %v8431_v13 = vpack.c.b16 %v3897_v30, %v3897_v30  ;;  %v8449_v40 = vpop.f32.mrf.mxu2  ;;  %6829 = vmatpush.bf16.msra.mxu3 %v8476_v56 }
 0x316   : > { %v8435_v19 = vsel %vm762_vm1, %v4883_v11, %v4885_v41  ;;  %v2654_v62 = vmax.f32 %v2628_v0, 0.0  ;;  %v3739_v12 = vrot.slane %v3719_v9, 2  ;;  %v4172_v11 = vrot.slane %v8334_v24, 3 }
 0x317   : > { %v3989_v31 = vshrl.u32 %v8431_v13, 16  ;;  %v3992_v21 = vshll.u32 %v8431_v13, 16  ;;  %v2914_v57 = vpop.f32.mrf.mxu1  ;;  %v4644_v24 = vshll.u32 %v8017_v32, 16  ;;  %v4640_v0 = vshrl.u32 %v8015_v46, 16 }
 0x318   : > { %v6787_v42 = vpack.c.bf16 %v2654_v62, %v2653_v49  ;;  %v3740_v63 = vsel %vm1063_vm2, %v3737_v52, %v3739_v12  ;;  %4775 = vmatpush.bf16.msrb.mxu0 %v8326_v44  ;;  %v4173_v44 = vsel %vm1581_vm4, %v4170_v50, %v4172_v11 }
 0x319   : > { %v3991_v28 = vrot.slane %v3989_v31, 2  ;;  %3852 = vmatmul.bf16.gmra.mxu2 %v3740_v63  ;;  %v3994_v51 = vrot.slane %v3992_v21, 3  ;;  %v4646_v45 = vrot.slane %v4644_v24, 1  ;;  %v3104_v63 = vadd.f32 %v7954_v18, %v8416_v4 }
 0x31a   : > { %6807 = vst [vmem:[#allocation2 + $0x60] sm:$0xff] %v6787_v42   ;;  %v4174_v42 = vrot.slane %v8431_v13, 3  ;;  %v6715_v13 = vld [vmem:[%s8836_s2 + $0x218] sm:$0xff]  ;;  %v4652_v4 = vshll.u32 %v8064_v47, 16 }
 0x31b   : > { %v8447_v23 = vpop.f32.mrf.mxu0  ;;  %v3995_v60 = vor.u32 %v3994_v51, %v3991_v28  ;;  %v6716_v51 = vld [vmem:[%s8836_s2 + $0x220] sm:$0xff] }
 0x31c   : > { %4063 = vmatmul.bf16.vlgmr.msrb.gmra.mxu3 %v7923_v38  ;;  %v3390_v34 = vpop.f32.mrf.mxu3  ;;  %4776 = vmatpush.bf16.msrb.mxu0 %v8347_v17  ;;  %v4636_v38 = vshll.u32 %v8015_v46, 16 }
 0x31d   : > { %v8451_v52 = vadd.f32 %v3390_v34, %v3099_v29  ;;  %v8459_v8 = vsel %vm1273_vm3, %v8383_v48, %v3995_v60  ;;  %v4175_v34 = vsel %vm1581_vm4, %v4172_v11, %v4174_v42  ;;  %6830 = vmatpush.bf16.msra.mxu3 %v6716_v51  ;;  %v3106_v60 = vadd.f32 %v7979_v14, %v2914_v57  ;;  %v6714_v11 = vld [vmem:[%s8836_s2 + $0x210] sm:$0xff]  ;;  %v6713_v14 = vld [vmem:[%s8836_s2 + $0x208] sm:$0xff] }
 0x31e   : > { %4282 = vmatmul.bf16.gmra.mxu0 %v4173_v44  ;;  %v8468_v17 = vrot.slane %v4636_v38, 1  ;;  %v6677_v42 = vld [vmem:[#allocation2 + $0x14] sm:$0xff] }
 0x31f   : > { %v2917_v54 = vpop.f32.mrf.mxu1 }
 0x320   : > { %4777 = vmatpush.bf16.msrb.mxu0 %v8361_v27  ;;  %v4642_v49 = vor.u32 %v4640_v0, %v8468_v17 }
 0x321   : > { %v8464_v10 = vld [vmem:[#allocation2 + $0x5c] sm:$0xff]  ;;  %v4557_v58 = vld [vmem:[#allocation2 + $0x64] sm:$0x1]  ;;  %6831 = vmatpush.bf16.msra.mxu3 %v6715_v13 }
 0x322   : > { %v4616_v50 = vunpack.c.l.b16 %v4557_v58  ;;  %v4887_v27 = vrot.slane %v8464_v10, 1  ;;  %v4647_v31 = vsel %vm362_vm0, %v4642_v49, %v4646_v45  ;;  %v4648_v58 = vshrl.u32 %v8017_v32, 16 }
 0x323   : > { %v8470_v30 = vpop.f32.mrf.mxu0  ;;  %3568 = vmatmul.bf16.gmra.mxu1 %v7946_v22  ;;  %v8488_v22 = vpop.f32.mrf.mxu2  ;;  %v3109_v49 = vadd.f32 %v7996_v35, %v2917_v54  ;;  %v8889_v35 = vld [vmem:[#allocation4_spill] sm:$0xff] }
 0x324   : > { %v3392_v48 = vpop.f32.mrf.mxu3  ;;  %v8482_v43 = vpack.c.b16 %v4616_v50, %v4616_v50  ;;  %v8486_v9 = vsel %vm762_vm1, %v4885_v41, %v4887_v27  ;;  %v4650_v50 = vor.u32 %v4648_v58, %v4646_v45 }
 0x325   : > { %v8479_v36 = vadd.f32 %v3392_v48, %v3101_v5  ;;  %v4654_v5 = vrot.slane %v4652_v4, 1  ;;  %6832 = vmatpush.bf16.msra.mxu3 %v6714_v11  ;;  %v8891_v4 = vld [vmem:[#allocation3_spill] sm:$0xff] }
 0x326   : > { %v4889_v62 = vrot.slane %v8482_v43, 1 }
 0x327   : > { %v2919_v12 = vpop.f32.mrf.mxu1  ;;  %v4655_v48 = vsel %vm362_vm0, %v4650_v50, %v4654_v5  ;;  %v4656_v50 = vshrl.u32 %v8064_v47, 16 }
 0x328   : > { %v8494_v21 = vsel %vm762_vm1, %v4887_v27, %v4889_v62  ;;  %v4537_v27 = vld [vmem:[#allocation2 + $0x14] sm:$0xff]   ;;  %v6712_v62 = vld [vmem:[%s8836_s2 + $0x200] sm:$0xff]  ;;  %v3111_v54 = vadd.f32 %v8889_v35, %v2919_v12 }
 0x329   : > { %4783 = vmatmul.bf16.vlgmr.msra.gmra.mxu2 %v4647_v31  ;;  %6833 = vmatpush.bf16.msra.mxu3 %v6713_v14 }
 0x32b   : > { %v8500_v41 = vpop.f32.mrf.mxu0  ;;  %v8511_v18 = vpop.f32.mrf.mxu2 }
 0x32c   : > { %4068 = vmatmul.bf16.gmra.mxu3 %v7963_v16  ;;  %v3395_v28 = vpop.f32.mrf.mxu3 }
 0x32d   : > { %v8505_v29 = vadd.f32 %v3395_v28, %v3104_v63  ;;  %6834 = vmatpush.bf16.msra.mxu3 %v6712_v62  ;;  %v4660_v28 = vshll.u32 %v8098_v33, 16 }
 0x32e   : > { %4287 = vmatmul.bf16.gmra.mxu0 %v4175_v34 }
 0x32f   : > { %v2922_v16 = vpop.f32.mrf.mxu1 }
 0x333   : > { %v8515_v44 = vpop.f32.mrf.mxu0  ;;  %3573 = vmatmul.bf16.gmra.mxu1 %v7985_v15  ;;  %v8528_v15 = vld [vmem:[#allocation2 + $0x14] sm:$0xf0]  ;;  %v8530_v0 = vpop.f32.mrf.mxu2 }
 0x334   : > { %v3397_v38 = vpop.f32.mrf.mxu3 }
 0x335   : > { %v8521_v24 = vadd.f32 %v3397_v38, %v3106_v60  ;;  %v4631_v60 = vshll.u32 %v4537_v27, 16 }
 0x337   : > { %v2924_v57 = vpop.f32.mrf.mxu1 }
 0x339   : > { %4788 = vmatmul.bf16.gmra.mxu2 %v4655_v48  ;;  %v4658_v48 = vor.u32 %v4656_v50, %v4654_v5 }
 0x33b   : > { %v8534_v32 = vpop.f32.mrf.mxu0  ;;  %v8548_v38 = vpop.f32.mrf.mxu2 }
 0x33c   : > { %4073 = vmatmul.bf16.gmra.mxu3 %v7991_v26  ;;  %v3400_v45 = vpop.f32.mrf.mxu3 }
 0x33d   : > { %v8539_v31 = vadd.f32 %v3400_v45, %v3109_v49  ;;  %v4633_v49 = vrot.slane %v4631_v60, 1 }
 0x33e   : > { %4466 = vmatmul.bf16.vlgmr.msra.gmra.mxu0 %v6677_v42  ;;  %v8892_v42 = vld [vmem:[#allocation7_spill] sm:$0xff] }
 0x33f   : > { %4949 = vmatpush.bf16.msra.mxu0 %v8301_v20  ;;  %v2927_v63 = vpop.f32.mrf.mxu1  ;;  %v4662_v20 = vrot.slane %v4660_v28, 1  ;;  %v3114_v35 = vadd.f32 %v8892_v42, %v2922_v16  ;;  %v8895_v16 = vld [vmem:[#allocation10_spill] sm:$0xff] }
 0x340   : > { %v3116_v50 = vadd.f32 %v8895_v16, %v2924_v57 }
 0x341   : > { %v4663_v45 = vsel %vm362_vm0, %v4658_v48, %v4662_v20  ;;  %v6881_v48 = vld [vmem:[#allocation2 + $0x14] sm:$0xe] }
 0x343   : > { %v8544_v26 = vpop.f32.mrf.mxu0  ;;  %4950 = vmatpush.bf16.msra.mxu0 %v8412_v7  ;;  %3578 = vmatmul.bf16.gmra.mxu1 %v8891_v4  ;;  %v4629_v7 = vshrl.u32 %v4537_v27, 16  ;;  %v8893_v4 = vld [vmem:[#allocation6_spill] sm:$0xff]  ;;  %v8563_v5 = vpop.f32.mrf.mxu2  ;;  %v8894_v27 = vld [vmem:[#allocation17_spill] sm:$0xff] }
 0x344   : > { %8890 = vst [vmem:[#allocation4_spill] sm:$0xff] %v8544_v26  ;;  %v3402_v34 = vpop.f32.mrf.mxu3  ;;  %v4668_v60 = vshll.u32 %v8894_v27, 16 }
 0x345   : > { %v8550_v58 = vadd.f32 %v3402_v34, %v3111_v54  ;;  %v4634_v34 = vor.u32 %v4633_v49, %v4629_v7  ;;  %v8896_v49 = vld [vmem:[#allocation8_spill] sm:$0xff] }
 0x346   : > { %v4670_v42 = vrot.slane %v4668_v60, 1 }
 0x347   : > { %4951 = vmatpush.bf16.msra.mxu0 %v8476_v56  ;;  %v2929_v12 = vpop.f32.mrf.mxu1  ;;  %v4639_v56 = vsel %vm362_vm0, %v4634_v34, %v8468_v17  ;;  %v4664_v17 = vshrl.u32 %v8098_v33, 16  ;;  %v8897_v34 = vld [vmem:[#allocation12_spill] sm:$0xff] }
 0x349   : > { %4793 = vmatmul.bf16.gmra.mxu2 %v4663_v45 }
 0x34b   : > { %v8557_v26 = vpop.f32.mrf.mxu0  ;;  %4952 = vmatpush.bf16.msra.mxu0 %v6716_v51 }
 0x34c   : > { %4078 = vmatmul.bf16.gmra.mxu3 %v8893_v4  ;;  %v3405_v54 = vpop.f32.mrf.mxu3  ;;  %v8574_v4 = vpop.f32.mrf.mxu2 }
 0x34d   : > { %v8559_v47 = vadd.f32 %v3405_v54, %v3114_v35  ;;  %v4666_v35 = vor.u32 %v4664_v17, %v4662_v20 }
 0x34e   : > { %4778 = vmatmul.bf16.vlgmr.msrb.gmra.mxu0 %v4639_v56  ;;  %v8898_v56 = vld [vmem:[#allocation11_spill] sm:$0xff] }
 0x34f   : > { %4953 = vmatpush.bf16.msra.mxu0 %v6715_v13  ;;  %v2932_v28 = vpop.f32.mrf.mxu1  ;;  %v6882_v13 = vor.u32 %v6881_v48, %v8528_v15  ;;  %v4671_v57 = vsel %vm362_vm0, %v4666_v35, %v4670_v42  ;;  %v4676_v48 = vshll.u32 %v8239_v25, 16 }
 0x351   : > { %v4870_v33 = vrot.slane %v6882_v13, 1 }
 0x353   : > { %v8567_v45 = vpop.f32.mrf.mxu0  ;;  %4954 = vmatpush.bf16.msra.mxu0 %v6714_v11  ;;  %3583 = vmatmul.bf16.gmra.mxu1 %v8896_v49  ;;  %v3119_v11 = vadd.f32 %v8897_v34, %v2927_v63  ;;  %v8901_v63 = vld [vmem:[#allocation16_spill] sm:$0xff] }
 0x354   : > { %v3407_v51 = vpop.f32.mrf.mxu3  ;;  %v3121_v49 = vadd.f32 %v8901_v63, %v2929_v12 }
 0x355   : > { %v8570_v7 = vadd.f32 %v3407_v51, %v3116_v50  ;;  %v8587_v51 = vpop.f32.mrf.mxu2 }
 0x357   : > { %4955 = vmatpush.bf16.msra.mxu0 %v6713_v14  ;;  %v2934_v54 = vpop.f32.mrf.mxu1  ;;  %v8900_v14 = vrot.slane %v8015_v46, 1  ;;  %v4678_v46 = vrot.slane %v4676_v48, 1  ;;  %v8907_v48 = vld [vmem:[#allocation22_spill] sm:$0xff] }
 0x359   : > { %4798 = vmatmul.bf16.gmra.mxu2 %v4671_v57  ;;  %v4872_v15 = vsel %vm762_vm1, %v4870_v33, %v8900_v14  ;;  %v4672_v57 = vshrl.u32 %v8894_v27, 16  ;;  %v8905_v14 = vld [vmem:[#allocation15_spill] sm:$0xff]  ;;  %v4684_v27 = vshll.u32 %v8350_v6, 16 }
 0x35b   : > { %v8579_v16 = vpop.f32.mrf.mxu0  ;;  %4956 = vmatpush.bf16.msra.mxu0 %v6712_v62  ;;  %v8903_v62 = vld [vmem:[#allocation13_spill] sm:$0xff]  ;;  %v4674_v34 = vor.u32 %v4672_v57, %v4670_v42  ;;  %v3126_v42 = vadd.f32 %v8907_v48, %v2934_v54 }
 0x35c   : > { %4083 = vmatmul.bf16.gmra.mxu3 %v8898_v56  ;;  %8899 = vst [vmem:[#allocation3_spill] sm:$0xff] %v8579_v16  ;;  %v3410_v50 = vpop.f32.mrf.mxu3  ;;  %v8910_v54 = vld [vmem:[#allocation21_spill] sm:$0xff]  ;;  %v8913_v16 = vld [vmem:[#allocation26_spill] sm:$0xff] }
 0x35d   : > { %v8581_v60 = vadd.f32 %v3410_v50, %v3119_v11  ;;  %v4679_v56 = vsel %vm362_vm0, %v4674_v34, %v4678_v46  ;;  %v8904_v50 = vld [vmem:[#allocation20_spill] sm:$0xff]  ;;  %v8909_v34 = vld [vmem:[#allocation18_spill] sm:$0xff] }
 0x35e   : > { %4957 = vmatmul.bf16.vlgmr.msra.gmra.mxu0 %v4872_v15  ;;  %v3124_v33 = vadd.f32 %v8904_v50, %v2932_v28  ;;  %v4686_v50 = vrot.slane %v4684_v27, 1 }
 0x35f   : > { %v2937_v20 = vpop.f32.mrf.mxu1 }
 0x363   : > { %v8590_v17 = vpop.f32.mrf.mxu0  ;;  %3588 = vmatmul.bf16.gmra.mxu1 %v8903_v62  ;;  %v8603_v62 = vpop.f32.mrf.mxu2 }
 0x364   : > { %8902 = vst [vmem:[#allocation7_spill] sm:$0xff] %v8590_v17  ;;  %v3412_v35 = vpop.f32.mrf.mxu3  ;;  %v3129_v17 = vadd.f32 %v8321_v61, %v2937_v20  ;;  %v4688_v20 = vshrl.u32 %v8350_v6, 16  ;;  %v4700_v6 = vshll.u32 %v8464_v10, 16 }
 0x365   : > { %v8593_v13 = vadd.f32 %v3412_v35, %v3121_v49 }
 0x367   : > { %v2939_v11 = vpop.f32.mrf.mxu1 }
 0x368   : > { %v3131_v27 = vadd.f32 %v8370_v3, %v2939_v11 }
 0x369   : > { %4803 = vmatmul.bf16.gmra.mxu2 %v4679_v56  ;;  %v4680_v56 = vshrl.u32 %v8239_v25, 16  ;;  %v4692_v25 = vshll.u32 %v8421_v2, 16 }
 0x36b   : > { %v8599_v12 = vpop.f32.mrf.mxu0 }
 0x36c   : > { %4088 = vmatmul.bf16.gmra.mxu3 %v8905_v14  ;;  %8906 = vst [vmem:[#allocation6_spill] sm:$0xff] %v8599_v12  ;;  %v3415_v15 = vpop.f32.mrf.mxu3  ;;  %v4682_v14 = vor.u32 %v4680_v56, %v4678_v46  ;;  %v8912_v56 = vld [vmem:[#allocation23_spill] sm:$0xff] }
 0x36d   : > { %v8601_v63 = vadd.f32 %v3415_v15, %v3124_v33  ;;  %v8613_v33 = vpop.f32.mrf.mxu2 }
 0x36e   : > { %v4687_v12 = vsel %vm362_vm0, %v4682_v14, %v4686_v50  ;;  %v4694_v14 = vrot.slane %v4692_v25, 1 }
 0x370   : > { %v2942_v49 = vpop.f32.mrf.mxu1 }
 0x371   : > { %v3134_v11 = vadd.f32 %v8425_v1, %v2942_v49 }
 0x373   : > { %v8607_v35 = vpop.f32.mrf.mxu0  ;;  %3593 = vmatmul.bf16.gmra.mxu1 %v8909_v34 }
 0x374   : > { %8908 = vst [vmem:[#allocation17_spill] sm:$0xff] %v8607_v35  ;;  %v3417_v57 = vpop.f32.mrf.mxu3 }
 0x375   : > { %v8610_v28 = vadd.f32 %v3417_v57, %v3126_v42  ;;  %v8625_v46 = vpop.f32.mrf.mxu2 }
 0x378   : > { %v2944_v15 = vpop.f32.mrf.mxu1 }
 0x379   : > { %4808 = vmatmul.bf16.gmra.mxu2 %v4687_v12 }
 0x37b   : > { %v8618_v48 = vpop.f32.mrf.mxu0 }
 0x37c   : > { %4093 = vmatmul.bf16.gmra.mxu3 %v8910_v54  ;;  %8911 = vst [vmem:[#allocation10_spill] sm:$0xff] %v8618_v48 }
 0x37d   : > { %v3420_v35 = vpop.f32.mrf.mxu3  ;;  %v8637_v48 = vpop.f32.mrf.mxu2 }
 0x37e   : > { %v8620_v34 = vadd.f32 %v3420_v35, %v3129_v17  ;;  %v4690_v17 = vor.u32 %v4688_v20, %v4686_v50  ;;  %v4696_v20 = vshrl.u32 %v8421_v2, 16 }
 0x380   : > { %v8622_v42 = vpop.f32.mrf.mxu1  ;;  %v4695_v54 = vsel %vm362_vm0, %v4690_v17, %v4694_v14  ;;  %v4702_v17 = vrot.slane %v4700_v6, 1  ;;  %v4698_v49 = vor.u32 %v4696_v20, %v4694_v14  ;;  %v6678_v14 = vld [vmem:[#allocation2 + $0x1c] sm:$0xff]  ;;  %v4704_v20 = vshrl.u32 %v8464_v10, 16 }
 0x383   : > { %v8628_v57 = vpop.f32.mrf.mxu0  ;;  %3598 = vmatmul.bf16.gmra.mxu1 %v8912_v56 }
 0x385   : > { %v3422_v12 = vpop.f32.mrf.mxu3 }
 0x386   : > { %v8631_v61 = vadd.f32 %v3422_v12, %v3131_v27 }
 0x388   : > { %v8634_v35 = vpop.f32.mrf.mxu1 }
 0x389   : > { %4813 = vmatmul.bf16.gmra.mxu2 %v4695_v54  ;;  %v3136_v54 = vadd.f32 %v8449_v40, %v2944_v15  ;;  %v4708_v40 = vshll.u32 %v8482_v43, 16 }
 0x38b   : > { %v8640_v3 = vpop.f32.mrf.mxu0 }
 0x38c   : > { %4098 = vmatmul.bf16.gmra.mxu3 %v8913_v16  ;;  %8914 = vst [vmem:[#allocation8_spill] sm:$0xff] %v8640_v3  ;;  %v8651_v16 = vpop.f32.mrf.mxu2  ;;  %v4703_v3 = vsel %vm362_vm0, %v4698_v49, %v4702_v17 }
 0x38f   : > { %v3425_v56 = vpop.f32.mrf.mxu3 }
 0x390   : > { %v8643_v27 = vadd.f32 %v3425_v56, %v3134_v11  ;;  %v3564_v12 = vpop.f32.mrf.mxu1 }
 0x391   : > { %v3611_v50 = vadd.f32 %v3564_v12, %v8400_v59 }
 0x393   : > { %v8647_v25 = vpop.f32.mrf.mxu0  ;;  %3603 = vmatmul.bf16.gmra.mxu1 %v8381_v53  ;;  %v3860_v10 = vadd.f32 %v8530_v0, %v3611_v50  ;;  %v8917_v0 = vld [vmem:[#allocation5_spill] sm:$0xff] }
 0x394   : > { %v8661_v12 = vpop.f32.mrf.mxu2 }
 0x397   : > { %v3427_v1 = vpop.f32.mrf.mxu3 }
 0x398   : > { %v8654_v11 = vadd.f32 %v3427_v1, %v3136_v54  ;;  %v3566_v56 = vpop.f32.mrf.mxu1 }
 0x399   : > { %v3612_v59 = vadd.f32 %v3566_v56, %v8429_v55  ;;  %4818 = vmatmul.bf16.gmra.mxu2 %v4703_v3  ;;  %v4706_v55 = vor.u32 %v4704_v20, %v4702_v17  ;;  %v4710_v3 = vrot.slane %v4708_v40, 1 }
 0x39b   : > { %v8659_v53 = vpop.f32.mrf.mxu0  ;;  %v4711_v49 = vsel %vm362_vm0, %v4706_v55, %v4710_v3  ;;  %v3861_v55 = vadd.f32 %v8548_v38, %v3612_v59 }
 0x39c   : > { %4103 = vmatmul.bf16.gmra.mxu3 %v8398_v37  ;;  %8915 = vst [vmem:[#allocation12_spill] sm:$0xff] %v8659_v53  ;;  %v8669_v56 = vpop.f32.mrf.mxu2 }
 0x39f   : > { %v4064_v2 = vpop.f32.mrf.mxu3 }
 0x3a0   : > { %v3569_v6 = vpop.f32.mrf.mxu1 }
 0x3a1   : > { %v3613_v15 = vadd.f32 %v3569_v6, %v8451_v52 }
 0x3a3   : > { %v8666_v54 = vpop.f32.mrf.mxu0  ;;  %4471 = vmatmul.bf16.vlgmr.msra.gmra.mxu1 %v6678_v14  ;;  %v6679_v14 = vld [vmem:[#allocation2 + $0x24] sm:$0xff]  ;;  %v3862_v50 = vadd.f32 %v8563_v5, %v3613_v15  ;;  %v8918_v15 = vld [vmem:[#allocation9_spill] sm:$0xff] }
 0x3a7   : > { %v4066_v1 = vpop.f32.mrf.mxu3 }
 0x3a8   : > { %v3571_v37 = vpop.f32.mrf.mxu1 }
 0x3a9   : > { %v3614_v53 = vadd.f32 %v3571_v37, %v8479_v36  ;;  %4823 = vmatmul.bf16.gmra.mxu2 %v4711_v49 }
 0x3ab   : > { %v8673_v52 = vpop.f32.mrf.mxu0  ;;  %v3863_v38 = vadd.f32 %v8574_v4, %v3614_v53 }
 0x3ac   : > { %4108 = vmatmul.bf16.gmra.mxu3 %v8459_v8 }
 0x3af   : > { %v4069_v43 = vpop.f32.mrf.mxu3 }
 0x3b0   : > { %v8676_v6 = vadd.f32 %v4069_v43, %v3860_v10  ;;  %v3574_v17 = vpop.f32.mrf.mxu1 }
 0x3b1   : > { %v3615_v40 = vadd.f32 %v3574_v17, %v8505_v29 }
 0x3b3   : > { %v8679_v20 = vpop.f32.mrf.mxu0  ;;  %4476 = vmatmul.bf16.gmra.mxu1 %v6679_v14  ;;  %v6680_v14 = vld [vmem:[#allocation2 + $0x2c] sm:$0xff] }
 0x3b4   : > { %8916 = vst [vmem:[#allocation11_spill] sm:$0xff] %v8679_v20 }
 0x3b7   : > { %v4071_v36 = vpop.f32.mrf.mxu3 }
 0x3b8   : > { %v8682_v3 = vadd.f32 %v4071_v36, %v3861_v55  ;;  %v3576_v8 = vpop.f32.mrf.mxu1 }
 0x3b9   : > { %v3616_v37 = vadd.f32 %v3576_v8, %v8521_v24  ;;  %v8919_v8 = vld [vmem:[#allocation25_spill] sm:$0xff] }
 0x3bb   : > { %v4467_v49 = vpop.f32.mrf.mxu0 }
 0x3bc   : > { %4962 = vmatmul.bf16.vlgmr.msra.gmra.mxu3 %v8917_v0  ;;  %v3609_v0 = vadd.f32 %v8622_v42, %v8919_v8  ;;  %v3865_v42 = vadd.f32 %v8603_v62, %v3616_v37 }
 0x3be   : > { %v3858_v4 = vadd.f32 %v8488_v22, %v3609_v0 }
 0x3bf   : > { %v4074_v10 = vpop.f32.mrf.mxu3 }
 0x3c0   : > { %v8687_v43 = vadd.f32 %v4074_v10, %v3862_v50  ;;  %v3579_v29 = vpop.f32.mrf.mxu1 }
 0x3c1   : > { %v3617_v17 = vadd.f32 %v3579_v29, %v8539_v31  ;;  %v3864_v31 = vadd.f32 %v8587_v51, %v3615_v40 }
 0x3c3   : > { %v4469_v20 = vpop.f32.mrf.mxu0  ;;  %4481 = vmatmul.bf16.gmra.mxu1 %v6680_v14  ;;  %v6681_v14 = vld [vmem:[#allocation2 + $0x34] sm:$0xff] }
 0x3c7   : > { %v4076_v59 = vpop.f32.mrf.mxu3 }
 0x3c8   : > { %v8691_v55 = vadd.f32 %v4076_v59, %v3863_v38  ;;  %v3581_v24 = vpop.f32.mrf.mxu1  ;;  %v4114_v38 = vadd.f32 %v4064_v2, %v3858_v4  ;;  %v8920_v59 = vld [vmem:[#allocation27_spill] sm:$0xff]  ;;  %v8921_v4 = vld [vmem:[#allocation14_spill] sm:$0xff] }
 0x3c9   : > { %v3618_v36 = vadd.f32 %v3581_v24, %v8550_v58  ;;  %v3610_v24 = vadd.f32 %v8634_v35, %v8920_v59 }
 0x3ca   : > { %v4293_v51 = vadd.f32 %v8447_v23, %v4114_v38  ;;  %v3866_v23 = vadd.f32 %v8613_v33, %v3617_v17 }
 0x3cb   : > { %v4779_v5 = vpop.f32.mrf.mxu0  ;;  %v3859_v22 = vadd.f32 %v8511_v18, %v3610_v24  ;;  %v3867_v33 = vadd.f32 %v8625_v46, %v3618_v36  ;;  %v6683_v46 = vld [vmem:[#allocation2 + $0x44] sm:$0xff] }
 0x3cc   : > { %4967 = vmatmul.bf16.gmra.mxu3 %v8918_v15 }
 0x3cd   : > { %v4115_v0 = vadd.f32 %v4066_v1, %v3859_v22  ;;  %v3843_v1 = vpop.f32.mrf.mxu2  ;;  %v8922_v22 = vld [vmem:[#allocation19_spill] sm:$0xff] }
 0x3cf   : > { %v4079_v50 = vpop.f32.mrf.mxu3  ;;  %v4294_v18 = vadd.f32 %v8470_v30, %v4115_v0 }
 0x3d0   : > { %v8698_v10 = vadd.f32 %v4079_v50, %v3864_v31  ;;  %v3584_v53 = vpop.f32.mrf.mxu1 }
 0x3d1   : > { %v3619_v29 = vadd.f32 %v3584_v53, %v8559_v47  ;;  %v4517_v47 = vadd.f32 %v4467_v49, %v4293_v51  ;;  %v4518_v49 = vadd.f32 %v4469_v20, %v4294_v18 }
 0x3d3   : > { %v4781_v58 = vpop.f32.mrf.mxu0  ;;  %4486 = vmatmul.bf16.gmra.mxu1 %v6681_v14  ;;  %v4829_v31 = vadd.f32 %v4779_v5, %v4517_v47  ;;  %v6682_v14 = vld [vmem:[#allocation2 + $0x3c] sm:$0xff] }
 0x3d4   : > { %v4830_v38 = vadd.f32 %v4781_v58, %v4518_v49  ;;  %v6684_v49 = vld [vmem:[#allocation2 + $0x4c] sm:$0xff] }
 0x3d5   : > { %v3845_v20 = vpop.f32.mrf.mxu2 }
 0x3d7   : > { %v4081_v40 = vpop.f32.mrf.mxu3 }
 0x3d8   : > { %v8708_v15 = vadd.f32 %v4081_v40, %v3865_v42  ;;  %v3586_v8 = vpop.f32.mrf.mxu1 }
 0x3d9   : > { %v3620_v2 = vadd.f32 %v3586_v8, %v8570_v7 }
 0x3db   : > { %v4958_v50 = vpop.f32.mrf.mxu0 }
 0x3dc   : > { %4972 = vmatmul.bf16.gmra.mxu3 %v8921_v4  ;;  %v5008_v35 = vadd.f32 %v4958_v50, %v4829_v31  ;;  %v3869_v31 = vadd.f32 %v8651_v16, %v3620_v2 }
 0x3dd   : > { %v3848_v36 = vpop.f32.mrf.mxu2 }
 0x3de   : > { %v5028_v62 = vmax.f32 %v5008_v35, 0.0 }
 0x3df   : > { %v4084_v37 = vpop.f32.mrf.mxu3 }
 0x3e0   : > { %v8720_v7 = vadd.f32 %v4084_v37, %v3866_v23  ;;  %5048 = vst [vmem:[%s8716_s23] sm:$0xff] %v5028_v62  ;;  %v3589_v5 = vpop.f32.mrf.mxu1  ;;  %v8923_v23 = vld [vmem:[#allocation24_spill] sm:$0xff] }
 0x3e1   : > { %v3621_v53 = vadd.f32 %v3589_v5, %v8581_v60  ;;  %v3868_v60 = vadd.f32 %v8637_v48, %v3619_v29 }
 0x3e3   : > { %v4960_v59 = vpop.f32.mrf.mxu0  ;;  %4491 = vmatmul.bf16.gmra.mxu1 %v6682_v14  ;;  %v3870_v48 = vadd.f32 %v8661_v12, %v3621_v53 }
 0x3e4   : > { %v5009_v24 = vadd.f32 %v4960_v59, %v4830_v38 }
 0x3e5   : > { %v3850_v29 = vpop.f32.mrf.mxu2 }
 0x3e6   : > { %v5029_v17 = vmax.f32 %v5009_v24, 0.0 }
 0x3e7   : > { %v4086_v30 = vpop.f32.mrf.mxu3 }
 0x3e8   : > { %v8725_v42 = vadd.f32 %v4086_v30, %v3867_v33  ;;  %5049 = vst [vmem:[%s8716_s23 + $0x8] sm:$0xff] %v5029_v17  ;;  %v3591_v51 = vpop.f32.mrf.mxu1  ;;  %v6685_v17 = vld [vmem:[#allocation2 + $0x54] sm:$0xff] }
 0x3e9   : > { %v3622_v40 = vadd.f32 %v3591_v51, %v8593_v13 }
 0x3eb   : > { %v3871_v16 = vadd.f32 %v8669_v56, %v3622_v40 }
 0x3ec   : > { %4977 = vmatmul.bf16.gmra.mxu3 %v8922_v22 }
 0x3ed   : > { %v3853_v2 = vpop.f32.mrf.mxu2 }
 0x3ef   : > { %v4089_v47 = vpop.f32.mrf.mxu3 }
 0x3f0   : > { %v8731_v58 = vadd.f32 %v4089_v47, %v3868_v60  ;;  %v3594_v8 = vpop.f32.mrf.mxu1 }
 0x3f1   : > { %v3623_v0 = vadd.f32 %v3594_v8, %v8601_v63  ;;  %v6686_v8 = vld [vmem:[#allocation2 + $0x5c] sm:$0xff] }
 0x3f3   : > { %4496 = vmatmul.bf16.gmra.mxu1 %v6683_v46  ;;  %v3872_v12 = vadd.f32 %v3843_v1, %v3623_v0 }
 0x3f5   : > { %v3855_v24 = vpop.f32.mrf.mxu2 }
 0x3f7   : > { %v4091_v50 = vpop.f32.mrf.mxu3 }
 0x3f8   : > { %v8735_v4 = vadd.f32 %v4091_v50, %v3869_v31  ;;  %v3596_v13 = vpop.f32.mrf.mxu1 }
 0x3f9   : > { %v3624_v35 = vadd.f32 %v3596_v13, %v8610_v28 }
 0x3fb   : > { %v3873_v56 = vadd.f32 %v3845_v20, %v3624_v35 }
 0x3fc   : > { %4982 = vmatmul.bf16.gmra.mxu3 %v8923_v23 }
 0x3ff   : > { %v4094_v18 = vpop.f32.mrf.mxu3 }
 0x400   : > { %v8740_v62 = vadd.f32 %v4094_v18, %v3870_v48  ;;  %v3599_v63 = vpop.f32.mrf.mxu1  ;;  %v4295_v48 = vadd.f32 %v8500_v41, %v8676_v6 }
 0x401   : > { %v3625_v37 = vadd.f32 %v3599_v63, %v8620_v34 }
 0x403   : > { %4501 = vmatmul.bf16.gmra.mxu1 %v6684_v49 }
 0x407   : > { %v4096_v5 = vpop.f32.mrf.mxu3 }
 0x408   : > { %v8744_v14 = vadd.f32 %v4096_v5, %v3871_v16  ;;  %v3601_v28 = vpop.f32.mrf.mxu1  ;;  %v4296_v16 = vadd.f32 %v8515_v44, %v8682_v3  ;;  %v8924_v3 = vld [vmem:[#allocation4_spill] sm:$0xff] }
 0x409   : > { %v3626_v38 = vadd.f32 %v3601_v28, %v8631_v61  ;;  %v4784_v61 = vpop.f32.mrf.mxu2 }
 0x40b   : > { %v3875_v0 = vadd.f32 %v3850_v29, %v3626_v38 }
 0x40c   : > { %4987 = vmatmul.bf16.gmra.mxu3 %v8388_v39  ;;  %v3874_v39 = vadd.f32 %v3848_v36, %v3625_v37 }
 0x40f   : > { %v4099_v53 = vpop.f32.mrf.mxu3 }
 0x410   : > { %v8748_v59 = vadd.f32 %v4099_v53, %v3872_v12  ;;  %v3604_v33 = vpop.f32.mrf.mxu1  ;;  %v4297_v53 = vadd.f32 %v8534_v32, %v8687_v43 }
 0x411   : > { %v3627_v34 = vadd.f32 %v3604_v33, %v8643_v27  ;;  %v4786_v27 = vpop.f32.mrf.mxu2 }
 0x413   : > { %4506 = vmatmul.bf16.gmra.mxu1 %v6685_v17  ;;  %v3876_v50 = vadd.f32 %v3853_v2, %v3627_v34 }
 0x417   : > { %v4101_v30 = vpop.f32.mrf.mxu3 }
 0x418   : > { %v8751_v51 = vadd.f32 %v4101_v30, %v3873_v56  ;;  %v3606_v40 = vpop.f32.mrf.mxu1  ;;  %v4298_v30 = vadd.f32 %v8924_v3, %v8691_v55  ;;  %v8928_v3 = vld [vmem:[#allocation17_spill] sm:$0xff] }
 0x419   : > { %v3628_v22 = vadd.f32 %v3606_v40, %v8654_v11  ;;  %v4789_v11 = vpop.f32.mrf.mxu2 }
 0x41b   : > { %v3877_v36 = vadd.f32 %v3855_v24, %v3628_v22 }
 0x41c   : > { %4992 = vmatmul.bf16.gmra.mxu3 %v8435_v19 }
 0x41f   : > { %v4104_v1 = vpop.f32.mrf.mxu3 }
 0x420   : > { %v8755_v60 = vadd.f32 %v4104_v1, %v3874_v39  ;;  %v4472_v47 = vpop.f32.mrf.mxu1 }
 0x421   : > { %v4791_v29 = vpop.f32.mrf.mxu2  ;;  %v4519_v37 = vadd.f32 %v4472_v47, %v4295_v48  ;;  %v4299_v47 = vadd.f32 %v8557_v26, %v8698_v10  ;;  %v8925_v10 = vld [vmem:[#allocation3_spill] sm:$0xff] }
 0x423   : > { %4511 = vmatmul.bf16.gmra.mxu1 %v6686_v8 }
 0x427   : > { %v4106_v46 = vpop.f32.mrf.mxu3 }
 0x428   : > { %v8757_v20 = vadd.f32 %v4106_v46, %v3875_v0  ;;  %v4474_v31 = vpop.f32.mrf.mxu1 }
 0x429   : > { %v4520_v28 = vadd.f32 %v4474_v31, %v4296_v16  ;;  %v4794_v12 = vpop.f32.mrf.mxu2 }
 0x42b   : > { %v4832_v41 = vadd.f32 %v4786_v27, %v4520_v28 }
 0x42c   : > { %4997 = vmatmul.bf16.gmra.mxu3 %v8486_v9  ;;  %v4831_v9 = vadd.f32 %v4784_v61, %v4519_v37 }
 0x42f   : > { %v4109_v13 = vpop.f32.mrf.mxu3 }
 0x430   : > { %v8760_v35 = vadd.f32 %v4109_v13, %v3876_v50  ;;  %v4477_v19 = vpop.f32.mrf.mxu1  ;;  %v4300_v50 = vadd.f32 %v8567_v45, %v8708_v15 }
 0x431   : > { %v4521_v33 = vadd.f32 %v4477_v19, %v4297_v53  ;;  %v4796_v17 = vpop.f32.mrf.mxu2  ;;  %v8927_v53 = vld [vmem:[#allocation6_spill] sm:$0xff] }
 0x433   : > { %v4833_v56 = vadd.f32 %v4789_v11, %v4521_v33 }
 0x437   : > { %v4111_v23 = vpop.f32.mrf.mxu3 }
 0x438   : > { %v8764_v18 = vadd.f32 %v4111_v23, %v3877_v36  ;;  %v4479_v63 = vpop.f32.mrf.mxu1 }
 0x439   : > { %v4522_v61 = vadd.f32 %v4479_v63, %v4298_v30  ;;  %v4799_v32 = vpop.f32.mrf.mxu2  ;;  %v4304_v30 = vadd.f32 %v8928_v3, %v8735_v4 }
 0x43b   : > { %v4834_v1 = vadd.f32 %v4791_v29, %v4522_v61  ;;  %v4301_v29 = vadd.f32 %v8925_v10, %v8720_v7 }
 0x43c   : > { %5002 = vmatmul.bf16.gmra.mxu3 %v8494_v21 }
 0x43f   : > { %v4963_v49 = vpop.f32.mrf.mxu3 }
 0x440   : > { %v5010_v2 = vadd.f32 %v4963_v49, %v4831_v9  ;;  %v4482_v5 = vpop.f32.mrf.mxu1 }
 0x441   : > { %v4523_v27 = vadd.f32 %v4482_v5, %v4299_v47  ;;  %v4801_v13 = vpop.f32.mrf.mxu2 }
 0x442   : > { %v5030_v38 = vmax.f32 %v5010_v2, 0.0  ;;  %v8926_v2 = vld [vmem:[#allocation7_spill] sm:$0xff] }
 0x443   : > { %v4835_v31 = vadd.f32 %v4794_v12, %v4523_v27  ;;  %v4302_v5 = vadd.f32 %v8926_v2, %v8725_v42 }
 0x444   : > { %5050 = vst [vmem:[%s8716_s23 + $0x10] sm:$0xff] %v5030_v38 }
 0x447   : > { %v4965_v6 = vpop.f32.mrf.mxu3 }
 0x448   : > { %v5011_v24 = vadd.f32 %v4965_v6, %v4832_v41  ;;  %v4484_v21 = vpop.f32.mrf.mxu1 }
 0x449   : > { %v4524_v19 = vadd.f32 %v4484_v21, %v4300_v50  ;;  %v4804_v49 = vpop.f32.mrf.mxu2 }
 0x44a   : > { %v5031_v34 = vmax.f32 %v5011_v24, 0.0  ;;  %v4303_v24 = vadd.f32 %v8927_v53, %v8731_v58 }
 0x44b   : > { %v4836_v48 = vadd.f32 %v4796_v17, %v4524_v19 }
 0x44c   : > { %5051 = vst [vmem:[%s8716_s23 + $0x18] sm:$0xff] %v5031_v34 }
 0x44f   : > { %v4968_v44 = vpop.f32.mrf.mxu3 }
 0x450   : > { %v5012_v40 = vadd.f32 %v4968_v44, %v4833_v56  ;;  %v4487_v22 = vpop.f32.mrf.mxu1 }
 0x451   : > { %v4525_v37 = vadd.f32 %v4487_v22, %v4301_v29  ;;  %v4806_v41 = vpop.f32.mrf.mxu2 }
 0x452   : > { %v5032_v39 = vmax.f32 %v5012_v40, 0.0 }
 0x453   : > { %v4837_v16 = vadd.f32 %v4799_v32, %v4525_v37  ;;  %v8929_v32 = vld [vmem:[#allocation10_spill] sm:$0xff] }
 0x454   : > { %5052 = vst [vmem:[%s8716_s23 + $0x20] sm:$0xff] %v5032_v39 }
 0x457   : > { %v4970_v43 = vpop.f32.mrf.mxu3 }
 0x458   : > { %v5013_v8 = vadd.f32 %v4970_v43, %v4834_v1  ;;  %v4489_v46 = vpop.f32.mrf.mxu1  ;;  %v4305_v43 = vadd.f32 %v8929_v32, %v8740_v62 }
 0x459   : > { %v4526_v38 = vadd.f32 %v4489_v46, %v4302_v5  ;;  %v4809_v44 = vpop.f32.mrf.mxu2 }
 0x45a   : > { %v5033_v0 = vmax.f32 %v5013_v8, 0.0 }
 0x45b   : > { %v4838_v6 = vadd.f32 %v4801_v13, %v4526_v38 }
 0x45c   : > { %5053 = vst [vmem:[%s8716_s23 + $0x28] sm:$0xff] %v5033_v0 }
 0x45f   : > { %v4973_v55 = vpop.f32.mrf.mxu3 }
 0x460   : > { %v5014_v11 = vadd.f32 %v4973_v55, %v4835_v31  ;;  %v4492_v23 = vpop.f32.mrf.mxu1  ;;  %v4306_v55 = vadd.f32 %v8628_v57, %v8744_v14  ;;  %v4308_v14 = vadd.f32 %v8647_v25, %v8751_v51  ;;  %v4310_v51 = vadd.f32 %v8666_v54, %v8757_v20 }
 0x461   : > { %v4527_v34 = vadd.f32 %v4492_v23, %v4303_v24  ;;  %v4811_v8 = vpop.f32.mrf.mxu2 }
 0x462   : > { %v5034_v36 = vmax.f32 %v5014_v11, 0.0 }
 0x463   : > { %v4839_v56 = vadd.f32 %v4804_v49, %v4527_v34 }
 0x464   : > { %5054 = vst [vmem:[%s8716_s23 + $0x30] sm:$0xff] %v5034_v36 }
 0x467   : > { %v4975_v26 = vpop.f32.mrf.mxu3 }
 0x468   : > { %v5015_v63 = vadd.f32 %v4975_v26, %v4836_v48  ;;  %v4494_v45 = vpop.f32.mrf.mxu1  ;;  %v8930_v48 = vld [vmem:[#allocation8_spill] sm:$0xff] }
 0x469   : > { %v4528_v22 = vadd.f32 %v4494_v45, %v4304_v30  ;;  %v4814_v19 = vpop.f32.mrf.mxu2  ;;  %v4307_v26 = vadd.f32 %v8930_v48, %v8748_v59 }
 0x46a   : > { %v5035_v9 = vmax.f32 %v5015_v63, 0.0 }
 0x46b   : > { %v4840_v1 = vadd.f32 %v4806_v41, %v4528_v22 }
 0x46c   : > { %5055 = vst [vmem:[%s8716_s23 + $0x38] sm:$0xff] %v5035_v9 }
 0x46f   : > { %v4978_v15 = vpop.f32.mrf.mxu3 }
 0x470   : > { %v5016_v28 = vadd.f32 %v4978_v15, %v4837_v16  ;;  %v4497_v33 = vpop.f32.mrf.mxu1 }
 0x471   : > { %v4529_v27 = vadd.f32 %v4497_v33, %v4305_v43  ;;  %v4816_v37 = vpop.f32.mrf.mxu2 }
 0x472   : > { %v5036_v12 = vmax.f32 %v5016_v28, 0.0  ;;  %v8931_v28 = vld [vmem:[#allocation12_spill] sm:$0xff] }
 0x473   : > { %v4841_v31 = vadd.f32 %v4809_v44, %v4529_v27  ;;  %v4309_v38 = vadd.f32 %v8931_v28, %v8755_v60  ;;  %v4311_v44 = vadd.f32 %v8673_v52, %v8760_v35 }
 0x474   : > { %5056 = vst [vmem:[%s8716_s23 + $0x40] sm:$0xff] %v5036_v12 }
 0x477   : > { %v4980_v7 = vpop.f32.mrf.mxu3 }
 0x478   : > { %v5017_v21 = vadd.f32 %v4980_v7, %v4838_v6  ;;  %v4499_v39 = vpop.f32.mrf.mxu1 }
 0x479   : > { %v4530_v11 = vadd.f32 %v4499_v39, %v4306_v55  ;;  %v4819_v5 = vpop.f32.mrf.mxu2 }
 0x47a   : > { %v5037_v17 = vmax.f32 %v5017_v21, 0.0 }
 0x47b   : > { %v4842_v36 = vadd.f32 %v4811_v8, %v4530_v11 }
 0x47c   : > { %5057 = vst [vmem:[%s8716_s23 + $0x48] sm:$0xff] %v5037_v17 }
 0x47f   : > { %v4983_v42 = vpop.f32.mrf.mxu3 }
 0x480   : > { %v5018_v40 = vadd.f32 %v4983_v42, %v4839_v56  ;;  %v4502_v46 = vpop.f32.mrf.mxu1 }
 0x481   : > { %v4531_v29 = vadd.f32 %v4502_v46, %v4307_v26  ;;  %v4821_v21 = vpop.f32.mrf.mxu2 }
 0x482   : > { %v5038_v61 = vmax.f32 %v5018_v40, 0.0 }
 0x483   : > { %v4843_v9 = vadd.f32 %v4814_v19, %v4531_v29 }
 0x484   : > { %5058 = vst [vmem:[%s8716_s23 + $0x50] sm:$0xff] %v5038_v61  ;;  %v8932_v61 = vld [vmem:[#allocation11_spill] sm:$0xff] }
 0x485   : > { %v4312_v39 = vadd.f32 %v8932_v61, %v8764_v18 }
 0x487   : > { %v4985_v58 = vpop.f32.mrf.mxu3 }
 0x488   : > { %v5019_v47 = vadd.f32 %v4985_v58, %v4840_v1  ;;  %v4504_v62 = vpop.f32.mrf.mxu1 }
 0x489   : > { %v4532_v45 = vadd.f32 %v4504_v62, %v4308_v14  ;;  %v4824_v40 = vpop.f32.mrf.mxu2 }
 0x48a   : > { %v5039_v0 = vmax.f32 %v5019_v47, 0.0 }
 0x48b   : > { %v4844_v2 = vadd.f32 %v4816_v37, %v4532_v45 }
 0x48c   : > { %5059 = vst [vmem:[%s8716_s23 + $0x58] sm:$0xff] %v5039_v0 }
 0x48f   : > { %v4988_v4 = vpop.f32.mrf.mxu3 }
 0x490   : > { %v5020_v50 = vadd.f32 %v4988_v4, %v4841_v31  ;;  %v4507_v16 = vpop.f32.mrf.mxu1 }
 0x491   : > { %v4533_v41 = vadd.f32 %v4507_v16, %v4309_v38  ;;  %v4826_v43 = vpop.f32.mrf.mxu2 }
 0x492   : > { %v5040_v13 = vmax.f32 %v5020_v50, 0.0 }
 0x493   : > { %v4845_v53 = vadd.f32 %v4819_v5, %v4533_v41 }
 0x494   : > { %5060 = vst [vmem:[%s8716_s23 + $0x60] sm:$0xff] %v5040_v13 }
 0x497   : > { %v4990_v23 = vpop.f32.mrf.mxu3 }
 0x498   : > { %v5021_v10 = vadd.f32 %v4990_v23, %v4842_v36  ;;  %v4509_v7 = vpop.f32.mrf.mxu1 }
 0x499   : > { %v4534_v33 = vadd.f32 %v4509_v7, %v4310_v51 }
 0x49a   : > { %v5041_v63 = vmax.f32 %v5021_v10, 0.0 }
 0x49b   : > { %v4846_v56 = vadd.f32 %v4821_v21, %v4534_v33 }
 0x49c   : > { %5061 = vst [vmem:[%s8716_s23 + $0x68] sm:$0xff] %v5041_v63 }
 0x49f   : > { %v4993_v57 = vpop.f32.mrf.mxu3 }
 0x4a0   : > { %v5022_v49 = vadd.f32 %v4993_v57, %v4843_v9  ;;  %v4512_v17 = vpop.f32.mrf.mxu1 }
 0x4a1   : > { %v4535_v3 = vadd.f32 %v4512_v17, %v4311_v44 }
 0x4a2   : > { %v5042_v15 = vmax.f32 %v5022_v49, 0.0 }
 0x4a3   : > { %v4847_v22 = vadd.f32 %v4824_v40, %v4535_v3 }
 0x4a4   : > { %5062 = vst [vmem:[%s8716_s23 + $0x70] sm:$0xff] %v5042_v15 }
 0x4a7   : > { %v4995_v59 = vpop.f32.mrf.mxu3 }
 0x4a8   : > { %v5023_v12 = vadd.f32 %v4995_v59, %v4844_v2  ;;  %v4514_v54 = vpop.f32.mrf.mxu1 }
 0x4a9   : > { %v4536_v58 = vadd.f32 %v4514_v54, %v4312_v39 }
 0x4aa   : > { %v5043_v6 = vmax.f32 %v5023_v12, 0.0 }
 0x4ab   : > { %v4848_v47 = vadd.f32 %v4826_v43, %v4536_v58 }
 0x4ac   : > { %5063 = vst [vmem:[%s8716_s23 + $0x78] sm:$0xff] %v5043_v6 }
 0x4af   : > { %v4998_v25 = vpop.f32.mrf.mxu3 }
 0x4b0   : > { %v5024_v24 = vadd.f32 %v4998_v25, %v4845_v53 }
 0x4b2   : > { %v5044_v34 = vmax.f32 %v5024_v24, 0.0 }
 0x4b4   : > { %5064 = vst [vmem:[%s8716_s23 + $0x80] sm:$0xff] %v5044_v34 }
 0x4b7   : > { %v5000_v60 = vpop.f32.mrf.mxu3 }
 0x4b8   : > { %v5025_v42 = vadd.f32 %v5000_v60, %v4846_v56 }
 0x4ba   : > { %v5045_v30 = vmax.f32 %v5025_v42, 0.0 }
 0x4bc   : > { %5065 = vst [vmem:[%s8716_s23 + $0x88] sm:$0xff] %v5045_v30 }
 0x4bf   : > { %v5003_v20 = vpop.f32.mrf.mxu3 }
 0x4c0   : > { %v5026_v1 = vadd.f32 %v5003_v20, %v4847_v22 }
 0x4c2   : > { %v5046_v32 = vmax.f32 %v5026_v1, 0.0 }
 0x4c4   : > { %5066 = vst [vmem:[%s8716_s23 + $0x90] sm:$0xff] %v5046_v32 }
 0x4c7   : > { %v5005_v8 = vpop.f32.mrf.mxu3 }
 0x4c8   : > { %v5027_v52 = vadd.f32 %v5005_v8, %v4848_v47 }
 0x4ca   : > { %v5047_v35 = vmax.f32 %v5027_v52, 0.0 }
 0x4cc   : > { %5067 = vst [vmem:[%s8716_s23 + $0x98] sm:$0xff] %v5047_v35 }
 0x4cd PF: > { %s14_s19 = sadd.s32 1, %s6921_s19   ;;  %s8933_s15 = smov %s6913_s17 }
 0x4ce   : > { %p11_p7 = scmp.ge.s32.totalorder %s14_s19, 6   ;;  %s8934_s16 = smov %s6917_s18 }
 0x4cf   : > { %s8935_s17 = smov %s8938_s20  ;;  %s8936_s18 = smov %s8942_s21 }
 0x4d0   :  { %13 = sbr.rel (!%p11_p7) target bundleno = 3 (0x3), region = 82 }

</bundles_post_ra>
